<compile_context>
chip_gen: v5e
topology: v5e:2x2
jax: 0.10.0
libtpu: 0.0.40
codegen_flags: <defaults>
</compile_context>

<pallas_src>
import warnings

import jax
import jax.numpy as jnp
from jax import lax
from jax.experimental import pallas as pl
from jax.experimental.pallas import tpu as pltpu


# -----------------------------------------------------------------------------
# Host-side folding of the augmentation decisions.
#
# geom_aug applies, in order: hflip^hf -> vflip^vf -> rot90^k (CCW, axes
# (-2,-1)).  (hflip, vflip, rot90^k) is an element of the dihedral group D4;
# it folds into the canonical form
#     out = T^t( rev_H^p( rev_W^q( in ) ) )
# with
#     t = k & 1
#     p = vf XOR (k >= 2)          # reverse along H (sublane axis)
#     q = hf XOR (k in {1, 2})     # reverse along W (lane axis)
# -----------------------------------------------------------------------------
def _fold_flags(flags):
    flags = flags.astype(jnp.int32)
    hf, vf, k = flags[0], flags[1], flags[2]
    t = k & 1
    p = vf ^ (k // 2)
    q = hf ^ ((k == 1) | (k == 2)).astype(jnp.int32)
    return jnp.stack([t, p, q])


# -----------------------------------------------------------------------------
# Fast kernel: pure permutation, fully pl.when-gated.
# -----------------------------------------------------------------------------
def _aug_kernel(flags_ref, x_ref, y_ref, xo_ref, yo_ref):
    t = flags_ref[0]       # transpose last two dims (applied last)
    p = flags_ref[1]       # reverse along H (sublane axis)
    q = flags_ref[2]       # reverse along W (lane axis)

    def emit(src_ref, dst_ref, is_image):
        # Exactly one (p, q) branch runs per call; nothing is computed for the
        # non-selected combinations (no both-branch where-selects).
        for pv in (0, 1):
            for qv in (0, 1):
                @pl.when((p == pv) & (q == qv))
                def _(pv=pv, qv=qv):
                    v = src_ref[...]
                    axes = tuple(ax for ax, on in ((2, pv), (3, qv)) if on)
                    if axes:
                        v = lax.rev(v, axes)
                    if is_image:
                        # pan/rgb /255 -> identity radiometric augs -> *255
                        # (kept for bit-faithfulness to the torch module).
                        v = (v / 255.0) * 255.0

                    @pl.when(t == 0)
                    def _():
                        dst_ref[...] = v

                    @pl.when(t != 0)
                    def _():
                        # rot90's transpose: per-plane 2-D minor-dims transpose
                        # (square spatial, block covers full H and W).
                        for n in range(v.shape[0]):
                            for c in range(v.shape[1]):
                                dst_ref[n, c] = v[n, c].T

    emit(x_ref, xo_ref, True)
    emit(y_ref, yo_ref, False)


# -----------------------------------------------------------------------------
# Lowering safety net (expected dead code).  Uses only bread-and-butter ops
# (iota / compare / dot / 2-D transpose) in case lax.rev has no lowering on
# the local toolchain.  Unlike the previous version, nothing runs outside its
# selected pl.when branch and the identity case does zero matmuls.
# TODO(synk): delete once lax.rev lowering is confirmed on every deployed
# Pallas TPU toolchain (gather / pltpu.roll variants would be faster but are
# less universally supported, which defeats the purpose of a safety net).
# -----------------------------------------------------------------------------
def _aug_kernel_fallback(flags_ref, x_ref, y_ref, xo_ref, yo_ref):
    t = flags_ref[0]
    p = flags_ref[1]
    q = flags_ref[2]
    S = x_ref.shape[-1]

    def emit(src_ref, dst_ref, is_image):
        for pv in (0, 1):
            for qv in (0, 1):
                @pl.when((p == pv) & (q == qv))
                def _(pv=pv, qv=qv):
                    if pv or qv:
                        rows = lax.broadcasted_iota(jnp.int32, (S, S), 0)
                        cols = lax.broadcasted_iota(jnp.int32, (S, S), 1)
                        anti = (rows + cols == S - 1).astype(jnp.float32)
                    for n in range(src_ref.shape[0]):
                        for c in range(src_ref.shape[1]):
                            g = src_ref[n, c]
                            if pv:   # reverse rows (H): left-multiply by J
                                g = jnp.dot(anti, g,
                                            preferred_element_type=jnp.float32)
                            if qv:   # reverse cols (W): right-multiply by J
                                g = jnp.dot(g, anti,
                                            preferred_element_type=jnp.float32)
                            if is_image:
                                g = (g / 255.0) * 255.0

                            @pl.when(t == 0)
                            def _(g=g, n=n, c=c):
                                dst_ref[n, c] = g

                            @pl.when(t != 0)
                            def _(g=g, n=n, c=c):
                                dst_ref[n, c] = g.T

    emit(x_ref, xo_ref, True)
    emit(y_ref, yo_ref, False)


# -----------------------------------------------------------------------------
# pallas_call builder + implementation dispatch.
# -----------------------------------------------------------------------------
_VMEM_LIMIT_BYTES = 48 * 1024 * 1024   # safe under v7x's 64 MiB physical VMEM
_BLOCK_BUDGET_BYTES = 40 * 1024 * 1024


def _pick_batch_block(N, C, Cm, H, W, itemsize):
    """Images per block: as many as fit the VMEM budget (fewer grid steps ->
    less per-step overhead), bounded so the static transpose unroll stays
    small.  Budget accounts for double-buffered in+out (~4x) plus in-kernel
    temporaries (~2x)."""
    per_image = (C + Cm) * H * W * itemsize
    nb = min(N,
             max(1, _BLOCK_BUDGET_BYTES // (6 * per_image)),
             max(1, 64 // (C + Cm)))
    while N % nb:
        nb -= 1
    return nb


def _build_call(kernel, x, y):
    N, C, H, W = x.shape
    Cm = y.shape[1]
    assert H == W, "rot90 requires square spatial dims to keep the shape"
    nb = _pick_batch_block(N, C, Cm, H, W, jnp.dtype(x.dtype).itemsize)

    # Blocks cover `nb` whole images: at the demo size this is ONE grid step
    # (amortizes the ~0.35 us/step overhead, the dominant cost at 16x16).
    # Production-sized images should use W in multiples of 128 / H in
    # multiples of 8 so stores lower to unmasked vst.
    # TODO(synk): add a spatially tiled variant for images that exceed the
    # per-block budget, folding the coarse flip/transpose into these
    # index_maps via the prefetched flags so writes stay sequential.
    grid_spec = pltpu.PrefetchScalarGridSpec(
        num_scalar_prefetch=1,
        grid=(N // nb,),
        in_specs=[
            pl.BlockSpec((nb, C, H, W), lambda g, flags: (g, 0, 0, 0)),
            pl.BlockSpec((nb, Cm, H, W), lambda g, flags: (g, 0, 0, 0)),
        ],
        out_specs=[
            pl.BlockSpec((nb, C, H, W), lambda g, flags: (g, 0, 0, 0)),
            pl.BlockSpec((nb, Cm, H, W), lambda g, flags: (g, 0, 0, 0)),
        ],
    )
    call = pl.pallas_call(
        kernel,
        grid_spec=grid_spec,
        out_shape=(
            jax.ShapeDtypeStruct(x.shape, x.dtype),
            jax.ShapeDtypeStruct(y.shape, y.dtype),
        ),
        compiler_params=pltpu.CompilerParams(
            # Batch-group axis stays parallel so both v7x TensorCores get work
            # whenever there is more than one block (no-op on v5e/v6e).
            dimension_semantics=("parallel",),
            vmem_limit_bytes=_VMEM_LIMIT_BYTES,
        ),
    )
    return jax.jit(call)   # cache trace/compile across repeated calls


_IMPL_CACHE = {}


def bitemporal_aug(x, y, flags):
    """Forward pass of BitemporalAugmentationModule.

    flags = [do_hflip, do_vflip, rot90_times] (int32); one draw per call,
    matching same_on_batch=True.
    """
    folded = _fold_flags(flags)
    key = (x.shape, y.shape, str(x.dtype), str(y.dtype))
    impl = _IMPL_CACHE.get(key)
    if impl is None:
        impl = _build_call(_aug_kernel, x, y)
        try:
            out = jax.block_until_ready(impl(folded, x, y))
            _IMPL_CACHE[key] = impl
            return out
        except (pltpu.LoweringException, NotImplementedError) as e:
            # Narrow: only lowering/compile gaps reach here.  Runtime failures
            # (VMEM OOM, OOB, ...) propagate instead of silently degrading.
            warnings.warn(
                "Pallas lowering of the permutation kernel failed "
                f"({type(e).__name__}); caching the matmul-permutation "
                "safety-net kernel instead.")
            impl = _build_call(_aug_kernel_fallback, x, y)
            _IMPL_CACHE[key] = impl
    return impl(folded, x, y)


def _reference(x, y, flags):
    """Pure-JAX reference of the module's forward (for correctness checks)."""
    hf, vf, k = int(flags[0]), int(flags[1]), int(flags[2])

    def geom(a):
        if hf:
            a = a[..., ::-1]
        if vf:
            a = a[..., ::-1, :]
        return jnp.rot90(a, k, axes=(-2, -1))

    xg = geom(x)
    yg = geom(y)
    pan = xg[:, 0:1] / 255.0
    rgb = xg[:, 1:4] / 255.0
    x_aug = jnp.concatenate([pan * 255.0, rgb * 255.0], axis=1)
    return x_aug, yg


if __name__ == "__main__":
    key = jax.random.PRNGKey(0)
    k_hf, k_vf, k_rp, k_rt, k_x, k_y = jax.random.split(key, 6)

    # Inputs: batch=2, 4 image channels (1 PAN + 3 RGB) in [0, 255], 1 mask
    # channel, 16x16 spatial.
    x = jnp.round(jax.random.uniform(k_x, (2, 4, 16, 16)) * 255.0).astype(jnp.float32)
    y = (jax.random.uniform(k_y, (2, 1, 16, 16)) > 0.5).astype(jnp.float32)

    # Module-style random draw (same_on_batch=True -> one decision per call).
    hf = jax.random.bernoulli(k_hf, 0.5).astype(jnp.int32)
    vf = jax.random.bernoulli(k_vf, 0.5).astype(jnp.int32)
    rot = (jax.random.bernoulli(k_rp, 0.5).astype(jnp.int32)
           * jax.random.randint(k_rt, (), 0, 4, dtype=jnp.int32))
    flags = jnp.stack([hf, vf, rot]).astype(jnp.int32)
    x_aug, y_aug = jax.block_until_ready(bitemporal_aug(x, y, flags))
    assert x_aug.shape == x.shape and y_aug.shape == y.shape

    # Exhaustively validate every augmentation decision the sampler can make
    # (flags are runtime inputs -> a single compiled executable is reused).
    for hflip in (0, 1):
        for vflip in (0, 1):
            for times in (0, 1, 2, 3):
                f = jnp.array([hflip, vflip, times], dtype=jnp.int32)
                xa, ya = jax.block_until_ready(bitemporal_aug(x, y, f))
                xr, yr = _reference(x, y, f)
                # atol covers ulp-level /255*255 differences; a wrong
                # permutation would be off by >= 1.0 on many pixels.
                assert jnp.allclose(xa, xr, atol=1e-4), ("image", hflip, vflip, times)
                assert jnp.array_equal(ya, yr), ("mask", hflip, vflip, times)

    print("KERNEL_OK")
</pallas_src>

<mosaic_0001>
module attributes {stable_mosaic.version = 11 : i64} {
  func.func @_aug_kernel_fallback(%arg0: i32, %arg1: memref<3xi32, #tpu.memory_space<smem>>, %arg2: memref<2x4x16x16xf32, #tpu.memory_space<vmem>>, %arg3: memref<2x1x16x16xf32, #tpu.memory_space<vmem>>, %arg4: memref<2x4x16x16xf32, #tpu.memory_space<vmem>>, %arg5: memref<2x1x16x16xf32, #tpu.memory_space<vmem>>) attributes {dimension_semantics = [#tpu.dimension_semantics<parallel>], iteration_bounds = array<i64: 1>, scalar_prefetch = 1 : i64, scratch_operands = 0 : i64, tpu.core_type = #tpu.core_type<tc>, window_params = [{transform_indices = @transform_0, window_bounds = array<i64: 2, 4, 16, 16>}, {transform_indices = @transform_1, window_bounds = array<i64: 2, 1, 16, 16>}, {transform_indices = @transform_2, window_bounds = array<i64: 2, 4, 16, 16>}, {transform_indices = @transform_3, window_bounds = array<i64: 2, 1, 16, 16>}]} {
    %c0 = arith.constant 0 : index
    %0 = memref.load %arg1[%c0] : memref<3xi32, #tpu.memory_space<smem>>
    %c1 = arith.constant 1 : index
    %1 = memref.load %arg1[%c1] : memref<3xi32, #tpu.memory_space<smem>>
    %c2 = arith.constant 2 : index
    %2 = memref.load %arg1[%c2] : memref<3xi32, #tpu.memory_space<smem>>
    %c0_i32 = arith.constant 0 : i32
    %3 = arith.cmpi eq, %1, %c0_i32 : i32
    %c0_i32_0 = arith.constant 0 : i32
    %4 = arith.cmpi eq, %2, %c0_i32_0 : i32
    %5 = arith.andi %3, %4 : i1
    %6 = arith.extui %5 : i1 to i32
    %c0_i32_1 = arith.constant 0 : i32
    %7 = arith.cmpi ne, %6, %c0_i32_1 : i32
    scf.if %7 {
      %c0_22 = arith.constant 0 : index
      %c0_23 = arith.constant 0 : index
      %c0_24 = arith.constant 0 : index
      %c0_25 = arith.constant 0 : index
      %43 = vector.load %arg2[%c0_22, %c0_23, %c0_24, %c0_25] : memref<2x4x16x16xf32, #tpu.memory_space<vmem>>, vector<1x1x16x16xf32>
      %44 = vector.shape_cast %43 : vector<1x1x16x16xf32> to vector<16x16xf32>
      %cst = arith.constant 2.550000e+02 : f32
      %45 = vector.broadcast %cst : f32 to vector<16x16xf32>
      %46 = arith.divf %44, %45 : vector<16x16xf32>
      %cst_26 = arith.constant 2.550000e+02 : f32
      %47 = vector.broadcast %cst_26 : f32 to vector<16x16xf32>
      %48 = arith.mulf %46, %47 : vector<16x16xf32>
      %c0_i32_27 = arith.constant 0 : i32
      %49 = arith.cmpi eq, %0, %c0_i32_27 : i32
      %50 = arith.extui %49 : i1 to i32
      %c0_i32_28 = arith.constant 0 : i32
      %51 = arith.cmpi ne, %50, %c0_i32_28 : i32
      scf.if %51 {
        %c0_100 = arith.constant 0 : index
        %c0_101 = arith.constant 0 : index
        %c0_102 = arith.constant 0 : index
        %c0_103 = arith.constant 0 : index
        %139 = vector.load %arg4[%c0_100, %c0_101, %c0_102, %c0_103] : memref<2x4x16x16xf32, #tpu.memory_space<vmem>>, vector<1x1x16x16xf32>
        %140 = vector.shape_cast %139 : vector<1x1x16x16xf32> to vector<16x16xf32>
        %141 = vector.shape_cast %48 : vector<16x16xf32> to vector<1x1x16x16xf32>
        tpu.vector_store %arg4[%c0_100, %c0_101, %c0_102, %c0_103], %141 {strides = array<i32>} : memref<2x4x16x16xf32, #tpu.memory_space<vmem>>, vector<1x1x16x16xf32>,
      } else {
      }
      %c0_i32_29 = arith.constant 0 : i32
      %52 = arith.cmpi ne, %0, %c0_i32_29 : i32
      %53 = arith.extui %52 : i1 to i32
      %c0_i32_30 = arith.constant 0 : i32
      %54 = arith.cmpi ne, %53, %c0_i32_30 : i32
      scf.if %54 {
        %139 = tpu.transpose %48, [1, 0] : vector<16x16xf32> -> vector<16x16xf32>
        %c0_100 = arith.constant 0 : index
        %c0_101 = arith.constant 0 : index
        %c0_102 = arith.constant 0 : index
        %c0_103 = arith.constant 0 : index
        %140 = vector.load %arg4[%c0_100, %c0_101, %c0_102, %c0_103] : memref<2x4x16x16xf32, #tpu.memory_space<vmem>>, vector<1x1x16x16xf32>
        %141 = vector.shape_cast %140 : vector<1x1x16x16xf32> to vector<16x16xf32>
        %142 = vector.shape_cast %139 : vector<16x16xf32> to vector<1x1x16x16xf32>
        tpu.vector_store %arg4[%c0_100, %c0_101, %c0_102, %c0_103], %142 {strides = array<i32>} : memref<2x4x16x16xf32, #tpu.memory_space<vmem>>, vector<1x1x16x16xf32>,
      } else {
      }
      %c0_31 = arith.constant 0 : index
      %c1_32 = arith.constant 1 : index
      %c0_33 = arith.constant 0 : index
      %c0_34 = arith.constant 0 : index
      %55 = vector.load %arg2[%c0_31, %c1_32, %c0_33, %c0_34] : memref<2x4x16x16xf32, #tpu.memory_space<vmem>>, vector<1x1x16x16xf32>
      %56 = vector.shape_cast %55 : vector<1x1x16x16xf32> to vector<16x16xf32>
      %cst_35 = arith.constant 2.550000e+02 : f32
      %57 = vector.broadcast %cst_35 : f32 to vector<16x16xf32>
      %58 = arith.divf %56, %57 : vector<16x16xf32>
      %cst_36 = arith.constant 2.550000e+02 : f32
      %59 = vector.broadcast %cst_36 : f32 to vector<16x16xf32>
      %60 = arith.mulf %58, %59 : vector<16x16xf32>
      %c0_i32_37 = arith.constant 0 : i32
      %61 = arith.cmpi eq, %0, %c0_i32_37 : i32
      %62 = arith.extui %61 : i1 to i32
      %c0_i32_38 = arith.constant 0 : i32
      %63 = arith.cmpi ne, %62, %c0_i32_38 : i32
      scf.if %63 {
        %c0_100 = arith.constant 0 : index
        %c1_101 = arith.constant 1 : index
        %c0_102 = arith.constant 0 : index
        %c0_103 = arith.constant 0 : index
        %139 = vector.load %arg4[%c0_100, %c1_101, %c0_102, %c0_103] : memref<2x4x16x16xf32, #tpu.memory_space<vmem>>, vector<1x1x16x16xf32>
        %140 = vector.shape_cast %139 : vector<1x1x16x16xf32> to vector<16x16xf32>
        %141 = vector.shape_cast %60 : vector<16x16xf32> to vector<1x1x16x16xf32>
        tpu.vector_store %arg4[%c0_100, %c1_101, %c0_102, %c0_103], %141 {strides = array<i32>} : memref<2x4x16x16xf32, #tpu.memory_space<vmem>>, vector<1x1x16x16xf32>,
      } else {
      }
      %c0_i32_39 = arith.constant 0 : i32
      %64 = arith.cmpi ne, %0, %c0_i32_39 : i32
      %65 = arith.extui %64 : i1 to i32
      %c0_i32_40 = arith.constant 0 : i32
      %66 = arith.cmpi ne, %65, %c0_i32_40 : i32
      scf.if %66 {
        %139 = tpu.transpose %60, [1, 0] : vector<16x16xf32> -> vector<16x16xf32>
        %c0_100 = arith.constant 0 : index
        %c1_101 = arith.constant 1 : index
        %c0_102 = arith.constant 0 : index
        %c0_103 = arith.constant 0 : index
        %140 = vector.load %arg4[%c0_100, %c1_101, %c0_102, %c0_103] : memref<2x4x16x16xf32, #tpu.memory_space<vmem>>, vector<1x1x16x16xf32>
        %141 = vector.shape_cast %140 : vector<1x1x16x16xf32> to vector<16x16xf32>
        %142 = vector.shape_cast %139 : vector<16x16xf32> to vector<1x1x16x16xf32>
        tpu.vector_store %arg4[%c0_100, %c1_101, %c0_102, %c0_103], %142 {strides = array<i32>} : memref<2x4x16x16xf32, #tpu.memory_space<vmem>>, vector<1x1x16x16xf32>,
      } else {
      }
      %c0_41 = arith.constant 0 : index
      %c2_42 = arith.constant 2 : index
      %c0_43 = arith.constant 0 : index
      %c0_44 = arith.constant 0 : index
      %67 = vector.load %arg2[%c0_41, %c2_42, %c0_43, %c0_44] : memref<2x4x16x16xf32, #tpu.memory_space<vmem>>, vector<1x1x16x16xf32>
      %68 = vector.shape_cast %67 : vector<1x1x16x16xf32> to vector<16x16xf32>
      %cst_45 = arith.constant 2.550000e+02 : f32
      %69 = vector.broadcast %cst_45 : f32 to vector<16x16xf32>
      %70 = arith.divf %68, %69 : vector<16x16xf32>
      %cst_46 = arith.constant 2.550000e+02 : f32
      %71 = vector.broadcast %cst_46 : f32 to vector<16x16xf32>
      %72 = arith.mulf %70, %71 : vector<16x16xf32>
      %c0_i32_47 = arith.constant 0 : i32
      %73 = arith.cmpi eq, %0, %c0_i32_47 : i32
      %74 = arith.extui %73 : i1 to i32
      %c0_i32_48 = arith.constant 0 : i32
      %75 = arith.cmpi ne, %74, %c0_i32_48 : i32
      scf.if %75 {
        %c0_100 = arith.constant 0 : index
        %c2_101 = arith.constant 2 : index
        %c0_102 = arith.constant 0 : index
        %c0_103 = arith.constant 0 : index
        %139 = vector.load %arg4[%c0_100, %c2_101, %c0_102, %c0_103] : memref<2x4x16x16xf32, #tpu.memory_space<vmem>>, vector<1x1x16x16xf32>
        %140 = vector.shape_cast %139 : vector<1x1x16x16xf32> to vector<16x16xf32>
        %141 = vector.shape_cast %72 : vector<16x16xf32> to vector<1x1x16x16xf32>
        tpu.vector_store %arg4[%c0_100, %c2_101, %c0_102, %c0_103], %141 {strides = array<i32>} : memref<2x4x16x16xf32, #tpu.memory_space<vmem>>, vector<1x1x16x16xf32>,
      } else {
      }
      %c0_i32_49 = arith.constant 0 : i32
      %76 = arith.cmpi ne, %0, %c0_i32_49 : i32
      %77 = arith.extui %76 : i1 to i32
      %c0_i32_50 = arith.constant 0 : i32
      %78 = arith.cmpi ne, %77, %c0_i32_50 : i32
      scf.if %78 {
        %139 = tpu.transpose %72, [1, 0] : vector<16x16xf32> -> vector<16x16xf32>
        %c0_100 = arith.constant 0 : index
        %c2_101 = arith.constant 2 : index
        %c0_102 = arith.constant 0 : index
        %c0_103 = arith.constant 0 : index
        %140 = vector.load %arg4[%c0_100, %c2_101, %c0_102, %c0_103] : memref<2x4x16x16xf32, #tpu.memory_space<vmem>>, vector<1x1x16x16xf32>
        %141 = vector.shape_cast %140 : vector<1x1x16x16xf32> to vector<16x16xf32>
        %142 = vector.shape_cast %139 : vector<16x16xf32> to vector<1x1x16x16xf32>
        tpu.vector_store %arg4[%c0_100, %c2_101, %c0_102, %c0_103], %142 {strides = array<i32>} : memref<2x4x16x16xf32, #tpu.memory_space<vmem>>, vector<1x1x16x16xf32>,
      } else {
      }
      %c0_51 = arith.constant 0 : index
      %c3 = arith.constant 3 : index
      %c0_52 = arith.constant 0 : index
      %c0_53 = arith.constant 0 : index
      %79 = vector.load %arg2[%c0_51, %c3, %c0_52, %c0_53] : memref<2x4x16x16xf32, #tpu.memory_space<vmem>>, vector<1x1x16x16xf32>
      %80 = vector.shape_cast %79 : vector<1x1x16x16xf32> to vector<16x16xf32>
      %cst_54 = arith.constant 2.550000e+02 : f32
      %81 = vector.broadcast %cst_54 : f32 to vector<16x16xf32>
      %82 = arith.divf %80, %81 : vector<16x16xf32>
      %cst_55 = arith.constant 2.550000e+02 : f32
      %83 = vector.broadcast %cst_55 : f32 to vector<16x16xf32>
      %84 = arith.mulf %82, %83 : vector<16x16xf32>
      %c0_i32_56 = arith.constant 0 : i32
      %85 = arith.cmpi eq, %0, %c0_i32_56 : i32
      %86 = arith.extui %85 : i1 to i32
      %c0_i32_57 = arith.constant 0 : i32
      %87 = arith.cmpi ne, %86, %c0_i32_57 : i32
      scf.if %87 {
        %c0_100 = arith.constant 0 : index
        %c3_101 = arith.constant 3 : index
        %c0_102 = arith.constant 0 : index
        %c0_103 = arith.constant 0 : index
        %139 = vector.load %arg4[%c0_100, %c3_101, %c0_102, %c0_103] : memref<2x4x16x16xf32, #tpu.memory_space<vmem>>, vector<1x1x16x16xf32>
        %140 = vector.shape_cast %139 : vector<1x1x16x16xf32> to vector<16x16xf32>
        %141 = vector.shape_cast %84 : vector<16x16xf32> to vector<1x1x16x16xf32>
        tpu.vector_store %arg4[%c0_100, %c3_101, %c0_102, %c0_103], %141 {strides = array<i32>} : memref<2x4x16x16xf32, #tpu.memory_space<vmem>>, vector<1x1x16x16xf32>,
      } else {
      }
      %c0_i32_58 = arith.constant 0 : i32
      %88 = arith.cmpi ne, %0, %c0_i32_58 : i32
      %89 = arith.extui %88 : i1 to i32
      %c0_i32_59 = arith.constant 0 : i32
      %90 = arith.cmpi ne, %89, %c0_i32_59 : i32
      scf.if %90 {
        %139 = tpu.transpose %84, [1, 0] : vector<16x16xf32> -> vector<16x16xf32>
        %c0_100 = arith.constant 0 : index
        %c3_101 = arith.constant 3 : index
        %c0_102 = arith.constant 0 : index
        %c0_103 = arith.constant 0 : index
        %140 = vector.load %arg4[%c0_100, %c3_101, %c0_102, %c0_103] : memref<2x4x16x16xf32, #tpu.memory_space<vmem>>, vector<1x1x16x16xf32>
        %141 = vector.shape_cast %140 : vector<1x1x16x16xf32> to vector<16x16xf32>
        %142 = vector.shape_cast %139 : vector<16x16xf32> to vector<1x1x16x16xf32>
        tpu.vector_store %arg4[%c0_100, %c3_101, %c0_102, %c0_103], %142 {strides = array<i32>} : memref<2x4x16x16xf32, #tpu.memory_space<vmem>>, vector<1x1x16x16xf32>,
      } else {
      }
      %c1_60 = arith.constant 1 : index
      %c0_61 = arith.constant 0 : index
      %c0_62 = arith.constant 0 : index
      %c0_63 = arith.constant 0 : index
      %91 = vector.load %arg2[%c1_60, %c0_61, %c0_62, %c0_63] : memref<2x4x16x16xf32, #tpu.memory_space<vmem>>, vector<1x1x16x16xf32>
      %92 = vector.shape_cast %91 : vector<1x1x16x16xf32> to vector<16x16xf32>
      %cst_64 = arith.constant 2.550000e+02 : f32
      %93 = vector.broadcast %cst_64 : f32 to vector<16x16xf32>
      %94 = arith.divf %92, %93 : vector<16x16xf32>
      %cst_65 = arith.constant 2.550000e+02 : f32
      %95 = vector.broadcast %cst_65 : f32 to vector<16x16xf32>
      %96 = arith.mulf %94, %95 : vector<16x16xf32>
      %c0_i32_66 = arith.constant 0 : i32
      %97 = arith.cmpi eq, %0, %c0_i32_66 : i32
      %98 = arith.extui %97 : i1 to i32
      %c0_i32_67 = arith.constant 0 : i32
      %99 = arith.cmpi ne, %98, %c0_i32_67 : i32
      scf.if %99 {
        %c1_100 = arith.constant 1 : index
        %c0_101 = arith.constant 0 : index
        %c0_102 = arith.constant 0 : index
        %c0_103 = arith.constant 0 : index
        %139 = vector.load %arg4[%c1_100, %c0_101, %c0_102, %c0_103] : memref<2x4x16x16xf32, #tpu.memory_space<vmem>>, vector<1x1x16x16xf32>
        %140 = vector.shape_cast %139 : vector<1x1x16x16xf32> to vector<16x16xf32>
        %141 = vector.shape_cast %96 : vector<16x16xf32> to vector<1x1x16x16xf32>
        tpu.vector_store %arg4[%c1_100, %c0_101, %c0_102, %c0_103], %141 {strides = array<i32>} : memref<2x4x16x16xf32, #tpu.memory_space<vmem>>, vector<1x1x16x16xf32>,
      } else {
      }
      %c0_i32_68 = arith.constant 0 : i32
      %100 = arith.cmpi ne, %0, %c0_i32_68 : i32
      %101 = arith.extui %100 : i1 to i32
      %c0_i32_69 = arith.constant 0 : i32
      %102 = arith.cmpi ne, %101, %c0_i32_69 : i32
      scf.if %102 {
        %139 = tpu.transpose %96, [1, 0] : vector<16x16xf32> -> vector<16x16xf32>
        %c1_100 = arith.constant 1 : index
        %c0_101 = arith.constant 0 : index
        %c0_102 = arith.constant 0 : index
        %c0_103 = arith.constant 0 : index
        %140 = vector.load %arg4[%c1_100, %c0_101, %c0_102, %c0_103] : memref<2x4x16x16xf32, #tpu.memory_space<vmem>>, vector<1x1x16x16xf32>
        %141 = vector.shape_cast %140 : vector<1x1x16x16xf32> to vector<16x16xf32>
        %142 = vector.shape_cast %139 : vector<16x16xf32> to vector<1x1x16x16xf32>
        tpu.vector_store %arg4[%c1_100, %c0_101, %c0_102, %c0_103], %142 {strides = array<i32>} : memref<2x4x16x16xf32, #tpu.memory_space<vmem>>, vector<1x1x16x16xf32>,
      } else {
      }
      %c1_70 = arith.constant 1 : index
      %c1_71 = arith.constant 1 : index
      %c0_72 = arith.constant 0 : index
      %c0_73 = arith.constant 0 : index
      %103 = vector.load %arg2[%c1_70, %c1_71, %c0_72, %c0_73] : memref<2x4x16x16xf32, #tpu.memory_space<vmem>>, vector<1x1x16x16xf32>
      %104 = vector.shape_cast %103 : vector<1x1x16x16xf32> to vector<16x16xf32>
      %cst_74 = arith.constant 2.550000e+02 : f32
      %105 = vector.broadcast %cst_74 : f32 to vector<16x16xf32>
      %106 = arith.divf %104, %105 : vector<16x16xf32>
      %cst_75 = arith.constant 2.550000e+02 : f32
      %107 = vector.broadcast %cst_75 : f32 to vector<16x16xf32>
      %108 = arith.mulf %106, %107 : vector<16x16xf32>
      %c0_i32_76 = arith.constant 0 : i32
      %109 = arith.cmpi eq, %0, %c0_i32_76 : i32
      %110 = arith.extui %109 : i1 to i32
      %c0_i32_77 = arith.constant 0 : i32
      %111 = arith.cmpi ne, %110, %c0_i32_77 : i32
      scf.if %111 {
        %c1_100 = arith.constant 1 : index
        %c1_101 = arith.constant 1 : index
        %c0_102 = arith.constant 0 : index
        %c0_103 = arith.constant 0 : index
        %139 = vector.load %arg4[%c1_100, %c1_101, %c0_102, %c0_103] : memref<2x4x16x16xf32, #tpu.memory_space<vmem>>, vector<1x1x16x16xf32>
        %140 = vector.shape_cast %139 : vector<1x1x16x16xf32> to vector<16x16xf32>
        %141 = vector.shape_cast %108 : vector<16x16xf32> to vector<1x1x16x16xf32>
        tpu.vector_store %arg4[%c1_100, %c1_101, %c0_102, %c0_103], %141 {strides = array<i32>} : memref<2x4x16x16xf32, #tpu.memory_space<vmem>>, vector<1x1x16x16xf32>,
      } else {
      }
      %c0_i32_78 = arith.constant 0 : i32
      %112 = arith.cmpi ne, %0, %c0_i32_78 : i32
      %113 = arith.extui %112 : i1 to i32
      %c0_i32_79 = arith.constant 0 : i32
      %114 = arith.cmpi ne, %113, %c0_i32_79 : i32
      scf.if %114 {
        %139 = tpu.transpose %108, [1, 0] : vector<16x16xf32> -> vector<16x16xf32>
        %c1_100 = arith.constant 1 : index
        %c1_101 = arith.constant 1 : index
        %c0_102 = arith.constant 0 : index
        %c0_103 = arith.constant 0 : index
        %140 = vector.load %arg4[%c1_100, %c1_101, %c0_102, %c0_103] : memref<2x4x16x16xf32, #tpu.memory_space<vmem>>, vector<1x1x16x16xf32>
        %141 = vector.shape_cast %140 : vector<1x1x16x16xf32> to vector<16x16xf32>
        %142 = vector.shape_cast %139 : vector<16x16xf32> to vector<1x1x16x16xf32>
        tpu.vector_store %arg4[%c1_100, %c1_101, %c0_102, %c0_103], %142 {strides = array<i32>} : memref<2x4x16x16xf32, #tpu.memory_space<vmem>>, vector<1x1x16x16xf32>,
      } else {
      }
      %c1_80 = arith.constant 1 : index
      %c2_81 = arith.constant 2 : index
      %c0_82 = arith.constant 0 : index
      %c0_83 = arith.constant 0 : index
      %115 = vector.load %arg2[%c1_80, %c2_81, %c0_82, %c0_83] : memref<2x4x16x16xf32, #tpu.memory_space<vmem>>, vector<1x1x16x16xf32>
      %116 = vector.shape_cast %115 : vector<1x1x16x16xf32> to vector<16x16xf32>
      %cst_84 = arith.constant 2.550000e+02 : f32
      %117 = vector.broadcast %cst_84 : f32 to vector<16x16xf32>
      %118 = arith.divf %116, %117 : vector<16x16xf32>
      %cst_85 = arith.constant 2.550000e+02 : f32
      %119 = vector.broadcast %cst_85 : f32 to vector<16x16xf32>
      %120 = arith.mulf %118, %119 : vector<16x16xf32>
      %c0_i32_86 = arith.constant 0 : i32
      %121 = arith.cmpi eq, %0, %c0_i32_86 : i32
      %122 = arith.extui %121 : i1 to i32
      %c0_i32_87 = arith.constant 0 : i32
      %123 = arith.cmpi ne, %122, %c0_i32_87 : i32
      scf.if %123 {
        %c1_100 = arith.constant 1 : index
        %c2_101 = arith.constant 2 : index
        %c0_102 = arith.constant 0 : index
        %c0_103 = arith.constant 0 : index
        %139 = vector.load %arg4[%c1_100, %c2_101, %c0_102, %c0_103] : memref<2x4x16x16xf32, #tpu.memory_space<vmem>>, vector<1x1x16x16xf32>
        %140 = vector.shape_cast %139 : vector<1x1x16x16xf32> to vector<16x16xf32>
        %141 = vector.shape_cast %120 : vector<16x16xf32> to vector<1x1x16x16xf32>
        tpu.vector_store %arg4[%c1_100, %c2_101, %c0_102, %c0_103], %141 {strides = array<i32>} : memref<2x4x16x16xf32, #tpu.memory_space<vmem>>, vector<1x1x16x16xf32>,
      } else {
      }
      %c0_i32_88 = arith.constant 0 : i32
      %124 = arith.cmpi ne, %0, %c0_i32_88 : i32
      %125 = arith.extui %124 : i1 to i32
      %c0_i32_89 = arith.constant 0 : i32
      %126 = arith.cmpi ne, %125, %c0_i32_89 : i32
      scf.if %126 {
        %139 = tpu.transpose %120, [1, 0] : vector<16x16xf32> -> vector<16x16xf32>
        %c1_100 = arith.constant 1 : index
        %c2_101 = arith.constant 2 : index
        %c0_102 = arith.constant 0 : index
        %c0_103 = arith.constant 0 : index
        %140 = vector.load %arg4[%c1_100, %c2_101, %c0_102, %c0_103] : memref<2x4x16x16xf32, #tpu.memory_space<vmem>>, vector<1x1x16x16xf32>
        %141 = vector.shape_cast %140 : vector<1x1x16x16xf32> to vector<16x16xf32>
        %142 = vector.shape_cast %139 : vector<16x16xf32> to vector<1x1x16x16xf32>
        tpu.vector_store %arg4[%c1_100, %c2_101, %c0_102, %c0_103], %142 {strides = array<i32>} : memref<2x4x16x16xf32, #tpu.memory_space<vmem>>, vector<1x1x16x16xf32>,
      } else {
      }
      %c1_90 = arith.constant 1 : index
      %c3_91 = arith.constant 3 : index
      %c0_92 = arith.constant 0 : index
      %c0_93 = arith.constant 0 : index
      %127 = vector.load %arg2[%c1_90, %c3_91, %c0_92, %c0_93] : memref<2x4x16x16xf32, #tpu.memory_space<vmem>>, vector<1x1x16x16xf32>
      %128 = vector.shape_cast %127 : vector<1x1x16x16xf32> to vector<16x16xf32>
      %cst_94 = arith.constant 2.550000e+02 : f32
      %129 = vector.broadcast %cst_94 : f32 to vector<16x16xf32>
      %130 = arith.divf %128, %129 : vector<16x16xf32>
      %cst_95 = arith.constant 2.550000e+02 : f32
      %131 = vector.broadcast %cst_95 : f32 to vector<16x16xf32>
      %132 = arith.mulf %130, %131 : vector<16x16xf32>
      %c0_i32_96 = arith.constant 0 : i32
      %133 = arith.cmpi eq, %0, %c0_i32_96 : i32
      %134 = arith.extui %133 : i1 to i32
      %c0_i32_97 = arith.constant 0 : i32
      %135 = arith.cmpi ne, %134, %c0_i32_97 : i32
      scf.if %135 {
        %c1_100 = arith.constant 1 : index
        %c3_101 = arith.constant 3 : index
        %c0_102 = arith.constant 0 : index
        %c0_103 = arith.constant 0 : index
        %139 = vector.load %arg4[%c1_100, %c3_101, %c0_102, %c0_103] : memref<2x4x16x16xf32, #tpu.memory_space<vmem>>, vector<1x1x16x16xf32>
        %140 = vector.shape_cast %139 : vector<1x1x16x16xf32> to vector<16x16xf32>
        %141 = vector.shape_cast %132 : vector<16x16xf32> to vector<1x1x16x16xf32>
        tpu.vector_store %arg4[%c1_100, %c3_101, %c0_102, %c0_103], %141 {strides = array<i32>} : memref<2x4x16x16xf32, #tpu.memory_space<vmem>>, vector<1x1x16x16xf32>,
      } else {
      }
      %c0_i32_98 = arith.constant 0 : i32
      %136 = arith.cmpi ne, %0, %c0_i32_98 : i32
      %137 = arith.extui %136 : i1 to i32
      %c0_i32_99 = arith.constant 0 : i32
      %138 = arith.cmpi ne, %137, %c0_i32_99 : i32
      scf.if %138 {
        %139 = tpu.transpose %132, [1, 0] : vector<16x16xf32> -> vector<16x16xf32>
        %c1_100 = arith.constant 1 : index
        %c3_101 = arith.constant 3 : index
        %c0_102 = arith.constant 0 : index
        %c0_103 = arith.constant 0 : index
        %140 = vector.load %arg4[%c1_100, %c3_101, %c0_102, %c0_103] : memref<2x4x16x16xf32, #tpu.memory_space<vmem>>, vector<1x1x16x16xf32>
        %141 = vector.shape_cast %140 : vector<1x1x16x16xf32> to vector<16x16xf32>
        %142 = vector.shape_cast %139 : vector<16x16xf32> to vector<1x1x16x16xf32>
        tpu.vector_store %arg4[%c1_100, %c3_101, %c0_102, %c0_103], %142 {strides = array<i32>} : memref<2x4x16x16xf32, #tpu.memory_space<vmem>>, vector<1x1x16x16xf32>,
      } else {
      }
    } else {
    }
    %c0_i32_2 = arith.constant 0 : i32
    %8 = arith.cmpi eq, %1, %c0_i32_2 : i32
    %c1_i32 = arith.constant 1 : i32
    %9 = arith.cmpi eq, %2, %c1_i32 : i32
    %10 = arith.andi %8, %9 : i1
    %11 = arith.extui %10 : i1 to i32
    %c0_i32_3 = arith.constant 0 : i32
    %12 = arith.cmpi ne, %11, %c0_i32_3 : i32
    scf.if %12 {
      %43 = tpu.iota {dimensions = array<i32: 0>} : vector<16x16xi32>
      %44 = tpu.iota {dimensions = array<i32: 1>} : vector<16x16xi32>
      %45 = arith.addi %43, %44 : vector<16x16xi32>
      %c15_i32 = arith.constant 15 : i32
      %46 = vector.broadcast %c15_i32 : i32 to vector<16x16xi32>
      %47 = arith.cmpi eq, %45, %46 : vector<16x16xi32>
      %48 = arith.extui %47 : vector<16x16xi1> to vector<16x16xi32>
      %49 = arith.sitofp %48 : vector<16x16xi32> to vector<16x16xf32>
      %c0_22 = arith.constant 0 : index
      %c0_23 = arith.constant 0 : index
      %c0_24 = arith.constant 0 : index
      %c0_25 = arith.constant 0 : index
      %50 = vector.load %arg2[%c0_22, %c0_23, %c0_24, %c0_25] : memref<2x4x16x16xf32, #tpu.memory_space<vmem>>, vector<1x1x16x16xf32>
      %51 = vector.shape_cast %50 : vector<1x1x16x16xf32> to vector<16x16xf32>
      %cst = arith.constant dense<0.000000e+00> : vector<16x16xf32>
      %52 = tpu.matmul %51, %49, %cst {dimension_numbers = #tpu.dot_dimension_numbers<[1], [0], [0], [1], [0, 0, 1, 1], [], []>} : vector<16x16xf32>, vector<16x16xf32>, vector<16x16xf32> -> vector<16x16xf32>
      %cst_26 = arith.constant 2.550000e+02 : f32
      %53 = vector.broadcast %cst_26 : f32 to vector<16x16xf32>
      %54 = arith.divf %52, %53 : vector<16x16xf32>
      %cst_27 = arith.constant 2.550000e+02 : f32
      %55 = vector.broadcast %cst_27 : f32 to vector<16x16xf32>
      %56 = arith.mulf %54, %55 : vector<16x16xf32>
      %c0_i32_28 = arith.constant 0 : i32
      %57 = arith.cmpi eq, %0, %c0_i32_28 : i32
      %58 = arith.extui %57 : i1 to i32
      %c0_i32_29 = arith.constant 0 : i32
      %59 = arith.cmpi ne, %58, %c0_i32_29 : i32
      scf.if %59 {
        %c0_108 = arith.constant 0 : index
        %c0_109 = arith.constant 0 : index
        %c0_110 = arith.constant 0 : index
        %c0_111 = arith.constant 0 : index
        %154 = vector.load %arg4[%c0_108, %c0_109, %c0_110, %c0_111] : memref<2x4x16x16xf32, #tpu.memory_space<vmem>>, vector<1x1x16x16xf32>
        %155 = vector.shape_cast %154 : vector<1x1x16x16xf32> to vector<16x16xf32>
        %156 = vector.shape_cast %56 : vector<16x16xf32> to vector<1x1x16x16xf32>
        tpu.vector_store %arg4[%c0_108, %c0_109, %c0_110, %c0_111], %156 {strides = array<i32>} : memref<2x4x16x16xf32, #tpu.memory_space<vmem>>, vector<1x1x16x16xf32>,
      } else {
      }
      %c0_i32_30 = arith.constant 0 : i32
      %60 = arith.cmpi ne, %0, %c0_i32_30 : i32
      %61 = arith.extui %60 : i1 to i32
      %c0_i32_31 = arith.constant 0 : i32
      %62 = arith.cmpi ne, %61, %c0_i32_31 : i32
      scf.if %62 {
        %154 = tpu.transpose %56, [1, 0] : vector<16x16xf32> -> vector<16x16xf32>
        %c0_108 = arith.constant 0 : index
        %c0_109 = arith.constant 0 : index
        %c0_110 = arith.constant 0 : index
        %c0_111 = arith.constant 0 : index
        %155 = vector.load %arg4[%c0_108, %c0_109, %c0_110, %c0_111] : memref<2x4x16x16xf32, #tpu.memory_space<vmem>>, vector<1x1x16x16xf32>
        %156 = vector.shape_cast %155 : vector<1x1x16x16xf32> to vector<16x16xf32>
        %157 = vector.shape_cast %154 : vector<16x16xf32> to vector<1x1x16x16xf32>
        tpu.vector_store %arg4[%c0_108, %c0_109, %c0_110, %c0_111], %157 {strides = array<i32>} : memref<2x4x16x16xf32, #tpu.memory_space<vmem>>, vector<1x1x16x16xf32>,
      } else {
      }
      %c0_32 = arith.constant 0 : index
      %c1_33 = arith.constant 1 : index
      %c0_34 = arith.constant 0 : index
      %c0_35 = arith.constant 0 : index
      %63 = vector.load %arg2[%c0_32, %c1_33, %c0_34, %c0_35] : memref<2x4x16x16xf32, #tpu.memory_space<vmem>>, vector<1x1x16x16xf32>
      %64 = vector.shape_cast %63 : vector<1x1x16x16xf32> to vector<16x16xf32>
      %cst_36 = arith.constant dense<0.000000e+00> : vector<16x16xf32>
      %65 = tpu.matmul %64, %49, %cst_36 {dimension_numbers = #tpu.dot_dimension_numbers<[1], [0], [0], [1], [0, 0, 1, 1], [], []>} : vector<16x16xf32>, vector<16x16xf32>, vector<16x16xf32> -> vector<16x16xf32>
      %cst_37 = arith.constant 2.550000e+02 : f32
      %66 = vector.broadcast %cst_37 : f32 to vector<16x16xf32>
      %67 = arith.divf %65, %66 : vector<16x16xf32>
      %cst_38 = arith.constant 2.550000e+02 : f32
      %68 = vector.broadcast %cst_38 : f32 to vector<16x16xf32>
      %69 = arith.mulf %67, %68 : vector<16x16xf32>
      %c0_i32_39 = arith.constant 0 : i32
      %70 = arith.cmpi eq, %0, %c0_i32_39 : i32
      %71 = arith.extui %70 : i1 to i32
      %c0_i32_40 = arith.constant 0 : i32
      %72 = arith.cmpi ne, %71, %c0_i32_40 : i32
      scf.if %72 {
        %c0_108 = arith.constant 0 : index
        %c1_109 = arith.constant 1 : index
        %c0_110 = arith.constant 0 : index
        %c0_111 = arith.constant 0 : index
        %154 = vector.load %arg4[%c0_108, %c1_109, %c0_110, %c0_111] : memref<2x4x16x16xf32, #tpu.memory_space<vmem>>, vector<1x1x16x16xf32>
        %155 = vector.shape_cast %154 : vector<1x1x16x16xf32> to vector<16x16xf32>
        %156 = vector.shape_cast %69 : vector<16x16xf32> to vector<1x1x16x16xf32>
        tpu.vector_store %arg4[%c0_108, %c1_109, %c0_110, %c0_111], %156 {strides = array<i32>} : memref<2x4x16x16xf32, #tpu.memory_space<vmem>>, vector<1x1x16x16xf32>,
      } else {
      }
      %c0_i32_41 = arith.constant 0 : i32
      %73 = arith.cmpi ne, %0, %c0_i32_41 : i32
      %74 = arith.extui %73 : i1 to i32
      %c0_i32_42 = arith.constant 0 : i32
      %75 = arith.cmpi ne, %74, %c0_i32_42 : i32
      scf.if %75 {
        %154 = tpu.transpose %69, [1, 0] : vector<16x16xf32> -> vector<16x16xf32>
        %c0_108 = arith.constant 0 : index
        %c1_109 = arith.constant 1 : index
        %c0_110 = arith.constant 0 : index
        %c0_111 = arith.constant 0 : index
        %155 = vector.load %arg4[%c0_108, %c1_109, %c0_110, %c0_111] : memref<2x4x16x16xf32, #tpu.memory_space<vmem>>, vector<1x1x16x16xf32>
        %156 = vector.shape_cast %155 : vector<1x1x16x16xf32> to vector<16x16xf32>
        %157 = vector.shape_cast %154 : vector<16x16xf32> to vector<1x1x16x16xf32>
        tpu.vector_store %arg4[%c0_108, %c1_109, %c0_110, %c0_111], %157 {strides = array<i32>} : memref<2x4x16x16xf32, #tpu.memory_space<vmem>>, vector<1x1x16x16xf32>,
      } else {
      }
      %c0_43 = arith.constant 0 : index
      %c2_44 = arith.constant 2 : index
      %c0_45 = arith.constant 0 : index
      %c0_46 = arith.constant 0 : index
      %76 = vector.load %arg2[%c0_43, %c2_44, %c0_45, %c0_46] : memref<2x4x16x16xf32, #tpu.memory_space<vmem>>, vector<1x1x16x16xf32>
      %77 = vector.shape_cast %76 : vector<1x1x16x16xf32> to vector<16x16xf32>
      %cst_47 = arith.constant dense<0.000000e+00> : vector<16x16xf32>
      %78 = tpu.matmul %77, %49, %cst_47 {dimension_numbers = #tpu.dot_dimension_numbers<[1], [0], [0], [1], [0, 0, 1, 1], [], []>} : vector<16x16xf32>, vector<16x16xf32>, vector<16x16xf32> -> vector<16x16xf32>
      %cst_48 = arith.constant 2.550000e+02 : f32
      %79 = vector.broadcast %cst_48 : f32 to vector<16x16xf32>
      %80 = arith.divf %78, %79 : vector<16x16xf32>
      %cst_49 = arith.constant 2.550000e+02 : f32
      %81 = vector.broadcast %cst_49 : f32 to vector<16x16xf32>
      %82 = arith.mulf %80, %81 : vector<16x16xf32>
      %c0_i32_50 = arith.constant 0 : i32
      %83 = arith.cmpi eq, %0, %c0_i32_50 : i32
      %84 = arith.extui %83 : i1 to i32
      %c0_i32_51 = arith.constant 0 : i32
      %85 = arith.cmpi ne, %84, %c0_i32_51 : i32
      scf.if %85 {
        %c0_108 = arith.constant 0 : index
        %c2_109 = arith.constant 2 : index
        %c0_110 = arith.constant 0 : index
        %c0_111 = arith.constant 0 : index
        %154 = vector.load %arg4[%c0_108, %c2_109, %c0_110, %c0_111] : memref<2x4x16x16xf32, #tpu.memory_space<vmem>>, vector<1x1x16x16xf32>
        %155 = vector.shape_cast %154 : vector<1x1x16x16xf32> to vector<16x16xf32>
        %156 = vector.shape_cast %82 : vector<16x16xf32> to vector<1x1x16x16xf32>
        tpu.vector_store %arg4[%c0_108, %c2_109, %c0_110, %c0_111], %156 {strides = array<i32>} : memref<2x4x16x16xf32, #tpu.memory_space<vmem>>, vector<1x1x16x16xf32>,
      } else {
      }
      %c0_i32_52 = arith.constant 0 : i32
      %86 = arith.cmpi ne, %0, %c0_i32_52 : i32
      %87 = arith.extui %86 : i1 to i32
      %c0_i32_53 = arith.constant 0 : i32
      %88 = arith.cmpi ne, %87, %c0_i32_53 : i32
      scf.if %88 {
        %154 = tpu.transpose %82, [1, 0] : vector<16x16xf32> -> vector<16x16xf32>
        %c0_108 = arith.constant 0 : index
        %c2_109 = arith.constant 2 : index
        %c0_110 = arith.constant 0 : index
        %c0_111 = arith.constant 0 : index
        %155 = vector.load %arg4[%c0_108, %c2_109, %c0_110, %c0_111] : memref<2x4x16x16xf32, #tpu.memory_space<vmem>>, vector<1x1x16x16xf32>
        %156 = vector.shape_cast %155 : vector<1x1x16x16xf32> to vector<16x16xf32>
        %157 = vector.shape_cast %154 : vector<16x16xf32> to vector<1x1x16x16xf32>
        tpu.vector_store %arg4[%c0_108, %c2_109, %c0_110, %c0_111], %157 {strides = array<i32>} : memref<2x4x16x16xf32, #tpu.memory_space<vmem>>, vector<1x1x16x16xf32>,
      } else {
      }
      %c0_54 = arith.constant 0 : index
      %c3 = arith.constant 3 : index
      %c0_55 = arith.constant 0 : index
      %c0_56 = arith.constant 0 : index
      %89 = vector.load %arg2[%c0_54, %c3, %c0_55, %c0_56] : memref<2x4x16x16xf32, #tpu.memory_space<vmem>>, vector<1x1x16x16xf32>
      %90 = vector.shape_cast %89 : vector<1x1x16x16xf32> to vector<16x16xf32>
      %cst_57 = arith.constant dense<0.000000e+00> : vector<16x16xf32>
      %91 = tpu.matmul %90, %49, %cst_57 {dimension_numbers = #tpu.dot_dimension_numbers<[1], [0], [0], [1], [0, 0, 1, 1], [], []>} : vector<16x16xf32>, vector<16x16xf32>, vector<16x16xf32> -> vector<16x16xf32>
      %cst_58 = arith.constant 2.550000e+02 : f32
      %92 = vector.broadcast %cst_58 : f32 to vector<16x16xf32>
      %93 = arith.divf %91, %92 : vector<16x16xf32>
      %cst_59 = arith.constant 2.550000e+02 : f32
      %94 = vector.broadcast %cst_59 : f32 to vector<16x16xf32>
      %95 = arith.mulf %93, %94 : vector<16x16xf32>
      %c0_i32_60 = arith.constant 0 : i32
      %96 = arith.cmpi eq, %0, %c0_i32_60 : i32
      %97 = arith.extui %96 : i1 to i32
      %c0_i32_61 = arith.constant 0 : i32
      %98 = arith.cmpi ne, %97, %c0_i32_61 : i32
      scf.if %98 {
        %c0_108 = arith.constant 0 : index
        %c3_109 = arith.constant 3 : index
        %c0_110 = arith.constant 0 : index
        %c0_111 = arith.constant 0 : index
        %154 = vector.load %arg4[%c0_108, %c3_109, %c0_110, %c0_111] : memref<2x4x16x16xf32, #tpu.memory_space<vmem>>, vector<1x1x16x16xf32>
        %155 = vector.shape_cast %154 : vector<1x1x16x16xf32> to vector<16x16xf32>
        %156 = vector.shape_cast %95 : vector<16x16xf32> to vector<1x1x16x16xf32>
        tpu.vector_store %arg4[%c0_108, %c3_109, %c0_110, %c0_111], %156 {strides = array<i32>} : memref<2x4x16x16xf32, #tpu.memory_space<vmem>>, vector<1x1x16x16xf32>,
      } else {
      }
      %c0_i32_62 = arith.constant 0 : i32
      %99 = arith.cmpi ne, %0, %c0_i32_62 : i32
      %100 = arith.extui %99 : i1 to i32
      %c0_i32_63 = arith.constant 0 : i32
      %101 = arith.cmpi ne, %100, %c0_i32_63 : i32
      scf.if %101 {
        %154 = tpu.transpose %95, [1, 0] : vector<16x16xf32> -> vector<16x16xf32>
        %c0_108 = arith.constant 0 : index
        %c3_109 = arith.constant 3 : index
        %c0_110 = arith.constant 0 : index
        %c0_111 = arith.constant 0 : index
        %155 = vector.load %arg4[%c0_108, %c3_109, %c0_110, %c0_111] : memref<2x4x16x16xf32, #tpu.memory_space<vmem>>, vector<1x1x16x16xf32>
        %156 = vector.shape_cast %155 : vector<1x1x16x16xf32> to vector<16x16xf32>
        %157 = vector.shape_cast %154 : vector<16x16xf32> to vector<1x1x16x16xf32>
        tpu.vector_store %arg4[%c0_108, %c3_109, %c0_110, %c0_111], %157 {strides = array<i32>} : memref<2x4x16x16xf32, #tpu.memory_space<vmem>>, vector<1x1x16x16xf32>,
      } else {
      }
      %c1_64 = arith.constant 1 : index
      %c0_65 = arith.constant 0 : index
      %c0_66 = arith.constant 0 : index
      %c0_67 = arith.constant 0 : index
      %102 = vector.load %arg2[%c1_64, %c0_65, %c0_66, %c0_67] : memref<2x4x16x16xf32, #tpu.memory_space<vmem>>, vector<1x1x16x16xf32>
      %103 = vector.shape_cast %102 : vector<1x1x16x16xf32> to vector<16x16xf32>
      %cst_68 = arith.constant dense<0.000000e+00> : vector<16x16xf32>
      %104 = tpu.matmul %103, %49, %cst_68 {dimension_numbers = #tpu.dot_dimension_numbers<[1], [0], [0], [1], [0, 0, 1, 1], [], []>} : vector<16x16xf32>, vector<16x16xf32>, vector<16x16xf32> -> vector<16x16xf32>
      %cst_69 = arith.constant 2.550000e+02 : f32
      %105 = vector.broadcast %cst_69 : f32 to vector<16x16xf32>
      %106 = arith.divf %104, %105 : vector<16x16xf32>
      %cst_70 = arith.constant 2.550000e+02 : f32
      %107 = vector.broadcast %cst_70 : f32 to vector<16x16xf32>
      %108 = arith.mulf %106, %107 : vector<16x16xf32>
      %c0_i32_71 = arith.constant 0 : i32
      %109 = arith.cmpi eq, %0, %c0_i32_71 : i32
      %110 = arith.extui %109 : i1 to i32
      %c0_i32_72 = arith.constant 0 : i32
      %111 = arith.cmpi ne, %110, %c0_i32_72 : i32
      scf.if %111 {
        %c1_108 = arith.constant 1 : index
        %c0_109 = arith.constant 0 : index
        %c0_110 = arith.constant 0 : index
        %c0_111 = arith.constant 0 : index
        %154 = vector.load %arg4[%c1_108, %c0_109, %c0_110, %c0_111] : memref<2x4x16x16xf32, #tpu.memory_space<vmem>>, vector<1x1x16x16xf32>
        %155 = vector.shape_cast %154 : vector<1x1x16x16xf32> to vector<16x16xf32>
        %156 = vector.shape_cast %108 : vector<16x16xf32> to vector<1x1x16x16xf32>
        tpu.vector_store %arg4[%c1_108, %c0_109, %c0_110, %c0_111], %156 {strides = array<i32>} : memref<2x4x16x16xf32, #tpu.memory_space<vmem>>, vector<1x1x16x16xf32>,
      } else {
      }
      %c0_i32_73 = arith.constant 0 : i32
      %112 = arith.cmpi ne, %0, %c0_i32_73 : i32
      %113 = arith.extui %112 : i1 to i32
      %c0_i32_74 = arith.constant 0 : i32
      %114 = arith.cmpi ne, %113, %c0_i32_74 : i32
      scf.if %114 {
        %154 = tpu.transpose %108, [1, 0] : vector<16x16xf32> -> vector<16x16xf32>
        %c1_108 = arith.constant 1 : index
        %c0_109 = arith.constant 0 : index
        %c0_110 = arith.constant 0 : index
        %c0_111 = arith.constant 0 : index
        %155 = vector.load %arg4[%c1_108, %c0_109, %c0_110, %c0_111] : memref<2x4x16x16xf32, #tpu.memory_space<vmem>>, vector<1x1x16x16xf32>
        %156 = vector.shape_cast %155 : vector<1x1x16x16xf32> to vector<16x16xf32>
        %157 = vector.shape_cast %154 : vector<16x16xf32> to vector<1x1x16x16xf32>
        tpu.vector_store %arg4[%c1_108, %c0_109, %c0_110, %c0_111], %157 {strides = array<i32>} : memref<2x4x16x16xf32, #tpu.memory_space<vmem>>, vector<1x1x16x16xf32>,
      } else {
      }
      %c1_75 = arith.constant 1 : index
      %c1_76 = arith.constant 1 : index
      %c0_77 = arith.constant 0 : index
      %c0_78 = arith.constant 0 : index
      %115 = vector.load %arg2[%c1_75, %c1_76, %c0_77, %c0_78] : memref<2x4x16x16xf32, #tpu.memory_space<vmem>>, vector<1x1x16x16xf32>
      %116 = vector.shape_cast %115 : vector<1x1x16x16xf32> to vector<16x16xf32>
      %cst_79 = arith.constant dense<0.000000e+00> : vector<16x16xf32>
      %117 = tpu.matmul %116, %49, %cst_79 {dimension_numbers = #tpu.dot_dimension_numbers<[1], [0], [0], [1], [0, 0, 1, 1], [], []>} : vector<16x16xf32>, vector<16x16xf32>, vector<16x16xf32> -> vector<16x16xf32>
      %cst_80 = arith.constant 2.550000e+02 : f32
      %118 = vector.broadcast %cst_80 : f32 to vector<16x16xf32>
      %119 = arith.divf %117, %118 : vector<16x16xf32>
      %cst_81 = arith.constant 2.550000e+02 : f32
      %120 = vector.broadcast %cst_81 : f32 to vector<16x16xf32>
      %121 = arith.mulf %119, %120 : vector<16x16xf32>
      %c0_i32_82 = arith.constant 0 : i32
      %122 = arith.cmpi eq, %0, %c0_i32_82 : i32
      %123 = arith.extui %122 : i1 to i32
      %c0_i32_83 = arith.constant 0 : i32
      %124 = arith.cmpi ne, %123, %c0_i32_83 : i32
      scf.if %124 {
        %c1_108 = arith.constant 1 : index
        %c1_109 = arith.constant 1 : index
        %c0_110 = arith.constant 0 : index
        %c0_111 = arith.constant 0 : index
        %154 = vector.load %arg4[%c1_108, %c1_109, %c0_110, %c0_111] : memref<2x4x16x16xf32, #tpu.memory_space<vmem>>, vector<1x1x16x16xf32>
        %155 = vector.shape_cast %154 : vector<1x1x16x16xf32> to vector<16x16xf32>
        %156 = vector.shape_cast %121 : vector<16x16xf32> to vector<1x1x16x16xf32>
        tpu.vector_store %arg4[%c1_108, %c1_109, %c0_110, %c0_111], %156 {strides = array<i32>} : memref<2x4x16x16xf32, #tpu.memory_space<vmem>>, vector<1x1x16x16xf32>,
      } else {
      }
      %c0_i32_84 = arith.constant 0 : i32
      %125 = arith.cmpi ne, %0, %c0_i32_84 : i32
      %126 = arith.extui %125 : i1 to i32
      %c0_i32_85 = arith.constant 0 : i32
      %127 = arith.cmpi ne, %126, %c0_i32_85 : i32
      scf.if %127 {
        %154 = tpu.transpose %121, [1, 0] : vector<16x16xf32> -> vector<16x16xf32>
        %c1_108 = arith.constant 1 : index
        %c1_109 = arith.constant 1 : index
        %c0_110 = arith.constant 0 : index
        %c0_111 = arith.constant 0 : index
        %155 = vector.load %arg4[%c1_108, %c1_109, %c0_110, %c0_111] : memref<2x4x16x16xf32, #tpu.memory_space<vmem>>, vector<1x1x16x16xf32>
        %156 = vector.shape_cast %155 : vector<1x1x16x16xf32> to vector<16x16xf32>
        %157 = vector.shape_cast %154 : vector<16x16xf32> to vector<1x1x16x16xf32>
        tpu.vector_store %arg4[%c1_108, %c1_109, %c0_110, %c0_111], %157 {strides = array<i32>} : memref<2x4x16x16xf32, #tpu.memory_space<vmem>>, vector<1x1x16x16xf32>,
      } else {
      }
      %c1_86 = arith.constant 1 : index
      %c2_87 = arith.constant 2 : index
      %c0_88 = arith.constant 0 : index
      %c0_89 = arith.constant 0 : index
      %128 = vector.load %arg2[%c1_86, %c2_87, %c0_88, %c0_89] : memref<2x4x16x16xf32, #tpu.memory_space<vmem>>, vector<1x1x16x16xf32>
      %129 = vector.shape_cast %128 : vector<1x1x16x16xf32> to vector<16x16xf32>
      %cst_90 = arith.constant dense<0.000000e+00> : vector<16x16xf32>
      %130 = tpu.matmul %129, %49, %cst_90 {dimension_numbers = #tpu.dot_dimension_numbers<[1], [0], [0], [1], [0, 0, 1, 1], [], []>} : vector<16x16xf32>, vector<16x16xf32>, vector<16x16xf32> -> vector<16x16xf32>
      %cst_91 = arith.constant 2.550000e+02 : f32
      %131 = vector.broadcast %cst_91 : f32 to vector<16x16xf32>
      %132 = arith.divf %130, %131 : vector<16x16xf32>
      %cst_92 = arith.constant 2.550000e+02 : f32
      %133 = vector.broadcast %cst_92 : f32 to vector<16x16xf32>
      %134 = arith.mulf %132, %133 : vector<16x16xf32>
      %c0_i32_93 = arith.constant 0 : i32
      %135 = arith.cmpi eq, %0, %c0_i32_93 : i32
      %136 = arith.extui %135 : i1 to i32
      %c0_i32_94 = arith.constant 0 : i32
      %137 = arith.cmpi ne, %136, %c0_i32_94 : i32
      scf.if %137 {
        %c1_108 = arith.constant 1 : index
        %c2_109 = arith.constant 2 : index
        %c0_110 = arith.constant 0 : index
        %c0_111 = arith.constant 0 : index
        %154 = vector.load %arg4[%c1_108, %c2_109, %c0_110, %c0_111] : memref<2x4x16x16xf32, #tpu.memory_space<vmem>>, vector<1x1x16x16xf32>
        %155 = vector.shape_cast %154 : vector<1x1x16x16xf32> to vector<16x16xf32>
        %156 = vector.shape_cast %134 : vector<16x16xf32> to vector<1x1x16x16xf32>
        tpu.vector_store %arg4[%c1_108, %c2_109, %c0_110, %c0_111], %156 {strides = array<i32>} : memref<2x4x16x16xf32, #tpu.memory_space<vmem>>, vector<1x1x16x16xf32>,
      } else {
      }
      %c0_i32_95 = arith.constant 0 : i32
      %138 = arith.cmpi ne, %0, %c0_i32_95 : i32
      %139 = arith.extui %138 : i1 to i32
      %c0_i32_96 = arith.constant 0 : i32
      %140 = arith.cmpi ne, %139, %c0_i32_96 : i32
      scf.if %140 {
        %154 = tpu.transpose %134, [1, 0] : vector<16x16xf32> -> vector<16x16xf32>
        %c1_108 = arith.constant 1 : index
        %c2_109 = arith.constant 2 : index
        %c0_110 = arith.constant 0 : index
        %c0_111 = arith.constant 0 : index
        %155 = vector.load %arg4[%c1_108, %c2_109, %c0_110, %c0_111] : memref<2x4x16x16xf32, #tpu.memory_space<vmem>>, vector<1x1x16x16xf32>
        %156 = vector.shape_cast %155 : vector<1x1x16x16xf32> to vector<16x16xf32>
        %157 = vector.shape_cast %154 : vector<16x16xf32> to vector<1x1x16x16xf32>
        tpu.vector_store %arg4[%c1_108, %c2_109, %c0_110, %c0_111], %157 {strides = array<i32>} : memref<2x4x16x16xf32, #tpu.memory_space<vmem>>, vector<1x1x16x16xf32>,
      } else {
      }
      %c1_97 = arith.constant 1 : index
      %c3_98 = arith.constant 3 : index
      %c0_99 = arith.constant 0 : index
      %c0_100 = arith.constant 0 : index
      %141 = vector.load %arg2[%c1_97, %c3_98, %c0_99, %c0_100] : memref<2x4x16x16xf32, #tpu.memory_space<vmem>>, vector<1x1x16x16xf32>
      %142 = vector.shape_cast %141 : vector<1x1x16x16xf32> to vector<16x16xf32>
      %cst_101 = arith.constant dense<0.000000e+00> : vector<16x16xf32>
      %143 = tpu.matmul %142, %49, %cst_101 {dimension_numbers = #tpu.dot_dimension_numbers<[1], [0], [0], [1], [0, 0, 1, 1], [], []>} : vector<16x16xf32>, vector<16x16xf32>, vector<16x16xf32> -> vector<16x16xf32>
      %cst_102 = arith.constant 2.550000e+02 : f32
      %144 = vector.broadcast %cst_102 : f32 to vector<16x16xf32>
      %145 = arith.divf %143, %144 : vector<16x16xf32>
      %cst_103 = arith.constant 2.550000e+02 : f32
      %146 = vector.broadcast %cst_103 : f32 to vector<16x16xf32>
      %147 = arith.mulf %145, %146 : vector<16x16xf32>
      %c0_i32_104 = arith.constant 0 : i32
      %148 = arith.cmpi eq, %0, %c0_i32_104 : i32
      %149 = arith.extui %148 : i1 to i32
      %c0_i32_105 = arith.constant 0 : i32
      %150 = arith.cmpi ne, %149, %c0_i32_105 : i32
      scf.if %150 {
        %c1_108 = arith.constant 1 : index
        %c3_109 = arith.constant 3 : index
        %c0_110 = arith.constant 0 : index
        %c0_111 = arith.constant 0 : index
        %154 = vector.load %arg4[%c1_108, %c3_109, %c0_110, %c0_111] : memref<2x4x16x16xf32, #tpu.memory_space<vmem>>, vector<1x1x16x16xf32>
        %155 = vector.shape_cast %154 : vector<1x1x16x16xf32> to vector<16x16xf32>
        %156 = vector.shape_cast %147 : vector<16x16xf32> to vector<1x1x16x16xf32>
        tpu.vector_store %arg4[%c1_108, %c3_109, %c0_110, %c0_111], %156 {strides = array<i32>} : memref<2x4x16x16xf32, #tpu.memory_space<vmem>>, vector<1x1x16x16xf32>,
      } else {
      }
      %c0_i32_106 = arith.constant 0 : i32
      %151 = arith.cmpi ne, %0, %c0_i32_106 : i32
      %152 = arith.extui %151 : i1 to i32
      %c0_i32_107 = arith.constant 0 : i32
      %153 = arith.cmpi ne, %152, %c0_i32_107 : i32
      scf.if %153 {
        %154 = tpu.transpose %147, [1, 0] : vector<16x16xf32> -> vector<16x16xf32>
        %c1_108 = arith.constant 1 : index
        %c3_109 = arith.constant 3 : index
        %c0_110 = arith.constant 0 : index
        %c0_111 = arith.constant 0 : index
        %155 = vector.load %arg4[%c1_108, %c3_109, %c0_110, %c0_111] : memref<2x4x16x16xf32, #tpu.memory_space<vmem>>, vector<1x1x16x16xf32>
        %156 = vector.shape_cast %155 : vector<1x1x16x16xf32> to vector<16x16xf32>
        %157 = vector.shape_cast %154 : vector<16x16xf32> to vector<1x1x16x16xf32>
        tpu.vector_store %arg4[%c1_108, %c3_109, %c0_110, %c0_111], %157 {strides = array<i32>} : memref<2x4x16x16xf32, #tpu.memory_space<vmem>>, vector<1x1x16x16xf32>,
      } else {
      }
    } else {
    }
    %c1_i32_4 = arith.constant 1 : i32
    %13 = arith.cmpi eq, %1, %c1_i32_4 : i32
    %c0_i32_5 = arith.constant 0 : i32
    %14 = arith.cmpi eq, %2, %c0_i32_5 : i32
    %15 = arith.andi %13, %14 : i1
    %16 = arith.extui %15 : i1 to i32
    %c0_i32_6 = arith.constant 0 : i32
    %17 = arith.cmpi ne, %16, %c0_i32_6 : i32
    scf.if %17 {
      %43 = tpu.iota {dimensions = array<i32: 0>} : vector<16x16xi32>
      %44 = tpu.iota {dimensions = array<i32: 1>} : vector<16x16xi32>
      %45 = arith.addi %43, %44 : vector<16x16xi32>
      %c15_i32 = arith.constant 15 : i32
      %46 = vector.broadcast %c15_i32 : i32 to vector<16x16xi32>
      %47 = arith.cmpi eq, %45, %46 : vector<16x16xi32>
      %48 = arith.extui %47 : vector<16x16xi1> to vector<16x16xi32>
      %49 = arith.sitofp %48 : vector<16x16xi32> to vector<16x16xf32>
      %c0_22 = arith.constant 0 : index
      %c0_23 = arith.constant 0 : index
      %c0_24 = arith.constant 0 : index
      %c0_25 = arith.constant 0 : index
      %50 = vector.load %arg2[%c0_22, %c0_23, %c0_24, %c0_25] : memref<2x4x16x16xf32, #tpu.memory_space<vmem>>, vector<1x1x16x16xf32>
      %51 = vector.shape_cast %50 : vector<1x1x16x16xf32> to vector<16x16xf32>
      %cst = arith.constant dense<0.000000e+00> : vector<16x16xf32>
      %52 = tpu.matmul %49, %51, %cst {dimension_numbers = #tpu.dot_dimension_numbers<[1], [0], [0], [1], [0, 0, 1, 1], [], []>} : vector<16x16xf32>, vector<16x16xf32>, vector<16x16xf32> -> vector<16x16xf32>
      %cst_26 = arith.constant 2.550000e+02 : f32
      %53 = vector.broadcast %cst_26 : f32 to vector<16x16xf32>
      %54 = arith.divf %52, %53 : vector<16x16xf32>
      %cst_27 = arith.constant 2.550000e+02 : f32
      %55 = vector.broadcast %cst_27 : f32 to vector<16x16xf32>
      %56 = arith.mulf %54, %55 : vector<16x16xf32>
      %c0_i32_28 = arith.constant 0 : i32
      %57 = arith.cmpi eq, %0, %c0_i32_28 : i32
      %58 = arith.extui %57 : i1 to i32
      %c0_i32_29 = arith.constant 0 : i32
      %59 = arith.cmpi ne, %58, %c0_i32_29 : i32
      scf.if %59 {
        %c0_108 = arith.constant 0 : index
        %c0_109 = arith.constant 0 : index
        %c0_110 = arith.constant 0 : index
        %c0_111 = arith.constant 0 : index
        %154 = vector.load %arg4[%c0_108, %c0_109, %c0_110, %c0_111] : memref<2x4x16x16xf32, #tpu.memory_space<vmem>>, vector<1x1x16x16xf32>
        %155 = vector.shape_cast %154 : vector<1x1x16x16xf32> to vector<16x16xf32>
        %156 = vector.shape_cast %56 : vector<16x16xf32> to vector<1x1x16x16xf32>
        tpu.vector_store %arg4[%c0_108, %c0_109, %c0_110, %c0_111], %156 {strides = array<i32>} : memref<2x4x16x16xf32, #tpu.memory_space<vmem>>, vector<1x1x16x16xf32>,
      } else {
      }
      %c0_i32_30 = arith.constant 0 : i32
      %60 = arith.cmpi ne, %0, %c0_i32_30 : i32
      %61 = arith.extui %60 : i1 to i32
      %c0_i32_31 = arith.constant 0 : i32
      %62 = arith.cmpi ne, %61, %c0_i32_31 : i32
      scf.if %62 {
        %154 = tpu.transpose %56, [1, 0] : vector<16x16xf32> -> vector<16x16xf32>
        %c0_108 = arith.constant 0 : index
        %c0_109 = arith.constant 0 : index
        %c0_110 = arith.constant 0 : index
        %c0_111 = arith.constant 0 : index
        %155 = vector.load %arg4[%c0_108, %c0_109, %c0_110, %c0_111] : memref<2x4x16x16xf32, #tpu.memory_space<vmem>>, vector<1x1x16x16xf32>
        %156 = vector.shape_cast %155 : vector<1x1x16x16xf32> to vector<16x16xf32>
        %157 = vector.shape_cast %154 : vector<16x16xf32> to vector<1x1x16x16xf32>
        tpu.vector_store %arg4[%c0_108, %c0_109, %c0_110, %c0_111], %157 {strides = array<i32>} : memref<2x4x16x16xf32, #tpu.memory_space<vmem>>, vector<1x1x16x16xf32>,
      } else {
      }
      %c0_32 = arith.constant 0 : index
      %c1_33 = arith.constant 1 : index
      %c0_34 = arith.constant 0 : index
      %c0_35 = arith.constant 0 : index
      %63 = vector.load %arg2[%c0_32, %c1_33, %c0_34, %c0_35] : memref<2x4x16x16xf32, #tpu.memory_space<vmem>>, vector<1x1x16x16xf32>
      %64 = vector.shape_cast %63 : vector<1x1x16x16xf32> to vector<16x16xf32>
      %cst_36 = arith.constant dense<0.000000e+00> : vector<16x16xf32>
      %65 = tpu.matmul %49, %64, %cst_36 {dimension_numbers = #tpu.dot_dimension_numbers<[1], [0], [0], [1], [0, 0, 1, 1], [], []>} : vector<16x16xf32>, vector<16x16xf32>, vector<16x16xf32> -> vector<16x16xf32>
      %cst_37 = arith.constant 2.550000e+02 : f32
      %66 = vector.broadcast %cst_37 : f32 to vector<16x16xf32>
      %67 = arith.divf %65, %66 : vector<16x16xf32>
      %cst_38 = arith.constant 2.550000e+02 : f32
      %68 = vector.broadcast %cst_38 : f32 to vector<16x16xf32>
      %69 = arith.mulf %67, %68 : vector<16x16xf32>
      %c0_i32_39 = arith.constant 0 : i32
      %70 = arith.cmpi eq, %0, %c0_i32_39 : i32
      %71 = arith.extui %70 : i1 to i32
      %c0_i32_40 = arith.constant 0 : i32
      %72 = arith.cmpi ne, %71, %c0_i32_40 : i32
      scf.if %72 {
        %c0_108 = arith.constant 0 : index
        %c1_109 = arith.constant 1 : index
        %c0_110 = arith.constant 0 : index
        %c0_111 = arith.constant 0 : index
        %154 = vector.load %arg4[%c0_108, %c1_109, %c0_110, %c0_111] : memref<2x4x16x16xf32, #tpu.memory_space<vmem>>, vector<1x1x16x16xf32>
        %155 = vector.shape_cast %154 : vector<1x1x16x16xf32> to vector<16x16xf32>
        %156 = vector.shape_cast %69 : vector<16x16xf32> to vector<1x1x16x16xf32>
        tpu.vector_store %arg4[%c0_108, %c1_109, %c0_110, %c0_111], %156 {strides = array<i32>} : memref<2x4x16x16xf32, #tpu.memory_space<vmem>>, vector<1x1x16x16xf32>,
      } else {
      }
      %c0_i32_41 = arith.constant 0 : i32
      %73 = arith.cmpi ne, %0, %c0_i32_41 : i32
      %74 = arith.extui %73 : i1 to i32
      %c0_i32_42 = arith.constant 0 : i32
      %75 = arith.cmpi ne, %74, %c0_i32_42 : i32
      scf.if %75 {
        %154 = tpu.transpose %69, [1, 0] : vector<16x16xf32> -> vector<16x16xf32>
        %c0_108 = arith.constant 0 : index
        %c1_109 = arith.constant 1 : index
        %c0_110 = arith.constant 0 : index
        %c0_111 = arith.constant 0 : index
        %155 = vector.load %arg4[%c0_108, %c1_109, %c0_110, %c0_111] : memref<2x4x16x16xf32, #tpu.memory_space<vmem>>, vector<1x1x16x16xf32>
        %156 = vector.shape_cast %155 : vector<1x1x16x16xf32> to vector<16x16xf32>
        %157 = vector.shape_cast %154 : vector<16x16xf32> to vector<1x1x16x16xf32>
        tpu.vector_store %arg4[%c0_108, %c1_109, %c0_110, %c0_111], %157 {strides = array<i32>} : memref<2x4x16x16xf32, #tpu.memory_space<vmem>>, vector<1x1x16x16xf32>,
      } else {
      }
      %c0_43 = arith.constant 0 : index
      %c2_44 = arith.constant 2 : index
      %c0_45 = arith.constant 0 : index
      %c0_46 = arith.constant 0 : index
      %76 = vector.load %arg2[%c0_43, %c2_44, %c0_45, %c0_46] : memref<2x4x16x16xf32, #tpu.memory_space<vmem>>, vector<1x1x16x16xf32>
      %77 = vector.shape_cast %76 : vector<1x1x16x16xf32> to vector<16x16xf32>
      %cst_47 = arith.constant dense<0.000000e+00> : vector<16x16xf32>
      %78 = tpu.matmul %49, %77, %cst_47 {dimension_numbers = #tpu.dot_dimension_numbers<[1], [0], [0], [1], [0, 0, 1, 1], [], []>} : vector<16x16xf32>, vector<16x16xf32>, vector<16x16xf32> -> vector<16x16xf32>
      %cst_48 = arith.constant 2.550000e+02 : f32
      %79 = vector.broadcast %cst_48 : f32 to vector<16x16xf32>
      %80 = arith.divf %78, %79 : vector<16x16xf32>
      %cst_49 = arith.constant 2.550000e+02 : f32
      %81 = vector.broadcast %cst_49 : f32 to vector<16x16xf32>
      %82 = arith.mulf %80, %81 : vector<16x16xf32>
      %c0_i32_50 = arith.constant 0 : i32
      %83 = arith.cmpi eq, %0, %c0_i32_50 : i32
      %84 = arith.extui %83 : i1 to i32
      %c0_i32_51 = arith.constant 0 : i32
      %85 = arith.cmpi ne, %84, %c0_i32_51 : i32
      scf.if %85 {
        %c0_108 = arith.constant 0 : index
        %c2_109 = arith.constant 2 : index
        %c0_110 = arith.constant 0 : index
        %c0_111 = arith.constant 0 : index
        %154 = vector.load %arg4[%c0_108, %c2_109, %c0_110, %c0_111] : memref<2x4x16x16xf32, #tpu.memory_space<vmem>>, vector<1x1x16x16xf32>
        %155 = vector.shape_cast %154 : vector<1x1x16x16xf32> to vector<16x16xf32>
        %156 = vector.shape_cast %82 : vector<16x16xf32> to vector<1x1x16x16xf32>
        tpu.vector_store %arg4[%c0_108, %c2_109, %c0_110, %c0_111], %156 {strides = array<i32>} : memref<2x4x16x16xf32, #tpu.memory_space<vmem>>, vector<1x1x16x16xf32>,
      } else {
      }
      %c0_i32_52 = arith.constant 0 : i32
      %86 = arith.cmpi ne, %0, %c0_i32_52 : i32
      %87 = arith.extui %86 : i1 to i32
      %c0_i32_53 = arith.constant 0 : i32
      %88 = arith.cmpi ne, %87, %c0_i32_53 : i32
      scf.if %88 {
        %154 = tpu.transpose %82, [1, 0] : vector<16x16xf32> -> vector<16x16xf32>
        %c0_108 = arith.constant 0 : index
        %c2_109 = arith.constant 2 : index
        %c0_110 = arith.constant 0 : index
        %c0_111 = arith.constant 0 : index
        %155 = vector.load %arg4[%c0_108, %c2_109, %c0_110, %c0_111] : memref<2x4x16x16xf32, #tpu.memory_space<vmem>>, vector<1x1x16x16xf32>
        %156 = vector.shape_cast %155 : vector<1x1x16x16xf32> to vector<16x16xf32>
        %157 = vector.shape_cast %154 : vector<16x16xf32> to vector<1x1x16x16xf32>
        tpu.vector_store %arg4[%c0_108, %c2_109, %c0_110, %c0_111], %157 {strides = array<i32>} : memref<2x4x16x16xf32, #tpu.memory_space<vmem>>, vector<1x1x16x16xf32>,
      } else {
      }
      %c0_54 = arith.constant 0 : index
      %c3 = arith.constant 3 : index
      %c0_55 = arith.constant 0 : index
      %c0_56 = arith.constant 0 : index
      %89 = vector.load %arg2[%c0_54, %c3, %c0_55, %c0_56] : memref<2x4x16x16xf32, #tpu.memory_space<vmem>>, vector<1x1x16x16xf32>
      %90 = vector.shape_cast %89 : vector<1x1x16x16xf32> to vector<16x16xf32>
      %cst_57 = arith.constant dense<0.000000e+00> : vector<16x16xf32>
      %91 = tpu.matmul %49, %90, %cst_57 {dimension_numbers = #tpu.dot_dimension_numbers<[1], [0], [0], [1], [0, 0, 1, 1], [], []>} : vector<16x16xf32>, vector<16x16xf32>, vector<16x16xf32> -> vector<16x16xf32>
      %cst_58 = arith.constant 2.550000e+02 : f32
      %92 = vector.broadcast %cst_58 : f32 to vector<16x16xf32>
      %93 = arith.divf %91, %92 : vector<16x16xf32>
      %cst_59 = arith.constant 2.550000e+02 : f32
      %94 = vector.broadcast %cst_59 : f32 to vector<16x16xf32>
      %95 = arith.mulf %93, %94 : vector<16x16xf32>
      %c0_i32_60 = arith.constant 0 : i32
      %96 = arith.cmpi eq, %0, %c0_i32_60 : i32
      %97 = arith.extui %96 : i1 to i32
      %c0_i32_61 = arith.constant 0 : i32
      %98 = arith.cmpi ne, %97, %c0_i32_61 : i32
      scf.if %98 {
        %c0_108 = arith.constant 0 : index
        %c3_109 = arith.constant 3 : index
        %c0_110 = arith.constant 0 : index
        %c0_111 = arith.constant 0 : index
        %154 = vector.load %arg4[%c0_108, %c3_109, %c0_110, %c0_111] : memref<2x4x16x16xf32, #tpu.memory_space<vmem>>, vector<1x1x16x16xf32>
        %155 = vector.shape_cast %154 : vector<1x1x16x16xf32> to vector<16x16xf32>
        %156 = vector.shape_cast %95 : vector<16x16xf32> to vector<1x1x16x16xf32>
        tpu.vector_store %arg4[%c0_108, %c3_109, %c0_110, %c0_111], %156 {strides = array<i32>} : memref<2x4x16x16xf32, #tpu.memory_space<vmem>>, vector<1x1x16x16xf32>,
      } else {
      }
      %c0_i32_62 = arith.constant 0 : i32
      %99 = arith.cmpi ne, %0, %c0_i32_62 : i32
      %100 = arith.extui %99 : i1 to i32
      %c0_i32_63 = arith.constant 0 : i32
      %101 = arith.cmpi ne, %100, %c0_i32_63 : i32
      scf.if %101 {
        %154 = tpu.transpose %95, [1, 0] : vector<16x16xf32> -> vector<16x16xf32>
        %c0_108 = arith.constant 0 : index
        %c3_109 = arith.constant 3 : index
        %c0_110 = arith.constant 0 : index
        %c0_111 = arith.constant 0 : index
        %155 = vector.load %arg4[%c0_108, %c3_109, %c0_110, %c0_111] : memref<2x4x16x16xf32, #tpu.memory_space<vmem>>, vector<1x1x16x16xf32>
        %156 = vector.shape_cast %155 : vector<1x1x16x16xf32> to vector<16x16xf32>
        %157 = vector.shape_cast %154 : vector<16x16xf32> to vector<1x1x16x16xf32>
        tpu.vector_store %arg4[%c0_108, %c3_109, %c0_110, %c0_111], %157 {strides = array<i32>} : memref<2x4x16x16xf32, #tpu.memory_space<vmem>>, vector<1x1x16x16xf32>,
      } else {
      }
      %c1_64 = arith.constant 1 : index
      %c0_65 = arith.constant 0 : index
      %c0_66 = arith.constant 0 : index
      %c0_67 = arith.constant 0 : index
      %102 = vector.load %arg2[%c1_64, %c0_65, %c0_66, %c0_67] : memref<2x4x16x16xf32, #tpu.memory_space<vmem>>, vector<1x1x16x16xf32>
      %103 = vector.shape_cast %102 : vector<1x1x16x16xf32> to vector<16x16xf32>
      %cst_68 = arith.constant dense<0.000000e+00> : vector<16x16xf32>
      %104 = tpu.matmul %49, %103, %cst_68 {dimension_numbers = #tpu.dot_dimension_numbers<[1], [0], [0], [1], [0, 0, 1, 1], [], []>} : vector<16x16xf32>, vector<16x16xf32>, vector<16x16xf32> -> vector<16x16xf32>
      %cst_69 = arith.constant 2.550000e+02 : f32
      %105 = vector.broadcast %cst_69 : f32 to vector<16x16xf32>
      %106 = arith.divf %104, %105 : vector<16x16xf32>
      %cst_70 = arith.constant 2.550000e+02 : f32
      %107 = vector.broadcast %cst_70 : f32 to vector<16x16xf32>
      %108 = arith.mulf %106, %107 : vector<16x16xf32>
      %c0_i32_71 = arith.constant 0 : i32
      %109 = arith.cmpi eq, %0, %c0_i32_71 : i32
      %110 = arith.extui %109 : i1 to i32
      %c0_i32_72 = arith.constant 0 : i32
      %111 = arith.cmpi ne, %110, %c0_i32_72 : i32
      scf.if %111 {
        %c1_108 = arith.constant 1 : index
        %c0_109 = arith.constant 0 : index
        %c0_110 = arith.constant 0 : index
        %c0_111 = arith.constant 0 : index
        %154 = vector.load %arg4[%c1_108, %c0_109, %c0_110, %c0_111] : memref<2x4x16x16xf32, #tpu.memory_space<vmem>>, vector<1x1x16x16xf32>
        %155 = vector.shape_cast %154 : vector<1x1x16x16xf32> to vector<16x16xf32>
        %156 = vector.shape_cast %108 : vector<16x16xf32> to vector<1x1x16x16xf32>
        tpu.vector_store %arg4[%c1_108, %c0_109, %c0_110, %c0_111], %156 {strides = array<i32>} : memref<2x4x16x16xf32, #tpu.memory_space<vmem>>, vector<1x1x16x16xf32>,
      } else {
      }
      %c0_i32_73 = arith.constant 0 : i32
      %112 = arith.cmpi ne, %0, %c0_i32_73 : i32
      %113 = arith.extui %112 : i1 to i32
      %c0_i32_74 = arith.constant 0 : i32
      %114 = arith.cmpi ne, %113, %c0_i32_74 : i32
      scf.if %114 {
        %154 = tpu.transpose %108, [1, 0] : vector<16x16xf32> -> vector<16x16xf32>
        %c1_108 = arith.constant 1 : index
        %c0_109 = arith.constant 0 : index
        %c0_110 = arith.constant 0 : index
        %c0_111 = arith.constant 0 : index
        %155 = vector.load %arg4[%c1_108, %c0_109, %c0_110, %c0_111] : memref<2x4x16x16xf32, #tpu.memory_space<vmem>>, vector<1x1x16x16xf32>
        %156 = vector.shape_cast %155 : vector<1x1x16x16xf32> to vector<16x16xf32>
        %157 = vector.shape_cast %154 : vector<16x16xf32> to vector<1x1x16x16xf32>
        tpu.vector_store %arg4[%c1_108, %c0_109, %c0_110, %c0_111], %157 {strides = array<i32>} : memref<2x4x16x16xf32, #tpu.memory_space<vmem>>, vector<1x1x16x16xf32>,
      } else {
      }
      %c1_75 = arith.constant 1 : index
      %c1_76 = arith.constant 1 : index
      %c0_77 = arith.constant 0 : index
      %c0_78 = arith.constant 0 : index
      %115 = vector.load %arg2[%c1_75, %c1_76, %c0_77, %c0_78] : memref<2x4x16x16xf32, #tpu.memory_space<vmem>>, vector<1x1x16x16xf32>
      %116 = vector.shape_cast %115 : vector<1x1x16x16xf32> to vector<16x16xf32>
      %cst_79 = arith.constant dense<0.000000e+00> : vector<16x16xf32>
      %117 = tpu.matmul %49, %116, %cst_79 {dimension_numbers = #tpu.dot_dimension_numbers<[1], [0], [0], [1], [0, 0, 1, 1], [], []>} : vector<16x16xf32>, vector<16x16xf32>, vector<16x16xf32> -> vector<16x16xf32>
      %cst_80 = arith.constant 2.550000e+02 : f32
      %118 = vector.broadcast %cst_80 : f32 to vector<16x16xf32>
      %119 = arith.divf %117, %118 : vector<16x16xf32>
      %cst_81 = arith.constant 2.550000e+02 : f32
      %120 = vector.broadcast %cst_81 : f32 to vector<16x16xf32>
      %121 = arith.mulf %119, %120 : vector<16x16xf32>
      %c0_i32_82 = arith.constant 0 : i32
      %122 = arith.cmpi eq, %0, %c0_i32_82 : i32
      %123 = arith.extui %122 : i1 to i32
      %c0_i32_83 = arith.constant 0 : i32
      %124 = arith.cmpi ne, %123, %c0_i32_83 : i32
      scf.if %124 {
        %c1_108 = arith.constant 1 : index
        %c1_109 = arith.constant 1 : index
        %c0_110 = arith.constant 0 : index
        %c0_111 = arith.constant 0 : index
        %154 = vector.load %arg4[%c1_108, %c1_109, %c0_110, %c0_111] : memref<2x4x16x16xf32, #tpu.memory_space<vmem>>, vector<1x1x16x16xf32>
        %155 = vector.shape_cast %154 : vector<1x1x16x16xf32> to vector<16x16xf32>
        %156 = vector.shape_cast %121 : vector<16x16xf32> to vector<1x1x16x16xf32>
        tpu.vector_store %arg4[%c1_108, %c1_109, %c0_110, %c0_111], %156 {strides = array<i32>} : memref<2x4x16x16xf32, #tpu.memory_space<vmem>>, vector<1x1x16x16xf32>,
      } else {
      }
      %c0_i32_84 = arith.constant 0 : i32
      %125 = arith.cmpi ne, %0, %c0_i32_84 : i32
      %126 = arith.extui %125 : i1 to i32
      %c0_i32_85 = arith.constant 0 : i32
      %127 = arith.cmpi ne, %126, %c0_i32_85 : i32
      scf.if %127 {
        %154 = tpu.transpose %121, [1, 0] : vector<16x16xf32> -> vector<16x16xf32>
        %c1_108 = arith.constant 1 : index
        %c1_109 = arith.constant 1 : index
        %c0_110 = arith.constant 0 : index
        %c0_111 = arith.constant 0 : index
        %155 = vector.load %arg4[%c1_108, %c1_109, %c0_110, %c0_111] : memref<2x4x16x16xf32, #tpu.memory_space<vmem>>, vector<1x1x16x16xf32>
        %156 = vector.shape_cast %155 : vector<1x1x16x16xf32> to vector<16x16xf32>
        %157 = vector.shape_cast %154 : vector<16x16xf32> to vector<1x1x16x16xf32>
        tpu.vector_store %arg4[%c1_108, %c1_109, %c0_110, %c0_111], %157 {strides = array<i32>} : memref<2x4x16x16xf32, #tpu.memory_space<vmem>>, vector<1x1x16x16xf32>,
      } else {
      }
      %c1_86 = arith.constant 1 : index
      %c2_87 = arith.constant 2 : index
      %c0_88 = arith.constant 0 : index
      %c0_89 = arith.constant 0 : index
      %128 = vector.load %arg2[%c1_86, %c2_87, %c0_88, %c0_89] : memref<2x4x16x16xf32, #tpu.memory_space<vmem>>, vector<1x1x16x16xf32>
      %129 = vector.shape_cast %128 : vector<1x1x16x16xf32> to vector<16x16xf32>
      %cst_90 = arith.constant dense<0.000000e+00> : vector<16x16xf32>
      %130 = tpu.matmul %49, %129, %cst_90 {dimension_numbers = #tpu.dot_dimension_numbers<[1], [0], [0], [1], [0, 0, 1, 1], [], []>} : vector<16x16xf32>, vector<16x16xf32>, vector<16x16xf32> -> vector<16x16xf32>
      %cst_91 = arith.constant 2.550000e+02 : f32
      %131 = vector.broadcast %cst_91 : f32 to vector<16x16xf32>
      %132 = arith.divf %130, %131 : vector<16x16xf32>
      %cst_92 = arith.constant 2.550000e+02 : f32
      %133 = vector.broadcast %cst_92 : f32 to vector<16x16xf32>
      %134 = arith.mulf %132, %133 : vector<16x16xf32>
      %c0_i32_93 = arith.constant 0 : i32
      %135 = arith.cmpi eq, %0, %c0_i32_93 : i32
      %136 = arith.extui %135 : i1 to i32
      %c0_i32_94 = arith.constant 0 : i32
      %137 = arith.cmpi ne, %136, %c0_i32_94 : i32
      scf.if %137 {
        %c1_108 = arith.constant 1 : index
        %c2_109 = arith.constant 2 : index
        %c0_110 = arith.constant 0 : index
        %c0_111 = arith.constant 0 : index
        %154 = vector.load %arg4[%c1_108, %c2_109, %c0_110, %c0_111] : memref<2x4x16x16xf32, #tpu.memory_space<vmem>>, vector<1x1x16x16xf32>
        %155 = vector.shape_cast %154 : vector<1x1x16x16xf32> to vector<16x16xf32>
        %156 = vector.shape_cast %134 : vector<16x16xf32> to vector<1x1x16x16xf32>
        tpu.vector_store %arg4[%c1_108, %c2_109, %c0_110, %c0_111], %156 {strides = array<i32>} : memref<2x4x16x16xf32, #tpu.memory_space<vmem>>, vector<1x1x16x16xf32>,
      } else {
      }
      %c0_i32_95 = arith.constant 0 : i32
      %138 = arith.cmpi ne, %0, %c0_i32_95 : i32
      %139 = arith.extui %138 : i1 to i32
      %c0_i32_96 = arith.constant 0 : i32
      %140 = arith.cmpi ne, %139, %c0_i32_96 : i32
      scf.if %140 {
        %154 = tpu.transpose %134, [1, 0] : vector<16x16xf32> -> vector<16x16xf32>
        %c1_108 = arith.constant 1 : index
        %c2_109 = arith.constant 2 : index
        %c0_110 = arith.constant 0 : index
        %c0_111 = arith.constant 0 : index
        %155 = vector.load %arg4[%c1_108, %c2_109, %c0_110, %c0_111] : memref<2x4x16x16xf32, #tpu.memory_space<vmem>>, vector<1x1x16x16xf32>
        %156 = vector.shape_cast %155 : vector<1x1x16x16xf32> to vector<16x16xf32>
        %157 = vector.shape_cast %154 : vector<16x16xf32> to vector<1x1x16x16xf32>
        tpu.vector_store %arg4[%c1_108, %c2_109, %c0_110, %c0_111], %157 {strides = array<i32>} : memref<2x4x16x16xf32, #tpu.memory_space<vmem>>, vector<1x1x16x16xf32>,
      } else {
      }
      %c1_97 = arith.constant 1 : index
      %c3_98 = arith.constant 3 : index
      %c0_99 = arith.constant 0 : index
      %c0_100 = arith.constant 0 : index
      %141 = vector.load %arg2[%c1_97, %c3_98, %c0_99, %c0_100] : memref<2x4x16x16xf32, #tpu.memory_space<vmem>>, vector<1x1x16x16xf32>
      %142 = vector.shape_cast %141 : vector<1x1x16x16xf32> to vector<16x16xf32>
      %cst_101 = arith.constant dense<0.000000e+00> : vector<16x16xf32>
      %143 = tpu.matmul %49, %142, %cst_101 {dimension_numbers = #tpu.dot_dimension_numbers<[1], [0], [0], [1], [0, 0, 1, 1], [], []>} : vector<16x16xf32>, vector<16x16xf32>, vector<16x16xf32> -> vector<16x16xf32>
      %cst_102 = arith.constant 2.550000e+02 : f32
      %144 = vector.broadcast %cst_102 : f32 to vector<16x16xf32>
      %145 = arith.divf %143, %144 : vector<16x16xf32>
      %cst_103 = arith.constant 2.550000e+02 : f32
      %146 = vector.broadcast %cst_103 : f32 to vector<16x16xf32>
      %147 = arith.mulf %145, %146 : vector<16x16xf32>
      %c0_i32_104 = arith.constant 0 : i32
      %148 = arith.cmpi eq, %0, %c0_i32_104 : i32
      %149 = arith.extui %148 : i1 to i32
      %c0_i32_105 = arith.constant 0 : i32
      %150 = arith.cmpi ne, %149, %c0_i32_105 : i32
      scf.if %150 {
        %c1_108 = arith.constant 1 : index
        %c3_109 = arith.constant 3 : index
        %c0_110 = arith.constant 0 : index
        %c0_111 = arith.constant 0 : index
        %154 = vector.load %arg4[%c1_108, %c3_109, %c0_110, %c0_111] : memref<2x4x16x16xf32, #tpu.memory_space<vmem>>, vector<1x1x16x16xf32>
        %155 = vector.shape_cast %154 : vector<1x1x16x16xf32> to vector<16x16xf32>
        %156 = vector.shape_cast %147 : vector<16x16xf32> to vector<1x1x16x16xf32>
        tpu.vector_store %arg4[%c1_108, %c3_109, %c0_110, %c0_111], %156 {strides = array<i32>} : memref<2x4x16x16xf32, #tpu.memory_space<vmem>>, vector<1x1x16x16xf32>,
      } else {
      }
      %c0_i32_106 = arith.constant 0 : i32
      %151 = arith.cmpi ne, %0, %c0_i32_106 : i32
      %152 = arith.extui %151 : i1 to i32
      %c0_i32_107 = arith.constant 0 : i32
      %153 = arith.cmpi ne, %152, %c0_i32_107 : i32
      scf.if %153 {
        %154 = tpu.transpose %147, [1, 0] : vector<16x16xf32> -> vector<16x16xf32>
        %c1_108 = arith.constant 1 : index
        %c3_109 = arith.constant 3 : index
        %c0_110 = arith.constant 0 : index
        %c0_111 = arith.constant 0 : index
        %155 = vector.load %arg4[%c1_108, %c3_109, %c0_110, %c0_111] : memref<2x4x16x16xf32, #tpu.memory_space<vmem>>, vector<1x1x16x16xf32>
        %156 = vector.shape_cast %155 : vector<1x1x16x16xf32> to vector<16x16xf32>
        %157 = vector.shape_cast %154 : vector<16x16xf32> to vector<1x1x16x16xf32>
        tpu.vector_store %arg4[%c1_108, %c3_109, %c0_110, %c0_111], %157 {strides = array<i32>} : memref<2x4x16x16xf32, #tpu.memory_space<vmem>>, vector<1x1x16x16xf32>,
      } else {
      }
    } else {
    }
    %c1_i32_7 = arith.constant 1 : i32
    %18 = arith.cmpi eq, %1, %c1_i32_7 : i32
    %c1_i32_8 = arith.constant 1 : i32
    %19 = arith.cmpi eq, %2, %c1_i32_8 : i32
    %20 = arith.andi %18, %19 : i1
    %21 = arith.extui %20 : i1 to i32
    %c0_i32_9 = arith.constant 0 : i32
    %22 = arith.cmpi ne, %21, %c0_i32_9 : i32
    scf.if %22 {
      %43 = tpu.iota {dimensions = array<i32: 0>} : vector<16x16xi32>
      %44 = tpu.iota {dimensions = array<i32: 1>} : vector<16x16xi32>
      %45 = arith.addi %43, %44 : vector<16x16xi32>
      %c15_i32 = arith.constant 15 : i32
      %46 = vector.broadcast %c15_i32 : i32 to vector<16x16xi32>
      %47 = arith.cmpi eq, %45, %46 : vector<16x16xi32>
      %48 = arith.extui %47 : vector<16x16xi1> to vector<16x16xi32>
      %49 = arith.sitofp %48 : vector<16x16xi32> to vector<16x16xf32>
      %c0_22 = arith.constant 0 : index
      %c0_23 = arith.constant 0 : index
      %c0_24 = arith.constant 0 : index
      %c0_25 = arith.constant 0 : index
      %50 = vector.load %arg2[%c0_22, %c0_23, %c0_24, %c0_25] : memref<2x4x16x16xf32, #tpu.memory_space<vmem>>, vector<1x1x16x16xf32>
      %51 = vector.shape_cast %50 : vector<1x1x16x16xf32> to vector<16x16xf32>
      %cst = arith.constant dense<0.000000e+00> : vector<16x16xf32>
      %52 = tpu.matmul %49, %51, %cst {dimension_numbers = #tpu.dot_dimension_numbers<[1], [0], [0], [1], [0, 0, 1, 1], [], []>} : vector<16x16xf32>, vector<16x16xf32>, vector<16x16xf32> -> vector<16x16xf32>
      %cst_26 = arith.constant dense<0.000000e+00> : vector<16x16xf32>
      %53 = tpu.matmul %52, %49, %cst_26 {dimension_numbers = #tpu.dot_dimension_numbers<[1], [0], [0], [1], [0, 0, 1, 1], [], []>} : vector<16x16xf32>, vector<16x16xf32>, vector<16x16xf32> -> vector<16x16xf32>
      %cst_27 = arith.constant 2.550000e+02 : f32
      %54 = vector.broadcast %cst_27 : f32 to vector<16x16xf32>
      %55 = arith.divf %53, %54 : vector<16x16xf32>
      %cst_28 = arith.constant 2.550000e+02 : f32
      %56 = vector.broadcast %cst_28 : f32 to vector<16x16xf32>
      %57 = arith.mulf %55, %56 : vector<16x16xf32>
      %c0_i32_29 = arith.constant 0 : i32
      %58 = arith.cmpi eq, %0, %c0_i32_29 : i32
      %59 = arith.extui %58 : i1 to i32
      %c0_i32_30 = arith.constant 0 : i32
      %60 = arith.cmpi ne, %59, %c0_i32_30 : i32
      scf.if %60 {
        %c0_116 = arith.constant 0 : index
        %c0_117 = arith.constant 0 : index
        %c0_118 = arith.constant 0 : index
        %c0_119 = arith.constant 0 : index
        %162 = vector.load %arg4[%c0_116, %c0_117, %c0_118, %c0_119] : memref<2x4x16x16xf32, #tpu.memory_space<vmem>>, vector<1x1x16x16xf32>
        %163 = vector.shape_cast %162 : vector<1x1x16x16xf32> to vector<16x16xf32>
        %164 = vector.shape_cast %57 : vector<16x16xf32> to vector<1x1x16x16xf32>
        tpu.vector_store %arg4[%c0_116, %c0_117, %c0_118, %c0_119], %164 {strides = array<i32>} : memref<2x4x16x16xf32, #tpu.memory_space<vmem>>, vector<1x1x16x16xf32>,
      } else {
      }
      %c0_i32_31 = arith.constant 0 : i32
      %61 = arith.cmpi ne, %0, %c0_i32_31 : i32
      %62 = arith.extui %61 : i1 to i32
      %c0_i32_32 = arith.constant 0 : i32
      %63 = arith.cmpi ne, %62, %c0_i32_32 : i32
      scf.if %63 {
        %162 = tpu.transpose %57, [1, 0] : vector<16x16xf32> -> vector<16x16xf32>
        %c0_116 = arith.constant 0 : index
        %c0_117 = arith.constant 0 : index
        %c0_118 = arith.constant 0 : index
        %c0_119 = arith.constant 0 : index
        %163 = vector.load %arg4[%c0_116, %c0_117, %c0_118, %c0_119] : memref<2x4x16x16xf32, #tpu.memory_space<vmem>>, vector<1x1x16x16xf32>
        %164 = vector.shape_cast %163 : vector<1x1x16x16xf32> to vector<16x16xf32>
        %165 = vector.shape_cast %162 : vector<16x16xf32> to vector<1x1x16x16xf32>
        tpu.vector_store %arg4[%c0_116, %c0_117, %c0_118, %c0_119], %165 {strides = array<i32>} : memref<2x4x16x16xf32, #tpu.memory_space<vmem>>, vector<1x1x16x16xf32>,
      } else {
      }
      %c0_33 = arith.constant 0 : index
      %c1_34 = arith.constant 1 : index
      %c0_35 = arith.constant 0 : index
      %c0_36 = arith.constant 0 : index
      %64 = vector.load %arg2[%c0_33, %c1_34, %c0_35, %c0_36] : memref<2x4x16x16xf32, #tpu.memory_space<vmem>>, vector<1x1x16x16xf32>
      %65 = vector.shape_cast %64 : vector<1x1x16x16xf32> to vector<16x16xf32>
      %cst_37 = arith.constant dense<0.000000e+00> : vector<16x16xf32>
      %66 = tpu.matmul %49, %65, %cst_37 {dimension_numbers = #tpu.dot_dimension_numbers<[1], [0], [0], [1], [0, 0, 1, 1], [], []>} : vector<16x16xf32>, vector<16x16xf32>, vector<16x16xf32> -> vector<16x16xf32>
      %cst_38 = arith.constant dense<0.000000e+00> : vector<16x16xf32>
      %67 = tpu.matmul %66, %49, %cst_38 {dimension_numbers = #tpu.dot_dimension_numbers<[1], [0], [0], [1], [0, 0, 1, 1], [], []>} : vector<16x16xf32>, vector<16x16xf32>, vector<16x16xf32> -> vector<16x16xf32>
      %cst_39 = arith.constant 2.550000e+02 : f32
      %68 = vector.broadcast %cst_39 : f32 to vector<16x16xf32>
      %69 = arith.divf %67, %68 : vector<16x16xf32>
      %cst_40 = arith.constant 2.550000e+02 : f32
      %70 = vector.broadcast %cst_40 : f32 to vector<16x16xf32>
      %71 = arith.mulf %69, %70 : vector<16x16xf32>
      %c0_i32_41 = arith.constant 0 : i32
      %72 = arith.cmpi eq, %0, %c0_i32_41 : i32
      %73 = arith.extui %72 : i1 to i32
      %c0_i32_42 = arith.constant 0 : i32
      %74 = arith.cmpi ne, %73, %c0_i32_42 : i32
      scf.if %74 {
        %c0_116 = arith.constant 0 : index
        %c1_117 = arith.constant 1 : index
        %c0_118 = arith.constant 0 : index
        %c0_119 = arith.constant 0 : index
        %162 = vector.load %arg4[%c0_116, %c1_117, %c0_118, %c0_119] : memref<2x4x16x16xf32, #tpu.memory_space<vmem>>, vector<1x1x16x16xf32>
        %163 = vector.shape_cast %162 : vector<1x1x16x16xf32> to vector<16x16xf32>
        %164 = vector.shape_cast %71 : vector<16x16xf32> to vector<1x1x16x16xf32>
        tpu.vector_store %arg4[%c0_116, %c1_117, %c0_118, %c0_119], %164 {strides = array<i32>} : memref<2x4x16x16xf32, #tpu.memory_space<vmem>>, vector<1x1x16x16xf32>,
      } else {
      }
      %c0_i32_43 = arith.constant 0 : i32
      %75 = arith.cmpi ne, %0, %c0_i32_43 : i32
      %76 = arith.extui %75 : i1 to i32
      %c0_i32_44 = arith.constant 0 : i32
      %77 = arith.cmpi ne, %76, %c0_i32_44 : i32
      scf.if %77 {
        %162 = tpu.transpose %71, [1, 0] : vector<16x16xf32> -> vector<16x16xf32>
        %c0_116 = arith.constant 0 : index
        %c1_117 = arith.constant 1 : index
        %c0_118 = arith.constant 0 : index
        %c0_119 = arith.constant 0 : index
        %163 = vector.load %arg4[%c0_116, %c1_117, %c0_118, %c0_119] : memref<2x4x16x16xf32, #tpu.memory_space<vmem>>, vector<1x1x16x16xf32>
        %164 = vector.shape_cast %163 : vector<1x1x16x16xf32> to vector<16x16xf32>
        %165 = vector.shape_cast %162 : vector<16x16xf32> to vector<1x1x16x16xf32>
        tpu.vector_store %arg4[%c0_116, %c1_117, %c0_118, %c0_119], %165 {strides = array<i32>} : memref<2x4x16x16xf32, #tpu.memory_space<vmem>>, vector<1x1x16x16xf32>,
      } else {
      }
      %c0_45 = arith.constant 0 : index
      %c2_46 = arith.constant 2 : index
      %c0_47 = arith.constant 0 : index
      %c0_48 = arith.constant 0 : index
      %78 = vector.load %arg2[%c0_45, %c2_46, %c0_47, %c0_48] : memref<2x4x16x16xf32, #tpu.memory_space<vmem>>, vector<1x1x16x16xf32>
      %79 = vector.shape_cast %78 : vector<1x1x16x16xf32> to vector<16x16xf32>
      %cst_49 = arith.constant dense<0.000000e+00> : vector<16x16xf32>
      %80 = tpu.matmul %49, %79, %cst_49 {dimension_numbers = #tpu.dot_dimension_numbers<[1], [0], [0], [1], [0, 0, 1, 1], [], []>} : vector<16x16xf32>, vector<16x16xf32>, vector<16x16xf32> -> vector<16x16xf32>
      %cst_50 = arith.constant dense<0.000000e+00> : vector<16x16xf32>
      %81 = tpu.matmul %80, %49, %cst_50 {dimension_numbers = #tpu.dot_dimension_numbers<[1], [0], [0], [1], [0, 0, 1, 1], [], []>} : vector<16x16xf32>, vector<16x16xf32>, vector<16x16xf32> -> vector<16x16xf32>
      %cst_51 = arith.constant 2.550000e+02 : f32
      %82 = vector.broadcast %cst_51 : f32 to vector<16x16xf32>
      %83 = arith.divf %81, %82 : vector<16x16xf32>
      %cst_52 = arith.constant 2.550000e+02 : f32
      %84 = vector.broadcast %cst_52 : f32 to vector<16x16xf32>
      %85 = arith.mulf %83, %84 : vector<16x16xf32>
      %c0_i32_53 = arith.constant 0 : i32
      %86 = arith.cmpi eq, %0, %c0_i32_53 : i32
      %87 = arith.extui %86 : i1 to i32
      %c0_i32_54 = arith.constant 0 : i32
      %88 = arith.cmpi ne, %87, %c0_i32_54 : i32
      scf.if %88 {
        %c0_116 = arith.constant 0 : index
        %c2_117 = arith.constant 2 : index
        %c0_118 = arith.constant 0 : index
        %c0_119 = arith.constant 0 : index
        %162 = vector.load %arg4[%c0_116, %c2_117, %c0_118, %c0_119] : memref<2x4x16x16xf32, #tpu.memory_space<vmem>>, vector<1x1x16x16xf32>
        %163 = vector.shape_cast %162 : vector<1x1x16x16xf32> to vector<16x16xf32>
        %164 = vector.shape_cast %85 : vector<16x16xf32> to vector<1x1x16x16xf32>
        tpu.vector_store %arg4[%c0_116, %c2_117, %c0_118, %c0_119], %164 {strides = array<i32>} : memref<2x4x16x16xf32, #tpu.memory_space<vmem>>, vector<1x1x16x16xf32>,
      } else {
      }
      %c0_i32_55 = arith.constant 0 : i32
      %89 = arith.cmpi ne, %0, %c0_i32_55 : i32
      %90 = arith.extui %89 : i1 to i32
      %c0_i32_56 = arith.constant 0 : i32
      %91 = arith.cmpi ne, %90, %c0_i32_56 : i32
      scf.if %91 {
        %162 = tpu.transpose %85, [1, 0] : vector<16x16xf32> -> vector<16x16xf32>
        %c0_116 = arith.constant 0 : index
        %c2_117 = arith.constant 2 : index
        %c0_118 = arith.constant 0 : index
        %c0_119 = arith.constant 0 : index
        %163 = vector.load %arg4[%c0_116, %c2_117, %c0_118, %c0_119] : memref<2x4x16x16xf32, #tpu.memory_space<vmem>>, vector<1x1x16x16xf32>
        %164 = vector.shape_cast %163 : vector<1x1x16x16xf32> to vector<16x16xf32>
        %165 = vector.shape_cast %162 : vector<16x16xf32> to vector<1x1x16x16xf32>
        tpu.vector_store %arg4[%c0_116, %c2_117, %c0_118, %c0_119], %165 {strides = array<i32>} : memref<2x4x16x16xf32, #tpu.memory_space<vmem>>, vector<1x1x16x16xf32>,
      } else {
      }
      %c0_57 = arith.constant 0 : index
      %c3 = arith.constant 3 : index
      %c0_58 = arith.constant 0 : index
      %c0_59 = arith.constant 0 : index
      %92 = vector.load %arg2[%c0_57, %c3, %c0_58, %c0_59] : memref<2x4x16x16xf32, #tpu.memory_space<vmem>>, vector<1x1x16x16xf32>
      %93 = vector.shape_cast %92 : vector<1x1x16x16xf32> to vector<16x16xf32>
      %cst_60 = arith.constant dense<0.000000e+00> : vector<16x16xf32>
      %94 = tpu.matmul %49, %93, %cst_60 {dimension_numbers = #tpu.dot_dimension_numbers<[1], [0], [0], [1], [0, 0, 1, 1], [], []>} : vector<16x16xf32>, vector<16x16xf32>, vector<16x16xf32> -> vector<16x16xf32>
      %cst_61 = arith.constant dense<0.000000e+00> : vector<16x16xf32>
      %95 = tpu.matmul %94, %49, %cst_61 {dimension_numbers = #tpu.dot_dimension_numbers<[1], [0], [0], [1], [0, 0, 1, 1], [], []>} : vector<16x16xf32>, vector<16x16xf32>, vector<16x16xf32> -> vector<16x16xf32>
      %cst_62 = arith.constant 2.550000e+02 : f32
      %96 = vector.broadcast %cst_62 : f32 to vector<16x16xf32>
      %97 = arith.divf %95, %96 : vector<16x16xf32>
      %cst_63 = arith.constant 2.550000e+02 : f32
      %98 = vector.broadcast %cst_63 : f32 to vector<16x16xf32>
      %99 = arith.mulf %97, %98 : vector<16x16xf32>
      %c0_i32_64 = arith.constant 0 : i32
      %100 = arith.cmpi eq, %0, %c0_i32_64 : i32
      %101 = arith.extui %100 : i1 to i32
      %c0_i32_65 = arith.constant 0 : i32
      %102 = arith.cmpi ne, %101, %c0_i32_65 : i32
      scf.if %102 {
        %c0_116 = arith.constant 0 : index
        %c3_117 = arith.constant 3 : index
        %c0_118 = arith.constant 0 : index
        %c0_119 = arith.constant 0 : index
        %162 = vector.load %arg4[%c0_116, %c3_117, %c0_118, %c0_119] : memref<2x4x16x16xf32, #tpu.memory_space<vmem>>, vector<1x1x16x16xf32>
        %163 = vector.shape_cast %162 : vector<1x1x16x16xf32> to vector<16x16xf32>
        %164 = vector.shape_cast %99 : vector<16x16xf32> to vector<1x1x16x16xf32>
        tpu.vector_store %arg4[%c0_116, %c3_117, %c0_118, %c0_119], %164 {strides = array<i32>} : memref<2x4x16x16xf32, #tpu.memory_space<vmem>>, vector<1x1x16x16xf32>,
      } else {
      }
      %c0_i32_66 = arith.constant 0 : i32
      %103 = arith.cmpi ne, %0, %c0_i32_66 : i32
      %104 = arith.extui %103 : i1 to i32
      %c0_i32_67 = arith.constant 0 : i32
      %105 = arith.cmpi ne, %104, %c0_i32_67 : i32
      scf.if %105 {
        %162 = tpu.transpose %99, [1, 0] : vector<16x16xf32> -> vector<16x16xf32>
        %c0_116 = arith.constant 0 : index
        %c3_117 = arith.constant 3 : index
        %c0_118 = arith.constant 0 : index
        %c0_119 = arith.constant 0 : index
        %163 = vector.load %arg4[%c0_116, %c3_117, %c0_118, %c0_119] : memref<2x4x16x16xf32, #tpu.memory_space<vmem>>, vector<1x1x16x16xf32>
        %164 = vector.shape_cast %163 : vector<1x1x16x16xf32> to vector<16x16xf32>
        %165 = vector.shape_cast %162 : vector<16x16xf32> to vector<1x1x16x16xf32>
        tpu.vector_store %arg4[%c0_116, %c3_117, %c0_118, %c0_119], %165 {strides = array<i32>} : memref<2x4x16x16xf32, #tpu.memory_space<vmem>>, vector<1x1x16x16xf32>,
      } else {
      }
      %c1_68 = arith.constant 1 : index
      %c0_69 = arith.constant 0 : index
      %c0_70 = arith.constant 0 : index
      %c0_71 = arith.constant 0 : index
      %106 = vector.load %arg2[%c1_68, %c0_69, %c0_70, %c0_71] : memref<2x4x16x16xf32, #tpu.memory_space<vmem>>, vector<1x1x16x16xf32>
      %107 = vector.shape_cast %106 : vector<1x1x16x16xf32> to vector<16x16xf32>
      %cst_72 = arith.constant dense<0.000000e+00> : vector<16x16xf32>
      %108 = tpu.matmul %49, %107, %cst_72 {dimension_numbers = #tpu.dot_dimension_numbers<[1], [0], [0], [1], [0, 0, 1, 1], [], []>} : vector<16x16xf32>, vector<16x16xf32>, vector<16x16xf32> -> vector<16x16xf32>
      %cst_73 = arith.constant dense<0.000000e+00> : vector<16x16xf32>
      %109 = tpu.matmul %108, %49, %cst_73 {dimension_numbers = #tpu.dot_dimension_numbers<[1], [0], [0], [1], [0, 0, 1, 1], [], []>} : vector<16x16xf32>, vector<16x16xf32>, vector<16x16xf32> -> vector<16x16xf32>
      %cst_74 = arith.constant 2.550000e+02 : f32
      %110 = vector.broadcast %cst_74 : f32 to vector<16x16xf32>
      %111 = arith.divf %109, %110 : vector<16x16xf32>
      %cst_75 = arith.constant 2.550000e+02 : f32
      %112 = vector.broadcast %cst_75 : f32 to vector<16x16xf32>
      %113 = arith.mulf %111, %112 : vector<16x16xf32>
      %c0_i32_76 = arith.constant 0 : i32
      %114 = arith.cmpi eq, %0, %c0_i32_76 : i32
      %115 = arith.extui %114 : i1 to i32
      %c0_i32_77 = arith.constant 0 : i32
      %116 = arith.cmpi ne, %115, %c0_i32_77 : i32
      scf.if %116 {
        %c1_116 = arith.constant 1 : index
        %c0_117 = arith.constant 0 : index
        %c0_118 = arith.constant 0 : index
        %c0_119 = arith.constant 0 : index
        %162 = vector.load %arg4[%c1_116, %c0_117, %c0_118, %c0_119] : memref<2x4x16x16xf32, #tpu.memory_space<vmem>>, vector<1x1x16x16xf32>
        %163 = vector.shape_cast %162 : vector<1x1x16x16xf32> to vector<16x16xf32>
        %164 = vector.shape_cast %113 : vector<16x16xf32> to vector<1x1x16x16xf32>
        tpu.vector_store %arg4[%c1_116, %c0_117, %c0_118, %c0_119], %164 {strides = array<i32>} : memref<2x4x16x16xf32, #tpu.memory_space<vmem>>, vector<1x1x16x16xf32>,
      } else {
      }
      %c0_i32_78 = arith.constant 0 : i32
      %117 = arith.cmpi ne, %0, %c0_i32_78 : i32
      %118 = arith.extui %117 : i1 to i32
      %c0_i32_79 = arith.constant 0 : i32
      %119 = arith.cmpi ne, %118, %c0_i32_79 : i32
      scf.if %119 {
        %162 = tpu.transpose %113, [1, 0] : vector<16x16xf32> -> vector<16x16xf32>
        %c1_116 = arith.constant 1 : index
        %c0_117 = arith.constant 0 : index
        %c0_118 = arith.constant 0 : index
        %c0_119 = arith.constant 0 : index
        %163 = vector.load %arg4[%c1_116, %c0_117, %c0_118, %c0_119] : memref<2x4x16x16xf32, #tpu.memory_space<vmem>>, vector<1x1x16x16xf32>
        %164 = vector.shape_cast %163 : vector<1x1x16x16xf32> to vector<16x16xf32>
        %165 = vector.shape_cast %162 : vector<16x16xf32> to vector<1x1x16x16xf32>
        tpu.vector_store %arg4[%c1_116, %c0_117, %c0_118, %c0_119], %165 {strides = array<i32>} : memref<2x4x16x16xf32, #tpu.memory_space<vmem>>, vector<1x1x16x16xf32>,
      } else {
      }
      %c1_80 = arith.constant 1 : index
      %c1_81 = arith.constant 1 : index
      %c0_82 = arith.constant 0 : index
      %c0_83 = arith.constant 0 : index
      %120 = vector.load %arg2[%c1_80, %c1_81, %c0_82, %c0_83] : memref<2x4x16x16xf32, #tpu.memory_space<vmem>>, vector<1x1x16x16xf32>
      %121 = vector.shape_cast %120 : vector<1x1x16x16xf32> to vector<16x16xf32>
      %cst_84 = arith.constant dense<0.000000e+00> : vector<16x16xf32>
      %122 = tpu.matmul %49, %121, %cst_84 {dimension_numbers = #tpu.dot_dimension_numbers<[1], [0], [0], [1], [0, 0, 1, 1], [], []>} : vector<16x16xf32>, vector<16x16xf32>, vector<16x16xf32> -> vector<16x16xf32>
      %cst_85 = arith.constant dense<0.000000e+00> : vector<16x16xf32>
      %123 = tpu.matmul %122, %49, %cst_85 {dimension_numbers = #tpu.dot_dimension_numbers<[1], [0], [0], [1], [0, 0, 1, 1], [], []>} : vector<16x16xf32>, vector<16x16xf32>, vector<16x16xf32> -> vector<16x16xf32>
      %cst_86 = arith.constant 2.550000e+02 : f32
      %124 = vector.broadcast %cst_86 : f32 to vector<16x16xf32>
      %125 = arith.divf %123, %124 : vector<16x16xf32>
      %cst_87 = arith.constant 2.550000e+02 : f32
      %126 = vector.broadcast %cst_87 : f32 to vector<16x16xf32>
      %127 = arith.mulf %125, %126 : vector<16x16xf32>
      %c0_i32_88 = arith.constant 0 : i32
      %128 = arith.cmpi eq, %0, %c0_i32_88 : i32
      %129 = arith.extui %128 : i1 to i32
      %c0_i32_89 = arith.constant 0 : i32
      %130 = arith.cmpi ne, %129, %c0_i32_89 : i32
      scf.if %130 {
        %c1_116 = arith.constant 1 : index
        %c1_117 = arith.constant 1 : index
        %c0_118 = arith.constant 0 : index
        %c0_119 = arith.constant 0 : index
        %162 = vector.load %arg4[%c1_116, %c1_117, %c0_118, %c0_119] : memref<2x4x16x16xf32, #tpu.memory_space<vmem>>, vector<1x1x16x16xf32>
        %163 = vector.shape_cast %162 : vector<1x1x16x16xf32> to vector<16x16xf32>
        %164 = vector.shape_cast %127 : vector<16x16xf32> to vector<1x1x16x16xf32>
        tpu.vector_store %arg4[%c1_116, %c1_117, %c0_118, %c0_119], %164 {strides = array<i32>} : memref<2x4x16x16xf32, #tpu.memory_space<vmem>>, vector<1x1x16x16xf32>,
      } else {
      }
      %c0_i32_90 = arith.constant 0 : i32
      %131 = arith.cmpi ne, %0, %c0_i32_90 : i32
      %132 = arith.extui %131 : i1 to i32
      %c0_i32_91 = arith.constant 0 : i32
      %133 = arith.cmpi ne, %132, %c0_i32_91 : i32
      scf.if %133 {
        %162 = tpu.transpose %127, [1, 0] : vector<16x16xf32> -> vector<16x16xf32>
        %c1_116 = arith.constant 1 : index
        %c1_117 = arith.constant 1 : index
        %c0_118 = arith.constant 0 : index
        %c0_119 = arith.constant 0 : index
        %163 = vector.load %arg4[%c1_116, %c1_117, %c0_118, %c0_119] : memref<2x4x16x16xf32, #tpu.memory_space<vmem>>, vector<1x1x16x16xf32>
        %164 = vector.shape_cast %163 : vector<1x1x16x16xf32> to vector<16x16xf32>
        %165 = vector.shape_cast %162 : vector<16x16xf32> to vector<1x1x16x16xf32>
        tpu.vector_store %arg4[%c1_116, %c1_117, %c0_118, %c0_119], %165 {strides = array<i32>} : memref<2x4x16x16xf32, #tpu.memory_space<vmem>>, vector<1x1x16x16xf32>,
      } else {
      }
      %c1_92 = arith.constant 1 : index
      %c2_93 = arith.constant 2 : index
      %c0_94 = arith.constant 0 : index
      %c0_95 = arith.constant 0 : index
      %134 = vector.load %arg2[%c1_92, %c2_93, %c0_94, %c0_95] : memref<2x4x16x16xf32, #tpu.memory_space<vmem>>, vector<1x1x16x16xf32>
      %135 = vector.shape_cast %134 : vector<1x1x16x16xf32> to vector<16x16xf32>
      %cst_96 = arith.constant dense<0.000000e+00> : vector<16x16xf32>
      %136 = tpu.matmul %49, %135, %cst_96 {dimension_numbers = #tpu.dot_dimension_numbers<[1], [0], [0], [1], [0, 0, 1, 1], [], []>} : vector<16x16xf32>, vector<16x16xf32>, vector<16x16xf32> -> vector<16x16xf32>
      %cst_97 = arith.constant dense<0.000000e+00> : vector<16x16xf32>
      %137 = tpu.matmul %136, %49, %cst_97 {dimension_numbers = #tpu.dot_dimension_numbers<[1], [0], [0], [1], [0, 0, 1, 1], [], []>} : vector<16x16xf32>, vector<16x16xf32>, vector<16x16xf32> -> vector<16x16xf32>
      %cst_98 = arith.constant 2.550000e+02 : f32
      %138 = vector.broadcast %cst_98 : f32 to vector<16x16xf32>
      %139 = arith.divf %137, %138 : vector<16x16xf32>
      %cst_99 = arith.constant 2.550000e+02 : f32
      %140 = vector.broadcast %cst_99 : f32 to vector<16x16xf32>
      %141 = arith.mulf %139, %140 : vector<16x16xf32>
      %c0_i32_100 = arith.constant 0 : i32
      %142 = arith.cmpi eq, %0, %c0_i32_100 : i32
      %143 = arith.extui %142 : i1 to i32
      %c0_i32_101 = arith.constant 0 : i32
      %144 = arith.cmpi ne, %143, %c0_i32_101 : i32
      scf.if %144 {
        %c1_116 = arith.constant 1 : index
        %c2_117 = arith.constant 2 : index
        %c0_118 = arith.constant 0 : index
        %c0_119 = arith.constant 0 : index
        %162 = vector.load %arg4[%c1_116, %c2_117, %c0_118, %c0_119] : memref<2x4x16x16xf32, #tpu.memory_space<vmem>>, vector<1x1x16x16xf32>
        %163 = vector.shape_cast %162 : vector<1x1x16x16xf32> to vector<16x16xf32>
        %164 = vector.shape_cast %141 : vector<16x16xf32> to vector<1x1x16x16xf32>
        tpu.vector_store %arg4[%c1_116, %c2_117, %c0_118, %c0_119], %164 {strides = array<i32>} : memref<2x4x16x16xf32, #tpu.memory_space<vmem>>, vector<1x1x16x16xf32>,
      } else {
      }
      %c0_i32_102 = arith.constant 0 : i32
      %145 = arith.cmpi ne, %0, %c0_i32_102 : i32
      %146 = arith.extui %145 : i1 to i32
      %c0_i32_103 = arith.constant 0 : i32
      %147 = arith.cmpi ne, %146, %c0_i32_103 : i32
      scf.if %147 {
        %162 = tpu.transpose %141, [1, 0] : vector<16x16xf32> -> vector<16x16xf32>
        %c1_116 = arith.constant 1 : index
        %c2_117 = arith.constant 2 : index
        %c0_118 = arith.constant 0 : index
        %c0_119 = arith.constant 0 : index
        %163 = vector.load %arg4[%c1_116, %c2_117, %c0_118, %c0_119] : memref<2x4x16x16xf32, #tpu.memory_space<vmem>>, vector<1x1x16x16xf32>
        %164 = vector.shape_cast %163 : vector<1x1x16x16xf32> to vector<16x16xf32>
        %165 = vector.shape_cast %162 : vector<16x16xf32> to vector<1x1x16x16xf32>
        tpu.vector_store %arg4[%c1_116, %c2_117, %c0_118, %c0_119], %165 {strides = array<i32>} : memref<2x4x16x16xf32, #tpu.memory_space<vmem>>, vector<1x1x16x16xf32>,
      } else {
      }
      %c1_104 = arith.constant 1 : index
      %c3_105 = arith.constant 3 : index
      %c0_106 = arith.constant 0 : index
      %c0_107 = arith.constant 0 : index
      %148 = vector.load %arg2[%c1_104, %c3_105, %c0_106, %c0_107] : memref<2x4x16x16xf32, #tpu.memory_space<vmem>>, vector<1x1x16x16xf32>
      %149 = vector.shape_cast %148 : vector<1x1x16x16xf32> to vector<16x16xf32>
      %cst_108 = arith.constant dense<0.000000e+00> : vector<16x16xf32>
      %150 = tpu.matmul %49, %149, %cst_108 {dimension_numbers = #tpu.dot_dimension_numbers<[1], [0], [0], [1], [0, 0, 1, 1], [], []>} : vector<16x16xf32>, vector<16x16xf32>, vector<16x16xf32> -> vector<16x16xf32>
      %cst_109 = arith.constant dense<0.000000e+00> : vector<16x16xf32>
      %151 = tpu.matmul %150, %49, %cst_109 {dimension_numbers = #tpu.dot_dimension_numbers<[1], [0], [0], [1], [0, 0, 1, 1], [], []>} : vector<16x16xf32>, vector<16x16xf32>, vector<16x16xf32> -> vector<16x16xf32>
      %cst_110 = arith.constant 2.550000e+02 : f32
      %152 = vector.broadcast %cst_110 : f32 to vector<16x16xf32>
      %153 = arith.divf %151, %152 : vector<16x16xf32>
      %cst_111 = arith.constant 2.550000e+02 : f32
      %154 = vector.broadcast %cst_111 : f32 to vector<16x16xf32>
      %155 = arith.mulf %153, %154 : vector<16x16xf32>
      %c0_i32_112 = arith.constant 0 : i32
      %156 = arith.cmpi eq, %0, %c0_i32_112 : i32
      %157 = arith.extui %156 : i1 to i32
      %c0_i32_113 = arith.constant 0 : i32
      %158 = arith.cmpi ne, %157, %c0_i32_113 : i32
      scf.if %158 {
        %c1_116 = arith.constant 1 : index
        %c3_117 = arith.constant 3 : index
        %c0_118 = arith.constant 0 : index
        %c0_119 = arith.constant 0 : index
        %162 = vector.load %arg4[%c1_116, %c3_117, %c0_118, %c0_119] : memref<2x4x16x16xf32, #tpu.memory_space<vmem>>, vector<1x1x16x16xf32>
        %163 = vector.shape_cast %162 : vector<1x1x16x16xf32> to vector<16x16xf32>
        %164 = vector.shape_cast %155 : vector<16x16xf32> to vector<1x1x16x16xf32>
        tpu.vector_store %arg4[%c1_116, %c3_117, %c0_118, %c0_119], %164 {strides = array<i32>} : memref<2x4x16x16xf32, #tpu.memory_space<vmem>>, vector<1x1x16x16xf32>,
      } else {
      }
      %c0_i32_114 = arith.constant 0 : i32
      %159 = arith.cmpi ne, %0, %c0_i32_114 : i32
      %160 = arith.extui %159 : i1 to i32
      %c0_i32_115 = arith.constant 0 : i32
      %161 = arith.cmpi ne, %160, %c0_i32_115 : i32
      scf.if %161 {
        %162 = tpu.transpose %155, [1, 0] : vector<16x16xf32> -> vector<16x16xf32>
        %c1_116 = arith.constant 1 : index
        %c3_117 = arith.constant 3 : index
        %c0_118 = arith.constant 0 : index
        %c0_119 = arith.constant 0 : index
        %163 = vector.load %arg4[%c1_116, %c3_117, %c0_118, %c0_119] : memref<2x4x16x16xf32, #tpu.memory_space<vmem>>, vector<1x1x16x16xf32>
        %164 = vector.shape_cast %163 : vector<1x1x16x16xf32> to vector<16x16xf32>
        %165 = vector.shape_cast %162 : vector<16x16xf32> to vector<1x1x16x16xf32>
        tpu.vector_store %arg4[%c1_116, %c3_117, %c0_118, %c0_119], %165 {strides = array<i32>} : memref<2x4x16x16xf32, #tpu.memory_space<vmem>>, vector<1x1x16x16xf32>,
      } else {
      }
    } else {
    }
    %c0_i32_10 = arith.constant 0 : i32
    %23 = arith.cmpi eq, %1, %c0_i32_10 : i32
    %c0_i32_11 = arith.constant 0 : i32
    %24 = arith.cmpi eq, %2, %c0_i32_11 : i32
    %25 = arith.andi %23, %24 : i1
    %26 = arith.extui %25 : i1 to i32
    %c0_i32_12 = arith.constant 0 : i32
    %27 = arith.cmpi ne, %26, %c0_i32_12 : i32
    scf.if %27 {
      %c0_22 = arith.constant 0 : index
      %c0_23 = arith.constant 0 : index
      %c0_24 = arith.constant 0 : index
      %c0_25 = arith.constant 0 : index
      %43 = vector.load %arg3[%c0_22, %c0_23, %c0_24, %c0_25] : memref<2x1x16x16xf32, #tpu.memory_space<vmem>>, vector<1x1x16x16xf32>
      %44 = vector.shape_cast %43 : vector<1x1x16x16xf32> to vector<16x16xf32>
      %c0_i32_26 = arith.constant 0 : i32
      %45 = arith.cmpi eq, %0, %c0_i32_26 : i32
      %46 = arith.extui %45 : i1 to i32
      %c0_i32_27 = arith.constant 0 : i32
      %47 = arith.cmpi ne, %46, %c0_i32_27 : i32
      scf.if %47 {
        %c0_38 = arith.constant 0 : index
        %c0_39 = arith.constant 0 : index
        %c0_40 = arith.constant 0 : index
        %c0_41 = arith.constant 0 : index
        %59 = vector.load %arg5[%c0_38, %c0_39, %c0_40, %c0_41] : memref<2x1x16x16xf32, #tpu.memory_space<vmem>>, vector<1x1x16x16xf32>
        %60 = vector.shape_cast %59 : vector<1x1x16x16xf32> to vector<16x16xf32>
        %61 = vector.shape_cast %44 : vector<16x16xf32> to vector<1x1x16x16xf32>
        tpu.vector_store %arg5[%c0_38, %c0_39, %c0_40, %c0_41], %61 {strides = array<i32>} : memref<2x1x16x16xf32, #tpu.memory_space<vmem>>, vector<1x1x16x16xf32>,
      } else {
      }
      %c0_i32_28 = arith.constant 0 : i32
      %48 = arith.cmpi ne, %0, %c0_i32_28 : i32
      %49 = arith.extui %48 : i1 to i32
      %c0_i32_29 = arith.constant 0 : i32
      %50 = arith.cmpi ne, %49, %c0_i32_29 : i32
      scf.if %50 {
        %59 = tpu.transpose %44, [1, 0] : vector<16x16xf32> -> vector<16x16xf32>
        %c0_38 = arith.constant 0 : index
        %c0_39 = arith.constant 0 : index
        %c0_40 = arith.constant 0 : index
        %c0_41 = arith.constant 0 : index
        %60 = vector.load %arg5[%c0_38, %c0_39, %c0_40, %c0_41] : memref<2x1x16x16xf32, #tpu.memory_space<vmem>>, vector<1x1x16x16xf32>
        %61 = vector.shape_cast %60 : vector<1x1x16x16xf32> to vector<16x16xf32>
        %62 = vector.shape_cast %59 : vector<16x16xf32> to vector<1x1x16x16xf32>
        tpu.vector_store %arg5[%c0_38, %c0_39, %c0_40, %c0_41], %62 {strides = array<i32>} : memref<2x1x16x16xf32, #tpu.memory_space<vmem>>, vector<1x1x16x16xf32>,
      } else {
      }
      %c1_30 = arith.constant 1 : index
      %c0_31 = arith.constant 0 : index
      %c0_32 = arith.constant 0 : index
      %c0_33 = arith.constant 0 : index
      %51 = vector.load %arg3[%c1_30, %c0_31, %c0_32, %c0_33] : memref<2x1x16x16xf32, #tpu.memory_space<vmem>>, vector<1x1x16x16xf32>
      %52 = vector.shape_cast %51 : vector<1x1x16x16xf32> to vector<16x16xf32>
      %c0_i32_34 = arith.constant 0 : i32
      %53 = arith.cmpi eq, %0, %c0_i32_34 : i32
      %54 = arith.extui %53 : i1 to i32
      %c0_i32_35 = arith.constant 0 : i32
      %55 = arith.cmpi ne, %54, %c0_i32_35 : i32
      scf.if %55 {
        %c1_38 = arith.constant 1 : index
        %c0_39 = arith.constant 0 : index
        %c0_40 = arith.constant 0 : index
        %c0_41 = arith.constant 0 : index
        %59 = vector.load %arg5[%c1_38, %c0_39, %c0_40, %c0_41] : memref<2x1x16x16xf32, #tpu.memory_space<vmem>>, vector<1x1x16x16xf32>
        %60 = vector.shape_cast %59 : vector<1x1x16x16xf32> to vector<16x16xf32>
        %61 = vector.shape_cast %52 : vector<16x16xf32> to vector<1x1x16x16xf32>
        tpu.vector_store %arg5[%c1_38, %c0_39, %c0_40, %c0_41], %61 {strides = array<i32>} : memref<2x1x16x16xf32, #tpu.memory_space<vmem>>, vector<1x1x16x16xf32>,
      } else {
      }
      %c0_i32_36 = arith.constant 0 : i32
      %56 = arith.cmpi ne, %0, %c0_i32_36 : i32
      %57 = arith.extui %56 : i1 to i32
      %c0_i32_37 = arith.constant 0 : i32
      %58 = arith.cmpi ne, %57, %c0_i32_37 : i32
      scf.if %58 {
        %59 = tpu.transpose %52, [1, 0] : vector<16x16xf32> -> vector<16x16xf32>
        %c1_38 = arith.constant 1 : index
        %c0_39 = arith.constant 0 : index
        %c0_40 = arith.constant 0 : index
        %c0_41 = arith.constant 0 : index
        %60 = vector.load %arg5[%c1_38, %c0_39, %c0_40, %c0_41] : memref<2x1x16x16xf32, #tpu.memory_space<vmem>>, vector<1x1x16x16xf32>
        %61 = vector.shape_cast %60 : vector<1x1x16x16xf32> to vector<16x16xf32>
        %62 = vector.shape_cast %59 : vector<16x16xf32> to vector<1x1x16x16xf32>
        tpu.vector_store %arg5[%c1_38, %c0_39, %c0_40, %c0_41], %62 {strides = array<i32>} : memref<2x1x16x16xf32, #tpu.memory_space<vmem>>, vector<1x1x16x16xf32>,
      } else {
      }
    } else {
    }
    %c0_i32_13 = arith.constant 0 : i32
    %28 = arith.cmpi eq, %1, %c0_i32_13 : i32
    %c1_i32_14 = arith.constant 1 : i32
    %29 = arith.cmpi eq, %2, %c1_i32_14 : i32
    %30 = arith.andi %28, %29 : i1
    %31 = arith.extui %30 : i1 to i32
    %c0_i32_15 = arith.constant 0 : i32
    %32 = arith.cmpi ne, %31, %c0_i32_15 : i32
    scf.if %32 {
      %43 = tpu.iota {dimensions = array<i32: 0>} : vector<16x16xi32>
      %44 = tpu.iota {dimensions = array<i32: 1>} : vector<16x16xi32>
      %45 = arith.addi %43, %44 : vector<16x16xi32>
      %c15_i32 = arith.constant 15 : i32
      %46 = vector.broadcast %c15_i32 : i32 to vector<16x16xi32>
      %47 = arith.cmpi eq, %45, %46 : vector<16x16xi32>
      %48 = arith.extui %47 : vector<16x16xi1> to vector<16x16xi32>
      %49 = arith.sitofp %48 : vector<16x16xi32> to vector<16x16xf32>
      %c0_22 = arith.constant 0 : index
      %c0_23 = arith.constant 0 : index
      %c0_24 = arith.constant 0 : index
      %c0_25 = arith.constant 0 : index
      %50 = vector.load %arg3[%c0_22, %c0_23, %c0_24, %c0_25] : memref<2x1x16x16xf32, #tpu.memory_space<vmem>>, vector<1x1x16x16xf32>
      %51 = vector.shape_cast %50 : vector<1x1x16x16xf32> to vector<16x16xf32>
      %cst = arith.constant dense<0.000000e+00> : vector<16x16xf32>
      %52 = tpu.matmul %51, %49, %cst {dimension_numbers = #tpu.dot_dimension_numbers<[1], [0], [0], [1], [0, 0, 1, 1], [], []>} : vector<16x16xf32>, vector<16x16xf32>, vector<16x16xf32> -> vector<16x16xf32>
      %c0_i32_26 = arith.constant 0 : i32
      %53 = arith.cmpi eq, %0, %c0_i32_26 : i32
      %54 = arith.extui %53 : i1 to i32
      %c0_i32_27 = arith.constant 0 : i32
      %55 = arith.cmpi ne, %54, %c0_i32_27 : i32
      scf.if %55 {
        %c0_39 = arith.constant 0 : index
        %c0_40 = arith.constant 0 : index
        %c0_41 = arith.constant 0 : index
        %c0_42 = arith.constant 0 : index
        %68 = vector.load %arg5[%c0_39, %c0_40, %c0_41, %c0_42] : memref<2x1x16x16xf32, #tpu.memory_space<vmem>>, vector<1x1x16x16xf32>
        %69 = vector.shape_cast %68 : vector<1x1x16x16xf32> to vector<16x16xf32>
        %70 = vector.shape_cast %52 : vector<16x16xf32> to vector<1x1x16x16xf32>
        tpu.vector_store %arg5[%c0_39, %c0_40, %c0_41, %c0_42], %70 {strides = array<i32>} : memref<2x1x16x16xf32, #tpu.memory_space<vmem>>, vector<1x1x16x16xf32>,
      } else {
      }
      %c0_i32_28 = arith.constant 0 : i32
      %56 = arith.cmpi ne, %0, %c0_i32_28 : i32
      %57 = arith.extui %56 : i1 to i32
      %c0_i32_29 = arith.constant 0 : i32
      %58 = arith.cmpi ne, %57, %c0_i32_29 : i32
      scf.if %58 {
        %68 = tpu.transpose %52, [1, 0] : vector<16x16xf32> -> vector<16x16xf32>
        %c0_39 = arith.constant 0 : index
        %c0_40 = arith.constant 0 : index
        %c0_41 = arith.constant 0 : index
        %c0_42 = arith.constant 0 : index
        %69 = vector.load %arg5[%c0_39, %c0_40, %c0_41, %c0_42] : memref<2x1x16x16xf32, #tpu.memory_space<vmem>>, vector<1x1x16x16xf32>
        %70 = vector.shape_cast %69 : vector<1x1x16x16xf32> to vector<16x16xf32>
        %71 = vector.shape_cast %68 : vector<16x16xf32> to vector<1x1x16x16xf32>
        tpu.vector_store %arg5[%c0_39, %c0_40, %c0_41, %c0_42], %71 {strides = array<i32>} : memref<2x1x16x16xf32, #tpu.memory_space<vmem>>, vector<1x1x16x16xf32>,
      } else {
      }
      %c1_30 = arith.constant 1 : index
      %c0_31 = arith.constant 0 : index
      %c0_32 = arith.constant 0 : index
      %c0_33 = arith.constant 0 : index
      %59 = vector.load %arg3[%c1_30, %c0_31, %c0_32, %c0_33] : memref<2x1x16x16xf32, #tpu.memory_space<vmem>>, vector<1x1x16x16xf32>
      %60 = vector.shape_cast %59 : vector<1x1x16x16xf32> to vector<16x16xf32>
      %cst_34 = arith.constant dense<0.000000e+00> : vector<16x16xf32>
      %61 = tpu.matmul %60, %49, %cst_34 {dimension_numbers = #tpu.dot_dimension_numbers<[1], [0], [0], [1], [0, 0, 1, 1], [], []>} : vector<16x16xf32>, vector<16x16xf32>, vector<16x16xf32> -> vector<16x16xf32>
      %c0_i32_35 = arith.constant 0 : i32
      %62 = arith.cmpi eq, %0, %c0_i32_35 : i32
      %63 = arith.extui %62 : i1 to i32
      %c0_i32_36 = arith.constant 0 : i32
      %64 = arith.cmpi ne, %63, %c0_i32_36 : i32
      scf.if %64 {
        %c1_39 = arith.constant 1 : index
        %c0_40 = arith.constant 0 : index
        %c0_41 = arith.constant 0 : index
        %c0_42 = arith.constant 0 : index
        %68 = vector.load %arg5[%c1_39, %c0_40, %c0_41, %c0_42] : memref<2x1x16x16xf32, #tpu.memory_space<vmem>>, vector<1x1x16x16xf32>
        %69 = vector.shape_cast %68 : vector<1x1x16x16xf32> to vector<16x16xf32>
        %70 = vector.shape_cast %61 : vector<16x16xf32> to vector<1x1x16x16xf32>
        tpu.vector_store %arg5[%c1_39, %c0_40, %c0_41, %c0_42], %70 {strides = array<i32>} : memref<2x1x16x16xf32, #tpu.memory_space<vmem>>, vector<1x1x16x16xf32>,
      } else {
      }
      %c0_i32_37 = arith.constant 0 : i32
      %65 = arith.cmpi ne, %0, %c0_i32_37 : i32
      %66 = arith.extui %65 : i1 to i32
      %c0_i32_38 = arith.constant 0 : i32
      %67 = arith.cmpi ne, %66, %c0_i32_38 : i32
      scf.if %67 {
        %68 = tpu.transpose %61, [1, 0] : vector<16x16xf32> -> vector<16x16xf32>
        %c1_39 = arith.constant 1 : index
        %c0_40 = arith.constant 0 : index
        %c0_41 = arith.constant 0 : index
        %c0_42 = arith.constant 0 : index
        %69 = vector.load %arg5[%c1_39, %c0_40, %c0_41, %c0_42] : memref<2x1x16x16xf32, #tpu.memory_space<vmem>>, vector<1x1x16x16xf32>
        %70 = vector.shape_cast %69 : vector<1x1x16x16xf32> to vector<16x16xf32>
        %71 = vector.shape_cast %68 : vector<16x16xf32> to vector<1x1x16x16xf32>
        tpu.vector_store %arg5[%c1_39, %c0_40, %c0_41, %c0_42], %71 {strides = array<i32>} : memref<2x1x16x16xf32, #tpu.memory_space<vmem>>, vector<1x1x16x16xf32>,
      } else {
      }
    } else {
    }
    %c1_i32_16 = arith.constant 1 : i32
    %33 = arith.cmpi eq, %1, %c1_i32_16 : i32
    %c0_i32_17 = arith.constant 0 : i32
    %34 = arith.cmpi eq, %2, %c0_i32_17 : i32
    %35 = arith.andi %33, %34 : i1
    %36 = arith.extui %35 : i1 to i32
    %c0_i32_18 = arith.constant 0 : i32
    %37 = arith.cmpi ne, %36, %c0_i32_18 : i32
    scf.if %37 {
      %43 = tpu.iota {dimensions = array<i32: 0>} : vector<16x16xi32>
      %44 = tpu.iota {dimensions = array<i32: 1>} : vector<16x16xi32>
      %45 = arith.addi %43, %44 : vector<16x16xi32>
      %c15_i32 = arith.constant 15 : i32
      %46 = vector.broadcast %c15_i32 : i32 to vector<16x16xi32>
      %47 = arith.cmpi eq, %45, %46 : vector<16x16xi32>
      %48 = arith.extui %47 : vector<16x16xi1> to vector<16x16xi32>
      %49 = arith.sitofp %48 : vector<16x16xi32> to vector<16x16xf32>
      %c0_22 = arith.constant 0 : index
      %c0_23 = arith.constant 0 : index
      %c0_24 = arith.constant 0 : index
      %c0_25 = arith.constant 0 : index
      %50 = vector.load %arg3[%c0_22, %c0_23, %c0_24, %c0_25] : memref<2x1x16x16xf32, #tpu.memory_space<vmem>>, vector<1x1x16x16xf32>
      %51 = vector.shape_cast %50 : vector<1x1x16x16xf32> to vector<16x16xf32>
      %cst = arith.constant dense<0.000000e+00> : vector<16x16xf32>
      %52 = tpu.matmul %49, %51, %cst {dimension_numbers = #tpu.dot_dimension_numbers<[1], [0], [0], [1], [0, 0, 1, 1], [], []>} : vector<16x16xf32>, vector<16x16xf32>, vector<16x16xf32> -> vector<16x16xf32>
      %c0_i32_26 = arith.constant 0 : i32
      %53 = arith.cmpi eq, %0, %c0_i32_26 : i32
      %54 = arith.extui %53 : i1 to i32
      %c0_i32_27 = arith.constant 0 : i32
      %55 = arith.cmpi ne, %54, %c0_i32_27 : i32
      scf.if %55 {
        %c0_39 = arith.constant 0 : index
        %c0_40 = arith.constant 0 : index
        %c0_41 = arith.constant 0 : index
        %c0_42 = arith.constant 0 : index
        %68 = vector.load %arg5[%c0_39, %c0_40, %c0_41, %c0_42] : memref<2x1x16x16xf32, #tpu.memory_space<vmem>>, vector<1x1x16x16xf32>
        %69 = vector.shape_cast %68 : vector<1x1x16x16xf32> to vector<16x16xf32>
        %70 = vector.shape_cast %52 : vector<16x16xf32> to vector<1x1x16x16xf32>
        tpu.vector_store %arg5[%c0_39, %c0_40, %c0_41, %c0_42], %70 {strides = array<i32>} : memref<2x1x16x16xf32, #tpu.memory_space<vmem>>, vector<1x1x16x16xf32>,
      } else {
      }
      %c0_i32_28 = arith.constant 0 : i32
      %56 = arith.cmpi ne, %0, %c0_i32_28 : i32
      %57 = arith.extui %56 : i1 to i32
      %c0_i32_29 = arith.constant 0 : i32
      %58 = arith.cmpi ne, %57, %c0_i32_29 : i32
      scf.if %58 {
        %68 = tpu.transpose %52, [1, 0] : vector<16x16xf32> -> vector<16x16xf32>
        %c0_39 = arith.constant 0 : index
        %c0_40 = arith.constant 0 : index
        %c0_41 = arith.constant 0 : index
        %c0_42 = arith.constant 0 : index
        %69 = vector.load %arg5[%c0_39, %c0_40, %c0_41, %c0_42] : memref<2x1x16x16xf32, #tpu.memory_space<vmem>>, vector<1x1x16x16xf32>
        %70 = vector.shape_cast %69 : vector<1x1x16x16xf32> to vector<16x16xf32>
        %71 = vector.shape_cast %68 : vector<16x16xf32> to vector<1x1x16x16xf32>
        tpu.vector_store %arg5[%c0_39, %c0_40, %c0_41, %c0_42], %71 {strides = array<i32>} : memref<2x1x16x16xf32, #tpu.memory_space<vmem>>, vector<1x1x16x16xf32>,
      } else {
      }
      %c1_30 = arith.constant 1 : index
      %c0_31 = arith.constant 0 : index
      %c0_32 = arith.constant 0 : index
      %c0_33 = arith.constant 0 : index
      %59 = vector.load %arg3[%c1_30, %c0_31, %c0_32, %c0_33] : memref<2x1x16x16xf32, #tpu.memory_space<vmem>>, vector<1x1x16x16xf32>
      %60 = vector.shape_cast %59 : vector<1x1x16x16xf32> to vector<16x16xf32>
      %cst_34 = arith.constant dense<0.000000e+00> : vector<16x16xf32>
      %61 = tpu.matmul %49, %60, %cst_34 {dimension_numbers = #tpu.dot_dimension_numbers<[1], [0], [0], [1], [0, 0, 1, 1], [], []>} : vector<16x16xf32>, vector<16x16xf32>, vector<16x16xf32> -> vector<16x16xf32>
      %c0_i32_35 = arith.constant 0 : i32
      %62 = arith.cmpi eq, %0, %c0_i32_35 : i32
      %63 = arith.extui %62 : i1 to i32
      %c0_i32_36 = arith.constant 0 : i32
      %64 = arith.cmpi ne, %63, %c0_i32_36 : i32
      scf.if %64 {
        %c1_39 = arith.constant 1 : index
        %c0_40 = arith.constant 0 : index
        %c0_41 = arith.constant 0 : index
        %c0_42 = arith.constant 0 : index
        %68 = vector.load %arg5[%c1_39, %c0_40, %c0_41, %c0_42] : memref<2x1x16x16xf32, #tpu.memory_space<vmem>>, vector<1x1x16x16xf32>
        %69 = vector.shape_cast %68 : vector<1x1x16x16xf32> to vector<16x16xf32>
        %70 = vector.shape_cast %61 : vector<16x16xf32> to vector<1x1x16x16xf32>
        tpu.vector_store %arg5[%c1_39, %c0_40, %c0_41, %c0_42], %70 {strides = array<i32>} : memref<2x1x16x16xf32, #tpu.memory_space<vmem>>, vector<1x1x16x16xf32>,
      } else {
      }
      %c0_i32_37 = arith.constant 0 : i32
      %65 = arith.cmpi ne, %0, %c0_i32_37 : i32
      %66 = arith.extui %65 : i1 to i32
      %c0_i32_38 = arith.constant 0 : i32
      %67 = arith.cmpi ne, %66, %c0_i32_38 : i32
      scf.if %67 {
        %68 = tpu.transpose %61, [1, 0] : vector<16x16xf32> -> vector<16x16xf32>
        %c1_39 = arith.constant 1 : index
        %c0_40 = arith.constant 0 : index
        %c0_41 = arith.constant 0 : index
        %c0_42 = arith.constant 0 : index
        %69 = vector.load %arg5[%c1_39, %c0_40, %c0_41, %c0_42] : memref<2x1x16x16xf32, #tpu.memory_space<vmem>>, vector<1x1x16x16xf32>
        %70 = vector.shape_cast %69 : vector<1x1x16x16xf32> to vector<16x16xf32>
        %71 = vector.shape_cast %68 : vector<16x16xf32> to vector<1x1x16x16xf32>
        tpu.vector_store %arg5[%c1_39, %c0_40, %c0_41, %c0_42], %71 {strides = array<i32>} : memref<2x1x16x16xf32, #tpu.memory_space<vmem>>, vector<1x1x16x16xf32>,
      } else {
      }
    } else {
    }
    %c1_i32_19 = arith.constant 1 : i32
    %38 = arith.cmpi eq, %1, %c1_i32_19 : i32
    %c1_i32_20 = arith.constant 1 : i32
    %39 = arith.cmpi eq, %2, %c1_i32_20 : i32
    %40 = arith.andi %38, %39 : i1
    %41 = arith.extui %40 : i1 to i32
    %c0_i32_21 = arith.constant 0 : i32
    %42 = arith.cmpi ne, %41, %c0_i32_21 : i32
    scf.if %42 {
      %43 = tpu.iota {dimensions = array<i32: 0>} : vector<16x16xi32>
      %44 = tpu.iota {dimensions = array<i32: 1>} : vector<16x16xi32>
      %45 = arith.addi %43, %44 : vector<16x16xi32>
      %c15_i32 = arith.constant 15 : i32
      %46 = vector.broadcast %c15_i32 : i32 to vector<16x16xi32>
      %47 = arith.cmpi eq, %45, %46 : vector<16x16xi32>
      %48 = arith.extui %47 : vector<16x16xi1> to vector<16x16xi32>
      %49 = arith.sitofp %48 : vector<16x16xi32> to vector<16x16xf32>
      %c0_22 = arith.constant 0 : index
      %c0_23 = arith.constant 0 : index
      %c0_24 = arith.constant 0 : index
      %c0_25 = arith.constant 0 : index
      %50 = vector.load %arg3[%c0_22, %c0_23, %c0_24, %c0_25] : memref<2x1x16x16xf32, #tpu.memory_space<vmem>>, vector<1x1x16x16xf32>
      %51 = vector.shape_cast %50 : vector<1x1x16x16xf32> to vector<16x16xf32>
      %cst = arith.constant dense<0.000000e+00> : vector<16x16xf32>
      %52 = tpu.matmul %49, %51, %cst {dimension_numbers = #tpu.dot_dimension_numbers<[1], [0], [0], [1], [0, 0, 1, 1], [], []>} : vector<16x16xf32>, vector<16x16xf32>, vector<16x16xf32> -> vector<16x16xf32>
      %cst_26 = arith.constant dense<0.000000e+00> : vector<16x16xf32>
      %53 = tpu.matmul %52, %49, %cst_26 {dimension_numbers = #tpu.dot_dimension_numbers<[1], [0], [0], [1], [0, 0, 1, 1], [], []>} : vector<16x16xf32>, vector<16x16xf32>, vector<16x16xf32> -> vector<16x16xf32>
      %c0_i32_27 = arith.constant 0 : i32
      %54 = arith.cmpi eq, %0, %c0_i32_27 : i32
      %55 = arith.extui %54 : i1 to i32
      %c0_i32_28 = arith.constant 0 : i32
      %56 = arith.cmpi ne, %55, %c0_i32_28 : i32
      scf.if %56 {
        %c0_41 = arith.constant 0 : index
        %c0_42 = arith.constant 0 : index
        %c0_43 = arith.constant 0 : index
        %c0_44 = arith.constant 0 : index
        %70 = vector.load %arg5[%c0_41, %c0_42, %c0_43, %c0_44] : memref<2x1x16x16xf32, #tpu.memory_space<vmem>>, vector<1x1x16x16xf32>
        %71 = vector.shape_cast %70 : vector<1x1x16x16xf32> to vector<16x16xf32>
        %72 = vector.shape_cast %53 : vector<16x16xf32> to vector<1x1x16x16xf32>
        tpu.vector_store %arg5[%c0_41, %c0_42, %c0_43, %c0_44], %72 {strides = array<i32>} : memref<2x1x16x16xf32, #tpu.memory_space<vmem>>, vector<1x1x16x16xf32>,
      } else {
      }
      %c0_i32_29 = arith.constant 0 : i32
      %57 = arith.cmpi ne, %0, %c0_i32_29 : i32
      %58 = arith.extui %57 : i1 to i32
      %c0_i32_30 = arith.constant 0 : i32
      %59 = arith.cmpi ne, %58, %c0_i32_30 : i32
      scf.if %59 {
        %70 = tpu.transpose %53, [1, 0] : vector<16x16xf32> -> vector<16x16xf32>
        %c0_41 = arith.constant 0 : index
        %c0_42 = arith.constant 0 : index
        %c0_43 = arith.constant 0 : index
        %c0_44 = arith.constant 0 : index
        %71 = vector.load %arg5[%c0_41, %c0_42, %c0_43, %c0_44] : memref<2x1x16x16xf32, #tpu.memory_space<vmem>>, vector<1x1x16x16xf32>
        %72 = vector.shape_cast %71 : vector<1x1x16x16xf32> to vector<16x16xf32>
        %73 = vector.shape_cast %70 : vector<16x16xf32> to vector<1x1x16x16xf32>
        tpu.vector_store %arg5[%c0_41, %c0_42, %c0_43, %c0_44], %73 {strides = array<i32>} : memref<2x1x16x16xf32, #tpu.memory_space<vmem>>, vector<1x1x16x16xf32>,
      } else {
      }
      %c1_31 = arith.constant 1 : index
      %c0_32 = arith.constant 0 : index
      %c0_33 = arith.constant 0 : index
      %c0_34 = arith.constant 0 : index
      %60 = vector.load %arg3[%c1_31, %c0_32, %c0_33, %c0_34] : memref<2x1x16x16xf32, #tpu.memory_space<vmem>>, vector<1x1x16x16xf32>
      %61 = vector.shape_cast %60 : vector<1x1x16x16xf32> to vector<16x16xf32>
      %cst_35 = arith.constant dense<0.000000e+00> : vector<16x16xf32>
      %62 = tpu.matmul %49, %61, %cst_35 {dimension_numbers = #tpu.dot_dimension_numbers<[1], [0], [0], [1], [0, 0, 1, 1], [], []>} : vector<16x16xf32>, vector<16x16xf32>, vector<16x16xf32> -> vector<16x16xf32>
      %cst_36 = arith.constant dense<0.000000e+00> : vector<16x16xf32>
      %63 = tpu.matmul %62, %49, %cst_36 {dimension_numbers = #tpu.dot_dimension_numbers<[1], [0], [0], [1], [0, 0, 1, 1], [], []>} : vector<16x16xf32>, vector<16x16xf32>, vector<16x16xf32> -> vector<16x16xf32>
      %c0_i32_37 = arith.constant 0 : i32
      %64 = arith.cmpi eq, %0, %c0_i32_37 : i32
      %65 = arith.extui %64 : i1 to i32
      %c0_i32_38 = arith.constant 0 : i32
      %66 = arith.cmpi ne, %65, %c0_i32_38 : i32
      scf.if %66 {
        %c1_41 = arith.constant 1 : index
        %c0_42 = arith.constant 0 : index
        %c0_43 = arith.constant 0 : index
        %c0_44 = arith.constant 0 : index
        %70 = vector.load %arg5[%c1_41, %c0_42, %c0_43, %c0_44] : memref<2x1x16x16xf32, #tpu.memory_space<vmem>>, vector<1x1x16x16xf32>
        %71 = vector.shape_cast %70 : vector<1x1x16x16xf32> to vector<16x16xf32>
        %72 = vector.shape_cast %63 : vector<16x16xf32> to vector<1x1x16x16xf32>
        tpu.vector_store %arg5[%c1_41, %c0_42, %c0_43, %c0_44], %72 {strides = array<i32>} : memref<2x1x16x16xf32, #tpu.memory_space<vmem>>, vector<1x1x16x16xf32>,
      } else {
      }
      %c0_i32_39 = arith.constant 0 : i32
      %67 = arith.cmpi ne, %0, %c0_i32_39 : i32
      %68 = arith.extui %67 : i1 to i32
      %c0_i32_40 = arith.constant 0 : i32
      %69 = arith.cmpi ne, %68, %c0_i32_40 : i32
      scf.if %69 {
        %70 = tpu.transpose %63, [1, 0] : vector<16x16xf32> -> vector<16x16xf32>
        %c1_41 = arith.constant 1 : index
        %c0_42 = arith.constant 0 : index
        %c0_43 = arith.constant 0 : index
        %c0_44 = arith.constant 0 : index
        %71 = vector.load %arg5[%c1_41, %c0_42, %c0_43, %c0_44] : memref<2x1x16x16xf32, #tpu.memory_space<vmem>>, vector<1x1x16x16xf32>
        %72 = vector.shape_cast %71 : vector<1x1x16x16xf32> to vector<16x16xf32>
        %73 = vector.shape_cast %70 : vector<16x16xf32> to vector<1x1x16x16xf32>
        tpu.vector_store %arg5[%c1_41, %c0_42, %c0_43, %c0_44], %73 {strides = array<i32>} : memref<2x1x16x16xf32, #tpu.memory_space<vmem>>, vector<1x1x16x16xf32>,
      } else {
      }
    } else {
    }
    return
  }
  func.func @transform_0(%arg0: i32, %arg1: memref<3xi32, #tpu.memory_space<smem>>) -> (i32, i32, i32, i32) {
    %c0_i32 = arith.constant 0 : i32
    %c0_i32_0 = arith.constant 0 : i32
    %c0_i32_1 = arith.constant 0 : i32
    %c0_i32_2 = arith.constant 0 : i32
    return %arg0, %c0_i32, %c0_i32_0, %c0_i32_1 : i32, i32, i32, i32
  }
  func.func @transform_1(%arg0: i32, %arg1: memref<3xi32, #tpu.memory_space<smem>>) -> (i32, i32, i32, i32) {
    %c0_i32 = arith.constant 0 : i32
    %c0_i32_0 = arith.constant 0 : i32
    %c0_i32_1 = arith.constant 0 : i32
    %c0_i32_2 = arith.constant 0 : i32
    return %arg0, %c0_i32, %c0_i32_0, %c0_i32_1 : i32, i32, i32, i32
  }
  func.func @transform_2(%arg0: i32, %arg1: memref<3xi32, #tpu.memory_space<smem>>) -> (i32, i32, i32, i32) {
    %c0_i32 = arith.constant 0 : i32
    %c0_i32_0 = arith.constant 0 : i32
    %c0_i32_1 = arith.constant 0 : i32
    %c0_i32_2 = arith.constant 0 : i32
    return %arg0, %c0_i32, %c0_i32_0, %c0_i32_1 : i32, i32, i32, i32
  }
  func.func @transform_3(%arg0: i32, %arg1: memref<3xi32, #tpu.memory_space<smem>>) -> (i32, i32, i32, i32) {
    %c0_i32 = arith.constant 0 : i32
    %c0_i32_0 = arith.constant 0 : i32
    %c0_i32_1 = arith.constant 0 : i32
    %c0_i32_2 = arith.constant 0 : i32
    return %arg0, %c0_i32, %c0_i32_0, %c0_i32_1 : i32, i32, i32, i32
  }
}

</mosaic_0001>

<bundles_post_ra>
// kernel: tpu_custom_call.1
= control target key start
LH: loop header
LB: loop body
LE: loop exit
PB: predicated region body
PF: predicated region fallthrough
CT: control target
= control target key end

     0   :  { %s3728_s18 = smov [#allocation3]   ;;  %s4471_s0 = inlined_call_operand.hbm [shape: s32[3], index: 0, kind: input, shape index: {}]   ;;  %s4472_s1 = inlined_call_operand.hbm [shape: f32[2,4,16,16], index: 1, kind: input, shape index: {}]   ;;  %s4473_s2 = inlined_call_operand.hbm [shape: f32[2,1,16,16], index: 2, kind: input, shape index: {}]   ;;  %s4474_s3 = inlined_call_operand.hbm [shape: f32[2,4,16,16], index: 3, kind: output, shape index: {0}]   ;;  %s4475_s4 = inlined_call_operand.hbm [shape: f32[2,1,16,16], index: 4, kind: output, shape index: {1}]  }
   0x1   :  { %s11_s17 = sshll.u32 %s4471_s0, 4  ;;  %s12_s17 = int_to_ptr.hbm [resolvable:$true] %s11_s17 }
   0x2   :  { %14 = dma.hbm_to_smem %s12_s17, 16, %s3728_s18, [#allocation2] }
   0x3   :  { %3718 = dma.done.wait [#allocation2], 16 }
   0x4   :  { %3719 = vsyncadd [#allocation2], 4294967280 }
   0x5   :  { %17 = sfence }
   0x6   :  { %18 = vsyncpa [#allocation5], 0 }
   0x7   :  { %19 = vsyncpa [#allocation8], 0 }
   0x8   :  { %20 = vsyncpa [#allocation6], 0 }
   0x9   :  { %21 = vsyncpa [#allocation11], 0  ;;  %s26_s21 = sshll.u32 %s4472_s1, 4  ;;  %s3729_s22 = smov [#allocation4]   ;;  %s27_s21 = int_to_ptr.hbm [resolvable:$true] %s26_s21 }
   0xa   :  { %s28_s23 = sshll.u32 %s3729_s22, 4  ;;  %s39_s25 = sshll.u32 %s4473_s2, 4  ;;  %s29_s23 = int_to_ptr.vmem [resolvable:$true] %s28_s23  ;;  %s40_s25 = int_to_ptr.hbm [resolvable:$true] %s39_s25 }
   0xb   :  { %s3730_s26 = smov 128   ;;  %s3731_s27 = smov 8  }
   0xc   :  { %34 = dma.hbm_to_vmem [thread:$0]  %s27_s21, 2048, %s29_s23, [#allocation5], %s3730_s26, %s3730_s26, %s3731_s27  }
   0xd   :  { %s3732_s28 = smov [#allocation7]  }
   0xe   :  { %s41_s29 = sshll.u32 %s3732_s28, 4  ;;  %s42_s29 = int_to_ptr.vmem [resolvable:$true] %s41_s29 }
   0xf   :  { %47 = dma.hbm_to_vmem [thread:$0]  %s40_s25, 512, %s42_s29, [#allocation8], %s3730_s26, %s3730_s26, %s3731_s27  }
  0x10   :  { %3720 = dma.done.wait [#allocation5], 2048  }
  0x11   :  { %3721 = vsyncadd [#allocation5], 4294965248 }
  0x12   :  { %3722 = dma.done.wait [#allocation8], 512  }
  0x13   :  { %3723 = vsyncadd [#allocation8], 4294966784  ;;  %s3787_s1 = sld [smem:[#allocation3]] }
  0x14   :  { %s3789_s2 = sld [smem:[#allocation3 + $0x1]] }
  0x15   :  { %s3791_s30 = sld [smem:[#allocation3 + $0x2]] }
  0x1a   :  { %p59_p0 = scmp.eq.s32.totalorder %s3789_s2, 0 }
  0x1b   :  { %p60_p1 = scmp.eq.s32.totalorder %s3791_s30, 0 }
  0x1d   :  { %p3799_p2 = pnand %p60_p1, %p59_p0 }
  0x1e   :  { %p3323_p3 = scmp.ne.s32.totalorder (!%p3799_p2), %s3787_s1, 0 }
  0x1f   :  { %64 = sbr.rel (%p3799_p2) target bundleno = 1549 (0x60d), region = 21 }
  0x24   :  { %v3733_v0 = vmov 255.0   ;;  %v65_v5 = vld [vmem:[#allocation4] sm:$0xff]  ;;  %v66_v6 = vld [vmem:[#allocation4 + $0x8] sm:$0xff] }
  0x25   :  { %3602 = vrcp.f32 %v3733_v0 }
  0x2b   :  { %v3603_v1 = vpop.eup %3602 }
  0x2c   :  { %v68_v2 = vmul.f32 255.0, %v3603_v1  ;;  %vm72_vm0 = vweird.f32 %v3603_v1 }
  0x2e   :  { %v69_v3 = vsub.f32 1.0, %v68_v2 }
  0x30   :  { %v70_v4 = vmul.f32 %v3603_v1, %v69_v3 }
  0x32   :  { %v71_v7 = vadd.f32 %v3603_v1, %v70_v4 }
  0x33   :  { %81 = sbr.rel (%p3323_p3) target bundleno = 59 (0x3b), region = 25 }
  0x34   :  { %v3805_v8 = vsel %vm72_vm0, %v3603_v1, %v71_v7 }
  0x35   :  { %v74_v9 = vmul.f32 %v3805_v8, %v65_v5  ;;  %v75_v10 = vmul.f32 %v3805_v8, %v66_v6 }
  0x37   :  { %v76_v11 = vmul.f32 255.0, %v74_v9  ;;  %v77_v12 = vmul.f32 255.0, %v75_v10 }
  0x38   :  { %vm82_vm1 = vcmask 130048  }
  0x39   :  { %83 = vst.msk [vmem:[#allocation9] sm:$0xff] %vm82_vm1, %v76_v11 }
  0x3a   :  { %84 = vst.msk [vmem:[#allocation9 + $0x8] sm:$0xff] %vm82_vm1, %v77_v12 }
  0x3b PF:  { %p3324_p4 = scmp.eq.s32.totalorder %s3787_s1, 0 }
  0x3d   :  { %88 = sbr.rel (%p3324_p4) target bundleno = 240 (0xf0), region = 29 }
  0x42   :  { %89 = vxpose.xlu0.b32.start [1/2] (short) (narrow) %v76_v11, 16  ;;  %vm121_vm2 = vcmask 130048  }
  0x4a   :  { %90 = vxpose.xlu0.b32.end [2/2] (short) (narrow) %v77_v12, 16 }
  0xe6   :  { %v105_v13 = vpop.trf.xlu0 }
  0xe7   :  { %122 = vst.msk [vmem:[#allocation9] sm:$0xff] %vm121_vm2, %v105_v13 }
  0xee   :  { %v106_v14 = vpop.trf.xlu0 }
  0xef   :  { %123 = vst.msk [vmem:[#allocation9 + $0x8] sm:$0xff] %vm121_vm2, %v106_v14 }
  0xf0 PF:  { %v125_v15 = vld [vmem:[#allocation4 + $0x10] sm:$0xff]  ;;  %v126_v16 = vld [vmem:[#allocation4 + $0x18] sm:$0xff]  ;;  %133 = sbr.rel (%p3323_p3) target bundleno = 248 (0xf8), region = 33 }
  0xf1   :  { %v127_v17 = vmul.f32 %v125_v15, %v3805_v8  ;;  %v128_v18 = vmul.f32 %v126_v16, %v3805_v8 }
  0xf3   :  { %v129_v19 = vmul.f32 255.0, %v127_v17  ;;  %v130_v20 = vmul.f32 255.0, %v128_v18 }
  0xf5   :  { %vm135_vm3 = vcmask 130048  }
  0xf6   :  { %136 = vst.msk [vmem:[#allocation9 + $0x10] sm:$0xff] %vm135_vm3, %v129_v19 }
  0xf7   :  { %137 = vst.msk [vmem:[#allocation9 + $0x18] sm:$0xff] %vm135_vm3, %v130_v20 }
  0xf8 PF:  { %140 = sbr.rel (%p3324_p4) target bundleno = 427 (0x1ab), region = 37 }
  0xfd   :  { %141 = vxpose.xlu0.b32.start [1/2] (short) (narrow) %v129_v19, 16  ;;  %vm174_vm4 = vcmask 130048  }
 0x105   :  { %142 = vxpose.xlu0.b32.end [2/2] (short) (narrow) %v130_v20, 16 }
 0x1a1   :  { %v157_v21 = vpop.trf.xlu0 }
 0x1a2   :  { %175 = vst.msk [vmem:[#allocation9 + $0x10] sm:$0xff] %vm174_vm4, %v157_v21 }
 0x1a9   :  { %v158_v22 = vpop.trf.xlu0 }
 0x1aa   :  { %176 = vst.msk [vmem:[#allocation9 + $0x18] sm:$0xff] %vm174_vm4, %v158_v22 }
 0x1ab PF:  { %v178_v23 = vld [vmem:[#allocation4 + $0x20] sm:$0xff]  ;;  %v179_v24 = vld [vmem:[#allocation4 + $0x28] sm:$0xff]  ;;  %186 = sbr.rel (%p3323_p3) target bundleno = 435 (0x1b3), region = 41 }
 0x1ac   :  { %v180_v25 = vmul.f32 %v178_v23, %v3805_v8  ;;  %v181_v26 = vmul.f32 %v179_v24, %v3805_v8 }
 0x1ae   :  { %v182_v27 = vmul.f32 255.0, %v180_v25  ;;  %v183_v28 = vmul.f32 255.0, %v181_v26 }
 0x1b0   :  { %vm188_vm5 = vcmask 130048  }
 0x1b1   :  { %189 = vst.msk [vmem:[#allocation9 + $0x20] sm:$0xff] %vm188_vm5, %v182_v27 }
 0x1b2   :  { %190 = vst.msk [vmem:[#allocation9 + $0x28] sm:$0xff] %vm188_vm5, %v183_v28 }
 0x1b3 PF:  { %193 = sbr.rel (%p3324_p4) target bundleno = 614 (0x266), region = 45 }
 0x1b8   :  { %194 = vxpose.xlu0.b32.start [1/2] (short) (narrow) %v182_v27, 16  ;;  %vm227_vm6 = vcmask 130048  }
 0x1c0   :  { %195 = vxpose.xlu0.b32.end [2/2] (short) (narrow) %v183_v28, 16 }
 0x25c   :  { %v210_v29 = vpop.trf.xlu0 }
 0x25d   :  { %228 = vst.msk [vmem:[#allocation9 + $0x20] sm:$0xff] %vm227_vm6, %v210_v29 }
 0x264   :  { %v211_v30 = vpop.trf.xlu0 }
 0x265   :  { %229 = vst.msk [vmem:[#allocation9 + $0x28] sm:$0xff] %vm227_vm6, %v211_v30 }
 0x266 PF:  { %v231_v31 = vld [vmem:[#allocation4 + $0x30] sm:$0xff]  ;;  %v232_v32 = vld [vmem:[#allocation4 + $0x38] sm:$0xff]  ;;  %239 = sbr.rel (%p3323_p3) target bundleno = 622 (0x26e), region = 49 }
 0x267   :  { %v233_v33 = vmul.f32 %v231_v31, %v3805_v8  ;;  %v234_v34 = vmul.f32 %v232_v32, %v3805_v8 }
 0x269   :  { %v235_v35 = vmul.f32 255.0, %v233_v33  ;;  %v236_v36 = vmul.f32 255.0, %v234_v34 }
 0x26b   :  { %vm241_vm7 = vcmask 130048  }
 0x26c   :  { %242 = vst.msk [vmem:[#allocation9 + $0x30] sm:$0xff] %vm241_vm7, %v235_v35 }
 0x26d   :  { %243 = vst.msk [vmem:[#allocation9 + $0x38] sm:$0xff] %vm241_vm7, %v236_v36 }
 0x26e PF:  { %246 = sbr.rel (%p3324_p4) target bundleno = 801 (0x321), region = 53 }
 0x273   :  { %247 = vxpose.xlu0.b32.start [1/2] (short) (narrow) %v235_v35, 16  ;;  %vm280_vm8 = vcmask 130048  }
 0x27b   :  { %248 = vxpose.xlu0.b32.end [2/2] (short) (narrow) %v236_v36, 16 }
 0x317   :  { %v263_v37 = vpop.trf.xlu0 }
 0x318   :  { %281 = vst.msk [vmem:[#allocation9 + $0x30] sm:$0xff] %vm280_vm8, %v263_v37 }
 0x31f   :  { %v264_v38 = vpop.trf.xlu0 }
 0x320   :  { %282 = vst.msk [vmem:[#allocation9 + $0x38] sm:$0xff] %vm280_vm8, %v264_v38 }
 0x321 PF:  { %v284_v39 = vld [vmem:[#allocation4 + $0x40] sm:$0xff]  ;;  %v285_v40 = vld [vmem:[#allocation4 + $0x48] sm:$0xff]  ;;  %292 = sbr.rel (%p3323_p3) target bundleno = 809 (0x329), region = 57 }
 0x322   :  { %v286_v41 = vmul.f32 %v284_v39, %v3805_v8  ;;  %v287_v42 = vmul.f32 %v285_v40, %v3805_v8 }
 0x324   :  { %v288_v43 = vmul.f32 255.0, %v286_v41  ;;  %v289_v44 = vmul.f32 255.0, %v287_v42 }
 0x326   :  { %vm294_vm9 = vcmask 130048  }
 0x327   :  { %295 = vst.msk [vmem:[#allocation9 + $0x40] sm:$0xff] %vm294_vm9, %v288_v43 }
 0x328   :  { %296 = vst.msk [vmem:[#allocation9 + $0x48] sm:$0xff] %vm294_vm9, %v289_v44 }
 0x329 PF:  { %299 = sbr.rel (%p3324_p4) target bundleno = 988 (0x3dc), region = 61 }
 0x32e   :  { %300 = vxpose.xlu0.b32.start [1/2] (short) (narrow) %v288_v43, 16  ;;  %vm333_vm10 = vcmask 130048  }
 0x336   :  { %301 = vxpose.xlu0.b32.end [2/2] (short) (narrow) %v289_v44, 16 }
 0x3d2   :  { %v316_v45 = vpop.trf.xlu0 }
 0x3d3   :  { %334 = vst.msk [vmem:[#allocation9 + $0x40] sm:$0xff] %vm333_vm10, %v316_v45 }
 0x3da   :  { %v317_v46 = vpop.trf.xlu0 }
 0x3db   :  { %335 = vst.msk [vmem:[#allocation9 + $0x48] sm:$0xff] %vm333_vm10, %v317_v46 }
 0x3dc PF:  { %v337_v47 = vld [vmem:[#allocation4 + $0x50] sm:$0xff]  ;;  %v338_v48 = vld [vmem:[#allocation4 + $0x58] sm:$0xff]  ;;  %345 = sbr.rel (%p3323_p3) target bundleno = 996 (0x3e4), region = 65 }
 0x3dd   :  { %v339_v49 = vmul.f32 %v337_v47, %v3805_v8  ;;  %v340_v50 = vmul.f32 %v338_v48, %v3805_v8 }
 0x3df   :  { %v341_v51 = vmul.f32 255.0, %v339_v49  ;;  %v342_v52 = vmul.f32 255.0, %v340_v50 }
 0x3e1   :  { %vm347_vm11 = vcmask 130048  }
 0x3e2   :  { %348 = vst.msk [vmem:[#allocation9 + $0x50] sm:$0xff] %vm347_vm11, %v341_v51 }
 0x3e3   :  { %349 = vst.msk [vmem:[#allocation9 + $0x58] sm:$0xff] %vm347_vm11, %v342_v52 }
 0x3e4 PF:  { %352 = sbr.rel (%p3324_p4) target bundleno = 1175 (0x497), region = 69 }
 0x3e9   :  { %353 = vxpose.xlu0.b32.start [1/2] (short) (narrow) %v341_v51, 16  ;;  %vm386_vm12 = vcmask 130048  }
 0x3f1   :  { %354 = vxpose.xlu0.b32.end [2/2] (short) (narrow) %v342_v52, 16 }
 0x48d   :  { %v369_v53 = vpop.trf.xlu0 }
 0x48e   :  { %387 = vst.msk [vmem:[#allocation9 + $0x50] sm:$0xff] %vm386_vm12, %v369_v53 }
 0x495   :  { %v370_v54 = vpop.trf.xlu0 }
 0x496   :  { %388 = vst.msk [vmem:[#allocation9 + $0x58] sm:$0xff] %vm386_vm12, %v370_v54 }
 0x497 PF:  { %v390_v55 = vld [vmem:[#allocation4 + $0x60] sm:$0xff]  ;;  %v391_v56 = vld [vmem:[#allocation4 + $0x68] sm:$0xff]  ;;  %398 = sbr.rel (%p3323_p3) target bundleno = 1183 (0x49f), region = 73 }
 0x498   :  { %v392_v57 = vmul.f32 %v390_v55, %v3805_v8  ;;  %v393_v58 = vmul.f32 %v391_v56, %v3805_v8 }
 0x49a   :  { %v394_v59 = vmul.f32 255.0, %v392_v57  ;;  %v395_v60 = vmul.f32 255.0, %v393_v58 }
 0x49c   :  { %vm400_vm13 = vcmask 130048  }
 0x49d   :  { %401 = vst.msk [vmem:[#allocation9 + $0x60] sm:$0xff] %vm400_vm13, %v394_v59 }
 0x49e   :  { %402 = vst.msk [vmem:[#allocation9 + $0x68] sm:$0xff] %vm400_vm13, %v395_v60 }
 0x49f PF:  { %405 = sbr.rel (%p3324_p4) target bundleno = 1362 (0x552), region = 77 }
 0x4a4   :  { %406 = vxpose.xlu0.b32.start [1/2] (short) (narrow) %v394_v59, 16  ;;  %vm439_vm14 = vcmask 130048  }
 0x4ac   :  { %407 = vxpose.xlu0.b32.end [2/2] (short) (narrow) %v395_v60, 16 }
 0x548   :  { %v422_v61 = vpop.trf.xlu0 }
 0x549   :  { %440 = vst.msk [vmem:[#allocation9 + $0x60] sm:$0xff] %vm439_vm14, %v422_v61 }
 0x550   :  { %v423_v62 = vpop.trf.xlu0 }
 0x551   :  { %441 = vst.msk [vmem:[#allocation9 + $0x68] sm:$0xff] %vm439_vm14, %v423_v62 }
 0x552 PF:  { %v443_v63 = vld [vmem:[#allocation4 + $0x70] sm:$0xff]  ;;  %v444_v0 = vld [vmem:[#allocation4 + $0x78] sm:$0xff]  ;;  %451 = sbr.rel (%p3323_p3) target bundleno = 1370 (0x55a), region = 81 }
 0x553   :  { %v445_v1 = vmul.f32 %v443_v63, %v3805_v8  ;;  %v446_v2 = vmul.f32 %v444_v0, %v3805_v8 }
 0x555   :  { %v447_v3 = vmul.f32 255.0, %v445_v1  ;;  %v448_v4 = vmul.f32 255.0, %v446_v2 }
 0x557   :  { %vm453_vm15 = vcmask 130048  }
 0x558   :  { %454 = vst.msk [vmem:[#allocation9 + $0x70] sm:$0xff] %vm453_vm15, %v447_v3 }
 0x559   :  { %455 = vst.msk [vmem:[#allocation9 + $0x78] sm:$0xff] %vm453_vm15, %v448_v4 }
 0x55a PF:  { %458 = sbr.rel (%p3324_p4) target bundleno = 1549 (0x60d), region = 85 }
 0x55f   :  { %459 = vxpose.xlu0.b32.start [1/2] (short) (narrow) %v447_v3, 16  ;;  %vm492_vm0 = vcmask 130048  }
 0x567   :  { %460 = vxpose.xlu0.b32.end [2/2] (short) (narrow) %v448_v4, 16 }
 0x603   :  { %v475_v5 = vpop.trf.xlu0 }
 0x604   :  { %493 = vst.msk [vmem:[#allocation9 + $0x70] sm:$0xff] %vm492_vm0, %v475_v5 }
 0x60b   :  { %v476_v6 = vpop.trf.xlu0 }
 0x60c   :  { %494 = vst.msk [vmem:[#allocation9 + $0x78] sm:$0xff] %vm492_vm0, %v476_v6 }
 0x60d PF:  { %p495_p5 = scmp.eq.s32.totalorder %s3791_s30, 1 }
 0x60f   :  { %p3862_p6 = pnand %p495_p5, %p59_p0 }
 0x610   :  { %p3345_p7 = scmp.ne.s32.totalorder (!%p3862_p6), %s3787_s1, 0 }
 0x611   :  { %499 = sbr.rel (%p3862_p6) target bundleno = 4161 (0x1041), region = 89 }
 0x616   :  { %v500_v7 = vlaneseq  ;;  %v3734_v13 = vmov 1.0   ;;  %v513_v14 = vld [vmem:[#allocation4] sm:$0xff]  ;;  %vm515_vm3 = vcmask 130048   ;;  %v514_v15 = vld [vmem:[#allocation4 + $0x8] sm:$0xff]  ;;  %v3735_v16 = vmov 255.0  }
 0x617   :  { %3604 = vrcp.f32 %v3735_v16 }
 0x618   :  { %v501_v8 = vshrl.u32 %v500_v7, 7  ;;  %v504_v9 = vand.u32 127, %v500_v7 }
 0x61a   :  { %v502_v10 = vadd.s32 8, %v501_v8  ;;  %v3868_v11 = vadd.s32 %v504_v9, %v501_v8 }
 0x61c   :  { %v3870_v12 = vadd.s32 %v504_v9, %v502_v10  ;;  %vm507_vm2 = vcmp.eq.s32.totalorder %v3868_v11, 15 }
 0x61d   :  { %v3605_v17 = vpop.eup %3604 }
 0x61e   :  { %vm508_vm1 = vcmp.eq.s32.totalorder %v3870_v12, 15  ;;  %v546_v18 = vmul.f32 255.0, %v3605_v17  ;;  %vm550_vm4 = vweird.f32 %v3605_v17 }
 0x61f   :  { %3341 = vmatpush.msk.msra.mxu0 %vm508_vm1, %v3734_v13 }
 0x620   :  { %v547_v19 = vsub.f32 1.0, %v546_v18 }
 0x621   :  { %3342 = vmatpush.msk.msra.mxu0 %vm507_vm2, %v3734_v13 }
 0x622   :  { %3343 = vmatmul.msk.f32.vlgmr.msra.gmra.mxu0 %vm515_vm3, %v513_v14  ;;  %v548_v20 = vmul.f32 %v3605_v17, %v547_v19 }
 0x624   :  { %v549_v21 = vadd.f32 %v3605_v17, %v548_v20 }
 0x626   :  { %v3882_v22 = vsel %vm550_vm4, %v3605_v17, %v549_v21 }
 0x62a   :  { %3344 = vmatmul.msk.f32.gmra.mxu0 %vm515_vm3, %v514_v15 }
 0x69f   :  { %v539_v23 = vpop.f32.mrf.mxu0 }
 0x6a0   :  { %v552_v24 = vmul.f32 %v3882_v22, %v539_v23 }
 0x6a2   :  { %v554_v25 = vmul.f32 255.0, %v552_v24 }
 0x6a6   :  { %559 = sbr.rel (%p3345_p7) target bundleno = 1709 (0x6ad), region = 93 }
 0x6a7   :  { %v542_v26 = vpop.f32.mrf.mxu0 }
 0x6a8   :  { %v553_v27 = vmul.f32 %v3882_v22, %v542_v26 }
 0x6aa   :  { %v555_v28 = vmul.f32 255.0, %v553_v27 }
 0x6ab   :  { %560 = vst.msk [vmem:[#allocation9] sm:$0xff] %vm515_vm3, %v554_v25 }
 0x6ac   :  { %561 = vst.msk [vmem:[#allocation9 + $0x8] sm:$0xff] %vm515_vm3, %v555_v28 }
 0x6ad PF:  { %p3346_p8 = scmp.eq.s32.totalorder %s3787_s1, 0 }
 0x6af   :  { %565 = sbr.rel (%p3346_p8) target bundleno = 1890 (0x762), region = 97 }
 0x6b4   :  { %566 = vxpose.xlu0.b32.start [1/2] (short) (narrow) %v554_v25, 16 }
 0x6bc   :  { %567 = vxpose.xlu0.b32.end [2/2] (short) (narrow) %v555_v28, 16 }
 0x758   :  { %v582_v29 = vpop.trf.xlu0 }
 0x759   :  { %598 = vst.msk [vmem:[#allocation9] sm:$0xff] %vm515_vm3, %v582_v29 }
 0x760   :  { %v583_v30 = vpop.trf.xlu0 }
 0x761   :  { %599 = vst.msk [vmem:[#allocation9 + $0x8] sm:$0xff] %vm515_vm3, %v583_v30 }
 0x762 PF:  { %3347 = vmatpush.msk.msra.mxu1 %vm508_vm1, %v3734_v13  ;;  %v601_v31 = vld [vmem:[#allocation4 + $0x10] sm:$0xff]  ;;  %v602_v32 = vld [vmem:[#allocation4 + $0x18] sm:$0xff] }
 0x764   :  { %3348 = vmatpush.msk.msra.mxu1 %vm507_vm2, %v3734_v13 }
 0x765   :  { %3349 = vmatmul.msk.f32.vlgmr.msra.gmra.mxu1 %vm515_vm3, %v601_v31 }
 0x76d   :  { %3350 = vmatmul.msk.f32.gmra.mxu1 %vm515_vm3, %v602_v32 }
 0x7e2   :  { %v626_v33 = vpop.f32.mrf.mxu1 }
 0x7e3   :  { %v632_v34 = vmul.f32 %v626_v33, %v3882_v22 }
 0x7e5   :  { %v634_v35 = vmul.f32 255.0, %v632_v34 }
 0x7e9   :  { %638 = sbr.rel (%p3345_p7) target bundleno = 2032 (0x7f0), region = 101 }
 0x7ea   :  { %v629_v36 = vpop.f32.mrf.mxu1 }
 0x7eb   :  { %v633_v37 = vmul.f32 %v629_v36, %v3882_v22 }
 0x7ed   :  { %v635_v38 = vmul.f32 255.0, %v633_v37 }
 0x7ee   :  { %640 = vst.msk [vmem:[#allocation9 + $0x10] sm:$0xff] %vm515_vm3, %v634_v35 }
 0x7ef   :  { %641 = vst.msk [vmem:[#allocation9 + $0x18] sm:$0xff] %vm515_vm3, %v635_v38 }
 0x7f0 PF:  { %644 = sbr.rel (%p3346_p8) target bundleno = 2211 (0x8a3), region = 105 }
 0x7f5   :  { %645 = vxpose.xlu0.b32.start [1/2] (short) (narrow) %v634_v35, 16 }
 0x7fd   :  { %646 = vxpose.xlu0.b32.end [2/2] (short) (narrow) %v635_v38, 16 }
 0x899   :  { %v661_v39 = vpop.trf.xlu0 }
 0x89a   :  { %678 = vst.msk [vmem:[#allocation9 + $0x10] sm:$0xff] %vm515_vm3, %v661_v39 }
 0x8a1   :  { %v662_v40 = vpop.trf.xlu0 }
 0x8a2   :  { %679 = vst.msk [vmem:[#allocation9 + $0x18] sm:$0xff] %vm515_vm3, %v662_v40 }
 0x8a3 PF:  { %3353 = vmatpush.msk.msra.mxu2 %vm508_vm1, %v3734_v13  ;;  %v681_v41 = vld [vmem:[#allocation4 + $0x20] sm:$0xff]  ;;  %v682_v42 = vld [vmem:[#allocation4 + $0x28] sm:$0xff] }
 0x8a5   :  { %3354 = vmatpush.msk.msra.mxu2 %vm507_vm2, %v3734_v13 }
 0x8a6   :  { %3355 = vmatmul.msk.f32.vlgmr.msra.gmra.mxu2 %vm515_vm3, %v681_v41 }
 0x8ae   :  { %3356 = vmatmul.msk.f32.gmra.mxu2 %vm515_vm3, %v682_v42 }
 0x929   :  { %v706_v43 = vpop.f32.mrf.mxu2 }
 0x92a   :  { %v712_v44 = vmul.f32 %v706_v43, %v3882_v22 }
 0x92c   :  { %v714_v45 = vmul.f32 255.0, %v712_v44 }
 0x930   :  { %718 = sbr.rel (%p3345_p7) target bundleno = 2359 (0x937), region = 109 }
 0x931   :  { %v709_v46 = vpop.f32.mrf.mxu2 }
 0x932   :  { %v713_v47 = vmul.f32 %v709_v46, %v3882_v22 }
 0x934   :  { %v715_v48 = vmul.f32 255.0, %v713_v47 }
 0x935   :  { %720 = vst.msk [vmem:[#allocation9 + $0x20] sm:$0xff] %vm515_vm3, %v714_v45 }
 0x936   :  { %721 = vst.msk [vmem:[#allocation9 + $0x28] sm:$0xff] %vm515_vm3, %v715_v48 }
 0x937 PF:  { %724 = sbr.rel (%p3346_p8) target bundleno = 2538 (0x9ea), region = 113 }
 0x93c   :  { %725 = vxpose.xlu0.b32.start [1/2] (short) (narrow) %v714_v45, 16 }
 0x944   :  { %726 = vxpose.xlu0.b32.end [2/2] (short) (narrow) %v715_v48, 16 }
 0x9e0   :  { %v741_v49 = vpop.trf.xlu0 }
 0x9e1   :  { %758 = vst.msk [vmem:[#allocation9 + $0x20] sm:$0xff] %vm515_vm3, %v741_v49 }
 0x9e8   :  { %v742_v50 = vpop.trf.xlu0 }
 0x9e9   :  { %759 = vst.msk [vmem:[#allocation9 + $0x28] sm:$0xff] %vm515_vm3, %v742_v50 }
 0x9ea PF:  { %3359 = vmatpush.msk.msra.mxu3 %vm508_vm1, %v3734_v13  ;;  %v761_v51 = vld [vmem:[#allocation4 + $0x30] sm:$0xff]  ;;  %v762_v52 = vld [vmem:[#allocation4 + $0x38] sm:$0xff] }
 0x9ec   :  { %3360 = vmatpush.msk.msra.mxu3 %vm507_vm2, %v3734_v13 }
 0x9ed   :  { %3361 = vmatmul.msk.f32.vlgmr.msra.gmra.mxu3 %vm515_vm3, %v761_v51 }
 0x9f5   :  { %3362 = vmatmul.msk.f32.gmra.mxu3 %vm515_vm3, %v762_v52 }
 0xa70   :  { %v786_v53 = vpop.f32.mrf.mxu3 }
 0xa71   :  { %v792_v54 = vmul.f32 %v786_v53, %v3882_v22 }
 0xa73   :  { %v794_v55 = vmul.f32 255.0, %v792_v54 }
 0xa77   :  { %798 = sbr.rel (%p3345_p7) target bundleno = 2686 (0xa7e), region = 117 }
 0xa78   :  { %v789_v56 = vpop.f32.mrf.mxu3 }
 0xa79   :  { %v793_v57 = vmul.f32 %v789_v56, %v3882_v22 }
 0xa7b   :  { %v795_v58 = vmul.f32 255.0, %v793_v57 }
 0xa7c   :  { %800 = vst.msk [vmem:[#allocation9 + $0x30] sm:$0xff] %vm515_vm3, %v794_v55 }
 0xa7d   :  { %801 = vst.msk [vmem:[#allocation9 + $0x38] sm:$0xff] %vm515_vm3, %v795_v58 }
 0xa7e PF:  { %804 = sbr.rel (%p3346_p8) target bundleno = 2865 (0xb31), region = 121 }
 0xa83   :  { %805 = vxpose.xlu0.b32.start [1/2] (short) (narrow) %v794_v55, 16 }
 0xa8b   :  { %806 = vxpose.xlu0.b32.end [2/2] (short) (narrow) %v795_v58, 16 }
 0xb27   :  { %v821_v59 = vpop.trf.xlu0 }
 0xb28   :  { %838 = vst.msk [vmem:[#allocation9 + $0x30] sm:$0xff] %vm515_vm3, %v821_v59 }
 0xb2f   :  { %v822_v60 = vpop.trf.xlu0 }
 0xb30   :  { %839 = vst.msk [vmem:[#allocation9 + $0x38] sm:$0xff] %vm515_vm3, %v822_v60 }
 0xb31 PF:  { %3365 = vmatpush.msk.msrb.mxu0 %vm508_vm1, %v3734_v13  ;;  %v841_v61 = vld [vmem:[#allocation4 + $0x40] sm:$0xff]  ;;  %v842_v62 = vld [vmem:[#allocation4 + $0x48] sm:$0xff] }
 0xb33   :  { %3366 = vmatpush.msk.msrb.mxu0 %vm507_vm2, %v3734_v13 }
 0xb34   :  { %3367 = vmatmul.msk.f32.vlgmr.msrb.gmra.mxu0 %vm515_vm3, %v841_v61 }
 0xb3c   :  { %3368 = vmatmul.msk.f32.gmra.mxu0 %vm515_vm3, %v842_v62 }
 0xbb1   :  { %v866_v63 = vpop.f32.mrf.mxu0 }
 0xbb2   :  { %v872_v0 = vmul.f32 %v866_v63, %v3882_v22 }
 0xbb4   :  { %v874_v1 = vmul.f32 255.0, %v872_v0 }
 0xbb8   :  { %878 = sbr.rel (%p3345_p7) target bundleno = 3007 (0xbbf), region = 125 }
 0xbb9   :  { %v869_v2 = vpop.f32.mrf.mxu0 }
 0xbba   :  { %v873_v3 = vmul.f32 %v869_v2, %v3882_v22 }
 0xbbc   :  { %v875_v4 = vmul.f32 255.0, %v873_v3 }
 0xbbd   :  { %880 = vst.msk [vmem:[#allocation9 + $0x40] sm:$0xff] %vm515_vm3, %v874_v1 }
 0xbbe   :  { %881 = vst.msk [vmem:[#allocation9 + $0x48] sm:$0xff] %vm515_vm3, %v875_v4 }
 0xbbf PF:  { %884 = sbr.rel (%p3346_p8) target bundleno = 3186 (0xc72), region = 129 }
 0xbc4   :  { %885 = vxpose.xlu0.b32.start [1/2] (short) (narrow) %v874_v1, 16 }
 0xbcc   :  { %886 = vxpose.xlu0.b32.end [2/2] (short) (narrow) %v875_v4, 16 }
 0xc68   :  { %v901_v5 = vpop.trf.xlu0 }
 0xc69   :  { %918 = vst.msk [vmem:[#allocation9 + $0x40] sm:$0xff] %vm515_vm3, %v901_v5 }
 0xc70   :  { %v902_v6 = vpop.trf.xlu0 }
 0xc71   :  { %919 = vst.msk [vmem:[#allocation9 + $0x48] sm:$0xff] %vm515_vm3, %v902_v6 }
 0xc72 PF:  { %3371 = vmatpush.msk.msrb.mxu1 %vm508_vm1, %v3734_v13  ;;  %v921_v7 = vld [vmem:[#allocation4 + $0x50] sm:$0xff]  ;;  %v922_v8 = vld [vmem:[#allocation4 + $0x58] sm:$0xff] }
 0xc74   :  { %3372 = vmatpush.msk.msrb.mxu1 %vm507_vm2, %v3734_v13 }
 0xc75   :  { %3373 = vmatmul.msk.f32.vlgmr.msrb.gmra.mxu1 %vm515_vm3, %v921_v7 }
 0xc7d   :  { %3374 = vmatmul.msk.f32.gmra.mxu1 %vm515_vm3, %v922_v8 }
 0xcf2   :  { %v946_v9 = vpop.f32.mrf.mxu1 }
 0xcf3   :  { %v952_v10 = vmul.f32 %v946_v9, %v3882_v22 }
 0xcf5   :  { %v954_v14 = vmul.f32 255.0, %v952_v10 }
 0xcf9   :  { %958 = sbr.rel (%p3345_p7) target bundleno = 3328 (0xd00), region = 133 }
 0xcfa   :  { %v949_v15 = vpop.f32.mrf.mxu1 }
 0xcfb   :  { %v953_v16 = vmul.f32 %v949_v15, %v3882_v22 }
 0xcfd   :  { %v955_v17 = vmul.f32 255.0, %v953_v16 }
 0xcfe   :  { %960 = vst.msk [vmem:[#allocation9 + $0x50] sm:$0xff] %vm515_vm3, %v954_v14 }
 0xcff   :  { %961 = vst.msk [vmem:[#allocation9 + $0x58] sm:$0xff] %vm515_vm3, %v955_v17 }
 0xd00 PF:  { %964 = sbr.rel (%p3346_p8) target bundleno = 3507 (0xdb3), region = 137 }
 0xd05   :  { %965 = vxpose.xlu0.b32.start [1/2] (short) (narrow) %v954_v14, 16 }
 0xd0d   :  { %966 = vxpose.xlu0.b32.end [2/2] (short) (narrow) %v955_v17, 16 }
 0xda9   :  { %v981_v18 = vpop.trf.xlu0 }
 0xdaa   :  { %998 = vst.msk [vmem:[#allocation9 + $0x50] sm:$0xff] %vm515_vm3, %v981_v18 }
 0xdb1   :  { %v982_v19 = vpop.trf.xlu0 }
 0xdb2   :  { %999 = vst.msk [vmem:[#allocation9 + $0x58] sm:$0xff] %vm515_vm3, %v982_v19 }
 0xdb3 PF:  { %3377 = vmatpush.msk.msrb.mxu2 %vm508_vm1, %v3734_v13  ;;  %v1001_v20 = vld [vmem:[#allocation4 + $0x60] sm:$0xff]  ;;  %v1002_v21 = vld [vmem:[#allocation4 + $0x68] sm:$0xff] }
 0xdb5   :  { %3378 = vmatpush.msk.msrb.mxu2 %vm507_vm2, %v3734_v13 }
 0xdb6   :  { %3379 = vmatmul.msk.f32.vlgmr.msrb.gmra.mxu2 %vm515_vm3, %v1001_v20 }
 0xdbe   :  { %3380 = vmatmul.msk.f32.gmra.mxu2 %vm515_vm3, %v1002_v21 }
 0xe39   :  { %v1026_v23 = vpop.f32.mrf.mxu2 }
 0xe3a   :  { %v1032_v24 = vmul.f32 %v1026_v23, %v3882_v22 }
 0xe3c   :  { %v1034_v25 = vmul.f32 255.0, %v1032_v24 }
 0xe40   :  { %1038 = sbr.rel (%p3345_p7) target bundleno = 3655 (0xe47), region = 141 }
 0xe41   :  { %v1029_v26 = vpop.f32.mrf.mxu2 }
 0xe42   :  { %v1033_v27 = vmul.f32 %v1029_v26, %v3882_v22 }
 0xe44   :  { %v1035_v28 = vmul.f32 255.0, %v1033_v27 }
 0xe45   :  { %1040 = vst.msk [vmem:[#allocation9 + $0x60] sm:$0xff] %vm515_vm3, %v1034_v25 }
 0xe46   :  { %1041 = vst.msk [vmem:[#allocation9 + $0x68] sm:$0xff] %vm515_vm3, %v1035_v28 }
 0xe47 PF:  { %1044 = sbr.rel (%p3346_p8) target bundleno = 3834 (0xefa), region = 145 }
 0xe4c   :  { %1045 = vxpose.xlu0.b32.start [1/2] (short) (narrow) %v1034_v25, 16 }
 0xe54   :  { %1046 = vxpose.xlu0.b32.end [2/2] (short) (narrow) %v1035_v28, 16 }
 0xef0   :  { %v1061_v29 = vpop.trf.xlu0 }
 0xef1   :  { %1078 = vst.msk [vmem:[#allocation9 + $0x60] sm:$0xff] %vm515_vm3, %v1061_v29 }
 0xef8   :  { %v1062_v30 = vpop.trf.xlu0 }
 0xef9   :  { %1079 = vst.msk [vmem:[#allocation9 + $0x68] sm:$0xff] %vm515_vm3, %v1062_v30 }
 0xefa PF:  { %3383 = vmatpush.msk.msrb.mxu3 %vm508_vm1, %v3734_v13  ;;  %v1081_v31 = vld [vmem:[#allocation4 + $0x70] sm:$0xff]  ;;  %v1082_v32 = vld [vmem:[#allocation4 + $0x78] sm:$0xff] }
 0xefc   :  { %3384 = vmatpush.msk.msrb.mxu3 %vm507_vm2, %v3734_v13 }
 0xefd   :  { %3385 = vmatmul.msk.f32.vlgmr.msrb.gmra.mxu3 %vm515_vm3, %v1081_v31 }
 0xf05   :  { %3386 = vmatmul.msk.f32.gmra.mxu3 %vm515_vm3, %v1082_v32 }
 0xf80   :  { %v1106_v33 = vpop.f32.mrf.mxu3 }
 0xf81   :  { %v1112_v34 = vmul.f32 %v1106_v33, %v3882_v22 }
 0xf83   :  { %v1114_v35 = vmul.f32 255.0, %v1112_v34 }
 0xf87   :  { %1118 = sbr.rel (%p3345_p7) target bundleno = 3982 (0xf8e), region = 149 }
 0xf88   :  { %v1109_v36 = vpop.f32.mrf.mxu3 }
 0xf89   :  { %v1113_v37 = vmul.f32 %v1109_v36, %v3882_v22 }
 0xf8b   :  { %v1115_v38 = vmul.f32 255.0, %v1113_v37 }
 0xf8c   :  { %1120 = vst.msk [vmem:[#allocation9 + $0x70] sm:$0xff] %vm515_vm3, %v1114_v35 }
 0xf8d   :  { %1121 = vst.msk [vmem:[#allocation9 + $0x78] sm:$0xff] %vm515_vm3, %v1115_v38 }
 0xf8e PF:  { %1124 = sbr.rel (%p3346_p8) target bundleno = 4161 (0x1041), region = 153 }
 0xf93   :  { %1125 = vxpose.xlu0.b32.start [1/2] (short) (narrow) %v1114_v35, 16 }
 0xf9b   :  { %1126 = vxpose.xlu0.b32.end [2/2] (short) (narrow) %v1115_v38, 16 }
0x1037   :  { %v1141_v11 = vpop.trf.xlu0 }
0x1038   :  { %1158 = vst.msk [vmem:[#allocation9 + $0x70] sm:$0xff] %vm515_vm3, %v1141_v11 }
0x103f   :  { %v1142_v12 = vpop.trf.xlu0 }
0x1040   :  { %1159 = vst.msk [vmem:[#allocation9 + $0x78] sm:$0xff] %vm515_vm3, %v1142_v12 }
0x1041 PF:  { %p1160_p9 = scmp.eq.s32.totalorder %s3789_s2, 1 }
0x1043   :  { %p4027_p10 = pnand %p1160_p9, %p60_p1 }
0x1044   :  { %p3393_p11 = scmp.ne.s32.totalorder (!%p4027_p10), %s3787_s1, 0 }
0x1045   :  { %1164 = sbr.rel (%p4027_p10) target bundleno = 6776 (0x1a78), region = 157 }
0x104a   :  { %v1179_v13 = vld [vmem:[#allocation4 + $0x8] sm:$0xff]  ;;  %v1178_v22 = vld [vmem:[#allocation4] sm:$0xff]  ;;  %v1165_v39 = vlaneseq  ;;  %vm1180_vm5 = vcmask 130048   ;;  %v3736_v45 = vmov 0.0   ;;  %v3737_v48 = vmov 255.0  }
0x104b   :  { %1201 = vmatpush.msra.mxu0 %v1179_v13  ;;  %3606 = vrcp.f32 %v3737_v48 }
0x104c   :  { %v1166_v40 = vshrl.u32 %v1165_v39, 7  ;;  %v1169_v41 = vand.u32 127, %v1165_v39 }
0x104d   :  { %1202 = vmatpush.msra.mxu0 %v1178_v22 }
0x104e   :  { %v1170_v42 = vadd.s32 %v1169_v41, %v1166_v40  ;;  %v1167_v43 = vadd.s32 8, %v1166_v40 }
0x1050   :  { %vm1172_vm6 = vcmp.eq.s32.totalorder %v1170_v42, 15  ;;  %v1171_v44 = vadd.s32 %v1169_v41, %v1167_v43 }
0x1051   :  { %v4033_v46 = vsel %vm1172_vm6, 1.0, %v3736_v45  ;;  %v3607_v49 = vpop.eup %3606 }
0x1052   :  { %3391 = vmatmul.msk.f32.vlgmr.msra.gmra.mxu0 %vm1180_vm5, %v4033_v46  ;;  %vm1173_vm7 = vcmp.eq.s32.totalorder %v1171_v44, 15  ;;  %v1211_v50 = vmul.f32 255.0, %v3607_v49  ;;  %vm1215_vm8 = vweird.f32 %v3607_v49 }
0x1053   :  { %v4037_v47 = vsel %vm1173_vm7, 1.0, %v3736_v45 }
0x1054   :  { %v1212_v51 = vsub.f32 1.0, %v1211_v50 }
0x1056   :  { %v1213_v52 = vmul.f32 %v3607_v49, %v1212_v51 }
0x1058   :  { %v1214_v53 = vadd.f32 %v3607_v49, %v1213_v52 }
0x105a   :  { %3392 = vmatmul.msk.f32.gmra.mxu0 %vm1180_vm5, %v4037_v47  ;;  %v4041_v54 = vsel %vm1215_vm8, %v3607_v49, %v1214_v53 }
0x10cf   :  { %v1204_v55 = vpop.f32.mrf.mxu0 }
0x10d0   :  { %v1217_v56 = vmul.f32 %v4041_v54, %v1204_v55 }
0x10d2   :  { %v1219_v57 = vmul.f32 255.0, %v1217_v56 }
0x10d6   :  { %1224 = sbr.rel (%p3393_p11) target bundleno = 4317 (0x10dd), region = 161 }
0x10d7   :  { %v1207_v58 = vpop.f32.mrf.mxu0 }
0x10d8   :  { %v1218_v59 = vmul.f32 %v4041_v54, %v1207_v58 }
0x10da   :  { %v1220_v60 = vmul.f32 255.0, %v1218_v59 }
0x10db   :  { %1225 = vst.msk [vmem:[#allocation9] sm:$0xff] %vm1180_vm5, %v1219_v57 }
0x10dc   :  { %1226 = vst.msk [vmem:[#allocation9 + $0x8] sm:$0xff] %vm1180_vm5, %v1220_v60 }
0x10dd PF:  { %p3394_p12 = scmp.eq.s32.totalorder %s3787_s1, 0 }
0x10df   :  { %1230 = sbr.rel (%p3394_p12) target bundleno = 4498 (0x1192), region = 165 }
0x10e4   :  { %1231 = vxpose.xlu0.b32.start [1/2] (short) (narrow) %v1219_v57, 16 }
0x10ec   :  { %1232 = vxpose.xlu0.b32.end [2/2] (short) (narrow) %v1220_v60, 16 }
0x1188   :  { %v1247_v61 = vpop.trf.xlu0 }
0x1189   :  { %1263 = vst.msk [vmem:[#allocation9] sm:$0xff] %vm1180_vm5, %v1247_v61 }
0x1190   :  { %v1248_v62 = vpop.trf.xlu0 }
0x1191   :  { %1264 = vst.msk [vmem:[#allocation9 + $0x8] sm:$0xff] %vm1180_vm5, %v1248_v62 }
0x1192 PF:  { %v1267_v63 = vld [vmem:[#allocation4 + $0x18] sm:$0xff]  ;;  %v1266_v0 = vld [vmem:[#allocation4 + $0x10] sm:$0xff] }
0x1193   :  { %1282 = vmatpush.msra.mxu1 %v1267_v63 }
0x1195   :  { %1283 = vmatpush.msra.mxu1 %v1266_v0 }
0x1196   :  { %3395 = vmatmul.msk.f32.vlgmr.msra.gmra.mxu1 %vm1180_vm5, %v4033_v46 }
0x119e   :  { %3396 = vmatmul.msk.f32.gmra.mxu1 %vm1180_vm5, %v4037_v47 }
0x1213   :  { %v1285_v1 = vpop.f32.mrf.mxu1 }
0x1214   :  { %v1291_v2 = vmul.f32 %v1285_v1, %v4041_v54 }
0x1216   :  { %v1293_v3 = vmul.f32 255.0, %v1291_v2 }
0x121a   :  { %1297 = sbr.rel (%p3393_p11) target bundleno = 4641 (0x1221), region = 169 }
0x121b   :  { %v1288_v4 = vpop.f32.mrf.mxu1 }
0x121c   :  { %v1292_v5 = vmul.f32 %v1288_v4, %v4041_v54 }
0x121e   :  { %v1294_v6 = vmul.f32 255.0, %v1292_v5 }
0x121f   :  { %1299 = vst.msk [vmem:[#allocation9 + $0x10] sm:$0xff] %vm1180_vm5, %v1293_v3 }
0x1220   :  { %1300 = vst.msk [vmem:[#allocation9 + $0x18] sm:$0xff] %vm1180_vm5, %v1294_v6 }
0x1221 PF:  { %1303 = sbr.rel (%p3394_p12) target bundleno = 4820 (0x12d4), region = 173 }
0x1226   :  { %1304 = vxpose.xlu0.b32.start [1/2] (short) (narrow) %v1293_v3, 16 }
0x122e   :  { %1305 = vxpose.xlu0.b32.end [2/2] (short) (narrow) %v1294_v6, 16 }
0x12ca   :  { %v1320_v7 = vpop.trf.xlu0 }
0x12cb   :  { %1337 = vst.msk [vmem:[#allocation9 + $0x10] sm:$0xff] %vm1180_vm5, %v1320_v7 }
0x12d2   :  { %v1321_v8 = vpop.trf.xlu0 }
0x12d3   :  { %1338 = vst.msk [vmem:[#allocation9 + $0x18] sm:$0xff] %vm1180_vm5, %v1321_v8 }
0x12d4 PF:  { %v1341_v9 = vld [vmem:[#allocation4 + $0x28] sm:$0xff]  ;;  %v1340_v10 = vld [vmem:[#allocation4 + $0x20] sm:$0xff] }
0x12d5   :  { %1356 = vmatpush.msra.mxu2 %v1341_v9 }
0x12d7   :  { %1357 = vmatpush.msra.mxu2 %v1340_v10 }
0x12d8   :  { %3399 = vmatmul.msk.f32.vlgmr.msra.gmra.mxu2 %vm1180_vm5, %v4033_v46 }
0x12e0   :  { %3400 = vmatmul.msk.f32.gmra.mxu2 %vm1180_vm5, %v4037_v47 }
0x135b   :  { %v1359_v14 = vpop.f32.mrf.mxu2 }
0x135c   :  { %v1365_v15 = vmul.f32 %v1359_v14, %v4041_v54 }
0x135e   :  { %v1367_v16 = vmul.f32 255.0, %v1365_v15 }
0x1362   :  { %1371 = sbr.rel (%p3393_p11) target bundleno = 4969 (0x1369), region = 177 }
0x1363   :  { %v1362_v17 = vpop.f32.mrf.mxu2 }
0x1364   :  { %v1366_v18 = vmul.f32 %v1362_v17, %v4041_v54 }
0x1366   :  { %v1368_v19 = vmul.f32 255.0, %v1366_v18 }
0x1367   :  { %1373 = vst.msk [vmem:[#allocation9 + $0x20] sm:$0xff] %vm1180_vm5, %v1367_v16 }
0x1368   :  { %1374 = vst.msk [vmem:[#allocation9 + $0x28] sm:$0xff] %vm1180_vm5, %v1368_v19 }
0x1369 PF:  { %1377 = sbr.rel (%p3394_p12) target bundleno = 5148 (0x141c), region = 181 }
0x136e   :  { %1378 = vxpose.xlu0.b32.start [1/2] (short) (narrow) %v1367_v16, 16 }
0x1376   :  { %1379 = vxpose.xlu0.b32.end [2/2] (short) (narrow) %v1368_v19, 16 }
0x1412   :  { %v1394_v20 = vpop.trf.xlu0 }
0x1413   :  { %1411 = vst.msk [vmem:[#allocation9 + $0x20] sm:$0xff] %vm1180_vm5, %v1394_v20 }
0x141a   :  { %v1395_v21 = vpop.trf.xlu0 }
0x141b   :  { %1412 = vst.msk [vmem:[#allocation9 + $0x28] sm:$0xff] %vm1180_vm5, %v1395_v21 }
0x141c PF:  { %v1415_v23 = vld [vmem:[#allocation4 + $0x38] sm:$0xff]  ;;  %v1414_v24 = vld [vmem:[#allocation4 + $0x30] sm:$0xff] }
0x141d   :  { %1430 = vmatpush.msra.mxu3 %v1415_v23 }
0x141f   :  { %1431 = vmatpush.msra.mxu3 %v1414_v24 }
0x1420   :  { %3403 = vmatmul.msk.f32.vlgmr.msra.gmra.mxu3 %vm1180_vm5, %v4033_v46 }
0x1428   :  { %3404 = vmatmul.msk.f32.gmra.mxu3 %vm1180_vm5, %v4037_v47 }
0x14a3   :  { %v1433_v25 = vpop.f32.mrf.mxu3 }
0x14a4   :  { %v1439_v26 = vmul.f32 %v1433_v25, %v4041_v54 }
0x14a6   :  { %v1441_v27 = vmul.f32 255.0, %v1439_v26 }
0x14aa   :  { %1445 = sbr.rel (%p3393_p11) target bundleno = 5297 (0x14b1), region = 185 }
0x14ab   :  { %v1436_v28 = vpop.f32.mrf.mxu3 }
0x14ac   :  { %v1440_v29 = vmul.f32 %v1436_v28, %v4041_v54 }
0x14ae   :  { %v1442_v30 = vmul.f32 255.0, %v1440_v29 }
0x14af   :  { %1447 = vst.msk [vmem:[#allocation9 + $0x30] sm:$0xff] %vm1180_vm5, %v1441_v27 }
0x14b0   :  { %1448 = vst.msk [vmem:[#allocation9 + $0x38] sm:$0xff] %vm1180_vm5, %v1442_v30 }
0x14b1 PF:  { %1451 = sbr.rel (%p3394_p12) target bundleno = 5476 (0x1564), region = 189 }
0x14b6   :  { %1452 = vxpose.xlu0.b32.start [1/2] (short) (narrow) %v1441_v27, 16 }
0x14be   :  { %1453 = vxpose.xlu0.b32.end [2/2] (short) (narrow) %v1442_v30, 16 }
0x155a   :  { %v1468_v31 = vpop.trf.xlu0 }
0x155b   :  { %1485 = vst.msk [vmem:[#allocation9 + $0x30] sm:$0xff] %vm1180_vm5, %v1468_v31 }
0x1562   :  { %v1469_v32 = vpop.trf.xlu0 }
0x1563   :  { %1486 = vst.msk [vmem:[#allocation9 + $0x38] sm:$0xff] %vm1180_vm5, %v1469_v32 }
0x1564 PF:  { %v1489_v33 = vld [vmem:[#allocation4 + $0x48] sm:$0xff]  ;;  %v1488_v34 = vld [vmem:[#allocation4 + $0x40] sm:$0xff] }
0x1565   :  { %1504 = vmatpush.msrb.mxu0 %v1489_v33 }
0x1567   :  { %1505 = vmatpush.msrb.mxu0 %v1488_v34 }
0x1568   :  { %3407 = vmatmul.msk.f32.vlgmr.msrb.gmra.mxu0 %vm1180_vm5, %v4033_v46 }
0x1570   :  { %3408 = vmatmul.msk.f32.gmra.mxu0 %vm1180_vm5, %v4037_v47 }
0x15e5   :  { %v1507_v35 = vpop.f32.mrf.mxu0 }
0x15e6   :  { %v1513_v36 = vmul.f32 %v1507_v35, %v4041_v54 }
0x15e8   :  { %v1515_v37 = vmul.f32 255.0, %v1513_v36 }
0x15ec   :  { %1519 = sbr.rel (%p3393_p11) target bundleno = 5619 (0x15f3), region = 193 }
0x15ed   :  { %v1510_v38 = vpop.f32.mrf.mxu0 }
0x15ee   :  { %v1514_v11 = vmul.f32 %v1510_v38, %v4041_v54 }
0x15f0   :  { %v1516_v12 = vmul.f32 255.0, %v1514_v11 }
0x15f1   :  { %1521 = vst.msk [vmem:[#allocation9 + $0x40] sm:$0xff] %vm1180_vm5, %v1515_v37 }
0x15f2   :  { %1522 = vst.msk [vmem:[#allocation9 + $0x48] sm:$0xff] %vm1180_vm5, %v1516_v12 }
0x15f3 PF:  { %1525 = sbr.rel (%p3394_p12) target bundleno = 5798 (0x16a6), region = 197 }
0x15f8   :  { %1526 = vxpose.xlu0.b32.start [1/2] (short) (narrow) %v1515_v37, 16 }
0x1600   :  { %1527 = vxpose.xlu0.b32.end [2/2] (short) (narrow) %v1516_v12, 16 }
0x169c   :  { %v1542_v13 = vpop.trf.xlu0 }
0x169d   :  { %1559 = vst.msk [vmem:[#allocation9 + $0x40] sm:$0xff] %vm1180_vm5, %v1542_v13 }
0x16a4   :  { %v1543_v22 = vpop.trf.xlu0 }
0x16a5   :  { %1560 = vst.msk [vmem:[#allocation9 + $0x48] sm:$0xff] %vm1180_vm5, %v1543_v22 }
0x16a6 PF:  { %v1563_v39 = vld [vmem:[#allocation4 + $0x58] sm:$0xff]  ;;  %v1562_v40 = vld [vmem:[#allocation4 + $0x50] sm:$0xff] }
0x16a7   :  { %1578 = vmatpush.msrb.mxu1 %v1563_v39 }
0x16a9   :  { %1579 = vmatpush.msrb.mxu1 %v1562_v40 }
0x16aa   :  { %3411 = vmatmul.msk.f32.vlgmr.msrb.gmra.mxu1 %vm1180_vm5, %v4033_v46 }
0x16b2   :  { %3412 = vmatmul.msk.f32.gmra.mxu1 %vm1180_vm5, %v4037_v47 }
0x1727   :  { %v1581_v41 = vpop.f32.mrf.mxu1 }
0x1728   :  { %v1587_v42 = vmul.f32 %v1581_v41, %v4041_v54 }
0x172a   :  { %v1589_v43 = vmul.f32 255.0, %v1587_v42 }
0x172e   :  { %1593 = sbr.rel (%p3393_p11) target bundleno = 5941 (0x1735), region = 201 }
0x172f   :  { %v1584_v44 = vpop.f32.mrf.mxu1 }
0x1730   :  { %v1588_v45 = vmul.f32 %v1584_v44, %v4041_v54 }
0x1732   :  { %v1590_v48 = vmul.f32 255.0, %v1588_v45 }
0x1733   :  { %1595 = vst.msk [vmem:[#allocation9 + $0x50] sm:$0xff] %vm1180_vm5, %v1589_v43 }
0x1734   :  { %1596 = vst.msk [vmem:[#allocation9 + $0x58] sm:$0xff] %vm1180_vm5, %v1590_v48 }
0x1735 PF:  { %1599 = sbr.rel (%p3394_p12) target bundleno = 6120 (0x17e8), region = 205 }
0x173a   :  { %1600 = vxpose.xlu0.b32.start [1/2] (short) (narrow) %v1589_v43, 16 }
0x1742   :  { %1601 = vxpose.xlu0.b32.end [2/2] (short) (narrow) %v1590_v48, 16 }
0x17de   :  { %v1616_v49 = vpop.trf.xlu0 }
0x17df   :  { %1633 = vst.msk [vmem:[#allocation9 + $0x50] sm:$0xff] %vm1180_vm5, %v1616_v49 }
0x17e6   :  { %v1617_v50 = vpop.trf.xlu0 }
0x17e7   :  { %1634 = vst.msk [vmem:[#allocation9 + $0x58] sm:$0xff] %vm1180_vm5, %v1617_v50 }
0x17e8 PF:  { %v1637_v51 = vld [vmem:[#allocation4 + $0x68] sm:$0xff]  ;;  %v1636_v52 = vld [vmem:[#allocation4 + $0x60] sm:$0xff] }
0x17e9   :  { %1652 = vmatpush.msrb.mxu2 %v1637_v51 }
0x17eb   :  { %1653 = vmatpush.msrb.mxu2 %v1636_v52 }
0x17ec   :  { %3415 = vmatmul.msk.f32.vlgmr.msrb.gmra.mxu2 %vm1180_vm5, %v4033_v46 }
0x17f4   :  { %3416 = vmatmul.msk.f32.gmra.mxu2 %vm1180_vm5, %v4037_v47 }
0x186f   :  { %v1655_v53 = vpop.f32.mrf.mxu2 }
0x1870   :  { %v1661_v55 = vmul.f32 %v1655_v53, %v4041_v54 }
0x1872   :  { %v1663_v56 = vmul.f32 255.0, %v1661_v55 }
0x1876   :  { %1667 = sbr.rel (%p3393_p11) target bundleno = 6269 (0x187d), region = 209 }
0x1877   :  { %v1658_v57 = vpop.f32.mrf.mxu2 }
0x1878   :  { %v1662_v58 = vmul.f32 %v1658_v57, %v4041_v54 }
0x187a   :  { %v1664_v59 = vmul.f32 255.0, %v1662_v58 }
0x187b   :  { %1669 = vst.msk [vmem:[#allocation9 + $0x60] sm:$0xff] %vm1180_vm5, %v1663_v56 }
0x187c   :  { %1670 = vst.msk [vmem:[#allocation9 + $0x68] sm:$0xff] %vm1180_vm5, %v1664_v59 }
0x187d PF:  { %1673 = sbr.rel (%p3394_p12) target bundleno = 6448 (0x1930), region = 213 }
0x1882   :  { %1674 = vxpose.xlu0.b32.start [1/2] (short) (narrow) %v1663_v56, 16 }
0x188a   :  { %1675 = vxpose.xlu0.b32.end [2/2] (short) (narrow) %v1664_v59, 16 }
0x1926   :  { %v1690_v60 = vpop.trf.xlu0 }
0x1927   :  { %1707 = vst.msk [vmem:[#allocation9 + $0x60] sm:$0xff] %vm1180_vm5, %v1690_v60 }
0x192e   :  { %v1691_v61 = vpop.trf.xlu0 }
0x192f   :  { %1708 = vst.msk [vmem:[#allocation9 + $0x68] sm:$0xff] %vm1180_vm5, %v1691_v61 }
0x1930 PF:  { %v1711_v62 = vld [vmem:[#allocation4 + $0x78] sm:$0xff]  ;;  %v1710_v63 = vld [vmem:[#allocation4 + $0x70] sm:$0xff] }
0x1931   :  { %1726 = vmatpush.msrb.mxu3 %v1711_v62 }
0x1933   :  { %1727 = vmatpush.msrb.mxu3 %v1710_v63 }
0x1934   :  { %3419 = vmatmul.msk.f32.vlgmr.msrb.gmra.mxu3 %vm1180_vm5, %v4033_v46 }
0x193c   :  { %3420 = vmatmul.msk.f32.gmra.mxu3 %vm1180_vm5, %v4037_v47 }
0x19b7   :  { %v1729_v0 = vpop.f32.mrf.mxu3 }
0x19b8   :  { %v1735_v1 = vmul.f32 %v1729_v0, %v4041_v54 }
0x19ba   :  { %v1737_v2 = vmul.f32 255.0, %v1735_v1 }
0x19be   :  { %1741 = sbr.rel (%p3393_p11) target bundleno = 6597 (0x19c5), region = 217 }
0x19bf   :  { %v1732_v3 = vpop.f32.mrf.mxu3 }
0x19c0   :  { %v1736_v4 = vmul.f32 %v1732_v3, %v4041_v54 }
0x19c2   :  { %v1738_v5 = vmul.f32 255.0, %v1736_v4 }
0x19c3   :  { %1743 = vst.msk [vmem:[#allocation9 + $0x70] sm:$0xff] %vm1180_vm5, %v1737_v2 }
0x19c4   :  { %1744 = vst.msk [vmem:[#allocation9 + $0x78] sm:$0xff] %vm1180_vm5, %v1738_v5 }
0x19c5 PF:  { %1747 = sbr.rel (%p3394_p12) target bundleno = 6776 (0x1a78), region = 221 }
0x19ca   :  { %1748 = vxpose.xlu0.b32.start [1/2] (short) (narrow) %v1737_v2, 16 }
0x19d2   :  { %1749 = vxpose.xlu0.b32.end [2/2] (short) (narrow) %v1738_v5, 16 }
0x1a6e   :  { %v1764_v46 = vpop.trf.xlu0 }
0x1a6f   :  { %1781 = vst.msk [vmem:[#allocation9 + $0x70] sm:$0xff] %vm1180_vm5, %v1764_v46 }
0x1a76   :  { %v1765_v47 = vpop.trf.xlu0 }
0x1a77   :  { %1782 = vst.msk [vmem:[#allocation9 + $0x78] sm:$0xff] %vm1180_vm5, %v1765_v47 }
0x1a78 PF:  { %p4157_p13 = pnand %p1160_p9, %p495_p5 }
0x1a79   :  { %p3431_p0 = scmp.ne.s32.totalorder (!%p4157_p13), %s3787_s1, 0 }
0x1a7a   :  { %1786 = sbr.rel (%p4157_p13) target bundleno = 10421 (0x28b5), region = 225 }
0x1a7f   :  { %v1801_v54 = vld [vmem:[#allocation4 + $0x8] sm:$0xff]  ;;  %v1800_v6 = vld [vmem:[#allocation4] sm:$0xff]  ;;  %v1787_v7 = vlaneseq  ;;  %vm1802_vm9 = vcmask 130048   ;;  %v3738_v16 = vmov 0.0   ;;  %v3739_v18 = vmov 1.0  }
0x1a80   :  { %1823 = vmatpush.msra.mxu0 %v1801_v54  ;;  %v3740_v23 = vmov 255.0  }
0x1a81   :  { %v1788_v8 = vshrl.u32 %v1787_v7, 7  ;;  %v1791_v9 = vand.u32 127, %v1787_v7  ;;  %3608 = vrcp.f32 %v3740_v23 }
0x1a82   :  { %1824 = vmatpush.msra.mxu0 %v1800_v6 }
0x1a83   :  { %v4163_v10 = vadd.s32 %v1791_v9, %v1788_v8  ;;  %v1789_v14 = vadd.s32 8, %v1788_v8 }
0x1a85   :  { %vm1794_vm10 = vcmp.eq.s32.totalorder %v4163_v10, 15  ;;  %v4166_v15 = vadd.s32 %v1791_v9, %v1789_v14 }
0x1a86   :  { %v4170_v17 = vsel %vm1794_vm10, 1.0, %v3738_v16 }
0x1a87   :  { %3425 = vmatmul.msk.f32.vlgmr.msra.gmra.mxu0 %vm1802_vm9, %v4170_v17  ;;  %vm1795_vm11 = vcmp.eq.s32.totalorder %v4166_v15, 15  ;;  %v3609_v24 = vpop.eup %3608 }
0x1a88   :  { %3427 = vmatpush.msk.msra.mxu1 %vm1795_vm11, %v3739_v18  ;;  %v4183_v19 = vsel %vm1795_vm11, 1.0, %v3738_v16  ;;  %v1862_v25 = vmul.f32 255.0, %v3609_v24  ;;  %vm1866_vm12 = vweird.f32 %v3609_v24 }
0x1a8a   :  { %3428 = vmatpush.msk.msra.mxu1 %vm1794_vm10, %v3739_v18  ;;  %v1863_v26 = vsub.f32 1.0, %v1862_v25 }
0x1a8c   :  { %v1864_v27 = vmul.f32 %v3609_v24, %v1863_v26 }
0x1a8e   :  { %v1865_v28 = vadd.f32 %v3609_v24, %v1864_v27 }
0x1a8f   :  { %3426 = vmatmul.msk.f32.gmra.mxu0 %vm1802_vm9, %v4183_v19 }
0x1a90   :  { %v4189_v29 = vsel %vm1866_vm12, %v3609_v24, %v1865_v28 }
0x1b04   :  { %v1826_v20 = vpop.f32.mrf.mxu0 }
0x1b05   :  { %3429 = vmatmul.msk.f32.vlgmr.msra.gmra.mxu1 %vm1802_vm9, %v1826_v20 }
0x1b0c   :  { %v1829_v21 = vpop.f32.mrf.mxu0 }
0x1b0d   :  { %3430 = vmatmul.msk.f32.gmra.mxu1 %vm1802_vm9, %v1829_v21 }
0x1b82   :  { %v1855_v30 = vpop.f32.mrf.mxu1 }
0x1b83   :  { %v1868_v31 = vmul.f32 %v4189_v29, %v1855_v30 }
0x1b85   :  { %v1870_v32 = vmul.f32 255.0, %v1868_v31 }
0x1b89   :  { %1875 = sbr.rel (%p3431_p0) target bundleno = 7056 (0x1b90), region = 229 }
0x1b8a   :  { %v1858_v33 = vpop.f32.mrf.mxu1 }
0x1b8b   :  { %v1869_v34 = vmul.f32 %v4189_v29, %v1858_v33 }
0x1b8d   :  { %v1871_v35 = vmul.f32 255.0, %v1869_v34 }
0x1b8e   :  { %1876 = vst.msk [vmem:[#allocation9] sm:$0xff] %vm1802_vm9, %v1870_v32 }
0x1b8f   :  { %1877 = vst.msk [vmem:[#allocation9 + $0x8] sm:$0xff] %vm1802_vm9, %v1871_v35 }
0x1b90 PF:  { %p3432_p1 = scmp.eq.s32.totalorder %s3787_s1, 0 }
0x1b92   :  { %1881 = sbr.rel (%p3432_p1) target bundleno = 7237 (0x1c45), region = 233 }
0x1b97   :  { %1882 = vxpose.xlu0.b32.start [1/2] (short) (narrow) %v1870_v32, 16 }
0x1b9f   :  { %1883 = vxpose.xlu0.b32.end [2/2] (short) (narrow) %v1871_v35, 16 }
0x1c3b   :  { %v1898_v36 = vpop.trf.xlu0 }
0x1c3c   :  { %1914 = vst.msk [vmem:[#allocation9] sm:$0xff] %vm1802_vm9, %v1898_v36 }
0x1c43   :  { %v1899_v37 = vpop.trf.xlu0 }
0x1c44   :  { %1915 = vst.msk [vmem:[#allocation9 + $0x8] sm:$0xff] %vm1802_vm9, %v1899_v37 }
0x1c45 PF:  { %v1918_v38 = vld [vmem:[#allocation4 + $0x18] sm:$0xff]  ;;  %v1917_v11 = vld [vmem:[#allocation4 + $0x10] sm:$0xff]  ;;  %3435 = vmatpush.msk.msra.mxu3 %vm1795_vm11, %v3739_v18 }
0x1c46   :  { %1933 = vmatpush.msra.mxu2 %v1918_v38 }
0x1c47   :  { %3436 = vmatpush.msk.msra.mxu3 %vm1794_vm10, %v3739_v18 }
0x1c48   :  { %1934 = vmatpush.msra.mxu2 %v1917_v11 }
0x1c49   :  { %3433 = vmatmul.msk.f32.vlgmr.msra.gmra.mxu2 %vm1802_vm9, %v4170_v17 }
0x1c51   :  { %3434 = vmatmul.msk.f32.gmra.mxu2 %vm1802_vm9, %v4183_v19 }
0x1ccc   :  { %v1936_v12 = vpop.f32.mrf.mxu2 }
0x1ccd   :  { %3437 = vmatmul.msk.f32.vlgmr.msra.gmra.mxu3 %vm1802_vm9, %v1936_v12 }
0x1cd4   :  { %v1939_v13 = vpop.f32.mrf.mxu2 }
0x1cd5   :  { %3438 = vmatmul.msk.f32.gmra.mxu3 %vm1802_vm9, %v1939_v13 }
0x1d50   :  { %v1965_v22 = vpop.f32.mrf.mxu3 }
0x1d51   :  { %v1971_v39 = vmul.f32 %v1965_v22, %v4189_v29 }
0x1d53   :  { %v1973_v40 = vmul.f32 255.0, %v1971_v39 }
0x1d57   :  { %1977 = sbr.rel (%p3431_p0) target bundleno = 7518 (0x1d5e), region = 237 }
0x1d58   :  { %v1968_v41 = vpop.f32.mrf.mxu3 }
0x1d59   :  { %v1972_v42 = vmul.f32 %v1968_v41, %v4189_v29 }
0x1d5b   :  { %v1974_v43 = vmul.f32 255.0, %v1972_v42 }
0x1d5c   :  { %1979 = vst.msk [vmem:[#allocation9 + $0x10] sm:$0xff] %vm1802_vm9, %v1973_v40 }
0x1d5d   :  { %1980 = vst.msk [vmem:[#allocation9 + $0x18] sm:$0xff] %vm1802_vm9, %v1974_v43 }
0x1d5e PF:  { %1983 = sbr.rel (%p3432_p1) target bundleno = 7697 (0x1e11), region = 241 }
0x1d63   :  { %1984 = vxpose.xlu0.b32.start [1/2] (short) (narrow) %v1973_v40, 16 }
0x1d6b   :  { %1985 = vxpose.xlu0.b32.end [2/2] (short) (narrow) %v1974_v43, 16 }
0x1e07   :  { %v2000_v44 = vpop.trf.xlu0 }
0x1e08   :  { %2017 = vst.msk [vmem:[#allocation9 + $0x10] sm:$0xff] %vm1802_vm9, %v2000_v44 }
0x1e0f   :  { %v2001_v45 = vpop.trf.xlu0 }
0x1e10   :  { %2018 = vst.msk [vmem:[#allocation9 + $0x18] sm:$0xff] %vm1802_vm9, %v2001_v45 }
0x1e11 PF:  { %v2021_v48 = vld [vmem:[#allocation4 + $0x28] sm:$0xff]  ;;  %v2020_v49 = vld [vmem:[#allocation4 + $0x20] sm:$0xff]  ;;  %3443 = vmatpush.msk.msrb.mxu1 %vm1795_vm11, %v3739_v18 }
0x1e12   :  { %2036 = vmatpush.msrb.mxu0 %v2021_v48 }
0x1e13   :  { %3444 = vmatpush.msk.msrb.mxu1 %vm1794_vm10, %v3739_v18 }
0x1e14   :  { %2037 = vmatpush.msrb.mxu0 %v2020_v49 }
0x1e15   :  { %3441 = vmatmul.msk.f32.vlgmr.msrb.gmra.mxu0 %vm1802_vm9, %v4170_v17 }
0x1e1d   :  { %3442 = vmatmul.msk.f32.gmra.mxu0 %vm1802_vm9, %v4183_v19 }
0x1e92   :  { %v2039_v50 = vpop.f32.mrf.mxu0 }
0x1e93   :  { %3445 = vmatmul.msk.f32.vlgmr.msrb.gmra.mxu1 %vm1802_vm9, %v2039_v50 }
0x1e9a   :  { %v2042_v51 = vpop.f32.mrf.mxu0 }
0x1e9b   :  { %3446 = vmatmul.msk.f32.gmra.mxu1 %vm1802_vm9, %v2042_v51 }
0x1f10   :  { %v2068_v52 = vpop.f32.mrf.mxu1 }
0x1f11   :  { %v2074_v53 = vmul.f32 %v2068_v52, %v4189_v29 }
0x1f13   :  { %v2076_v55 = vmul.f32 255.0, %v2074_v53 }
0x1f17   :  { %2080 = sbr.rel (%p3431_p0) target bundleno = 7966 (0x1f1e), region = 245 }
0x1f18   :  { %v2071_v56 = vpop.f32.mrf.mxu1 }
0x1f19   :  { %v2075_v57 = vmul.f32 %v2071_v56, %v4189_v29 }
0x1f1b   :  { %v2077_v58 = vmul.f32 255.0, %v2075_v57 }
0x1f1c   :  { %2082 = vst.msk [vmem:[#allocation9 + $0x20] sm:$0xff] %vm1802_vm9, %v2076_v55 }
0x1f1d   :  { %2083 = vst.msk [vmem:[#allocation9 + $0x28] sm:$0xff] %vm1802_vm9, %v2077_v58 }
0x1f1e PF:  { %2086 = sbr.rel (%p3432_p1) target bundleno = 8145 (0x1fd1), region = 249 }
0x1f23   :  { %2087 = vxpose.xlu0.b32.start [1/2] (short) (narrow) %v2076_v55, 16 }
0x1f2b   :  { %2088 = vxpose.xlu0.b32.end [2/2] (short) (narrow) %v2077_v58, 16 }
0x1fc7   :  { %v2103_v59 = vpop.trf.xlu0 }
0x1fc8   :  { %2120 = vst.msk [vmem:[#allocation9 + $0x20] sm:$0xff] %vm1802_vm9, %v2103_v59 }
0x1fcf   :  { %v2104_v60 = vpop.trf.xlu0 }
0x1fd0   :  { %2121 = vst.msk [vmem:[#allocation9 + $0x28] sm:$0xff] %vm1802_vm9, %v2104_v60 }
0x1fd1 PF:  { %v2124_v61 = vld [vmem:[#allocation4 + $0x38] sm:$0xff]  ;;  %v2123_v62 = vld [vmem:[#allocation4 + $0x30] sm:$0xff]  ;;  %3451 = vmatpush.msk.msrb.mxu3 %vm1795_vm11, %v3739_v18 }
0x1fd2   :  { %2139 = vmatpush.msrb.mxu2 %v2124_v61 }
0x1fd3   :  { %3452 = vmatpush.msk.msrb.mxu3 %vm1794_vm10, %v3739_v18 }
0x1fd4   :  { %2140 = vmatpush.msrb.mxu2 %v2123_v62 }
0x1fd5   :  { %3449 = vmatmul.msk.f32.vlgmr.msrb.gmra.mxu2 %vm1802_vm9, %v4170_v17 }
0x1fdd   :  { %3450 = vmatmul.msk.f32.gmra.mxu2 %vm1802_vm9, %v4183_v19 }
0x2058   :  { %v2142_v63 = vpop.f32.mrf.mxu2 }
0x2059   :  { %3453 = vmatmul.msk.f32.vlgmr.msrb.gmra.mxu3 %vm1802_vm9, %v2142_v63 }
0x2060   :  { %v2145_v0 = vpop.f32.mrf.mxu2 }
0x2061   :  { %3454 = vmatmul.msk.f32.gmra.mxu3 %vm1802_vm9, %v2145_v0 }
0x20dc   :  { %v2171_v1 = vpop.f32.mrf.mxu3 }
0x20dd   :  { %v2177_v2 = vmul.f32 %v2171_v1, %v4189_v29 }
0x20df   :  { %v2179_v3 = vmul.f32 255.0, %v2177_v2 }
0x20e3   :  { %2183 = sbr.rel (%p3431_p0) target bundleno = 8426 (0x20ea), region = 253 }
0x20e4   :  { %v2174_v4 = vpop.f32.mrf.mxu3 }
0x20e5   :  { %v2178_v5 = vmul.f32 %v2174_v4, %v4189_v29 }
0x20e7   :  { %v2180_v46 = vmul.f32 255.0, %v2178_v5 }
0x20e8   :  { %2185 = vst.msk [vmem:[#allocation9 + $0x30] sm:$0xff] %vm1802_vm9, %v2179_v3 }
0x20e9   :  { %2186 = vst.msk [vmem:[#allocation9 + $0x38] sm:$0xff] %vm1802_vm9, %v2180_v46 }
0x20ea PF:  { %2189 = sbr.rel (%p3432_p1) target bundleno = 8605 (0x219d), region = 257 }
0x20ef   :  { %2190 = vxpose.xlu0.b32.start [1/2] (short) (narrow) %v2179_v3, 16 }
0x20f7   :  { %2191 = vxpose.xlu0.b32.end [2/2] (short) (narrow) %v2180_v46, 16 }
0x2193   :  { %v2206_v47 = vpop.trf.xlu0 }
0x2194   :  { %2223 = vst.msk [vmem:[#allocation9 + $0x30] sm:$0xff] %vm1802_vm9, %v2206_v47 }
0x219b   :  { %v2207_v54 = vpop.trf.xlu0 }
0x219c   :  { %2224 = vst.msk [vmem:[#allocation9 + $0x38] sm:$0xff] %vm1802_vm9, %v2207_v54 }
0x219d PF:  { %v2227_v6 = vld [vmem:[#allocation4 + $0x48] sm:$0xff]  ;;  %v2226_v7 = vld [vmem:[#allocation4 + $0x40] sm:$0xff]  ;;  %3459 = vmatpush.msk.msra.mxu1 %vm1795_vm11, %v3739_v18 }
0x219e   :  { %2242 = vmatpush.msra.mxu0 %v2227_v6 }
0x219f   :  { %3460 = vmatpush.msk.msra.mxu1 %vm1794_vm10, %v3739_v18 }
0x21a0   :  { %2243 = vmatpush.msra.mxu0 %v2226_v7 }
0x21a1   :  { %3457 = vmatmul.msk.f32.vlgmr.msra.gmra.mxu0 %vm1802_vm9, %v4170_v17 }
0x21a9   :  { %3458 = vmatmul.msk.f32.gmra.mxu0 %vm1802_vm9, %v4183_v19 }
0x221e   :  { %v2245_v8 = vpop.f32.mrf.mxu0 }
0x221f   :  { %3461 = vmatmul.msk.f32.vlgmr.msra.gmra.mxu1 %vm1802_vm9, %v2245_v8 }
0x2226   :  { %v2248_v9 = vpop.f32.mrf.mxu0 }
0x2227   :  { %3462 = vmatmul.msk.f32.gmra.mxu1 %vm1802_vm9, %v2248_v9 }
0x229c   :  { %v2274_v14 = vpop.f32.mrf.mxu1 }
0x229d   :  { %v2280_v16 = vmul.f32 %v2274_v14, %v4189_v29 }
0x229f   :  { %v2282_v20 = vmul.f32 255.0, %v2280_v16 }
0x22a3   :  { %2286 = sbr.rel (%p3431_p0) target bundleno = 8874 (0x22aa), region = 261 }
0x22a4   :  { %v2277_v21 = vpop.f32.mrf.mxu1 }
0x22a5   :  { %v2281_v23 = vmul.f32 %v2277_v21, %v4189_v29 }
0x22a7   :  { %v2283_v24 = vmul.f32 255.0, %v2281_v23 }
0x22a8   :  { %2288 = vst.msk [vmem:[#allocation9 + $0x40] sm:$0xff] %vm1802_vm9, %v2282_v20 }
0x22a9   :  { %2289 = vst.msk [vmem:[#allocation9 + $0x48] sm:$0xff] %vm1802_vm9, %v2283_v24 }
0x22aa PF:  { %2292 = sbr.rel (%p3432_p1) target bundleno = 9053 (0x235d), region = 265 }
0x22af   :  { %2293 = vxpose.xlu0.b32.start [1/2] (short) (narrow) %v2282_v20, 16 }
0x22b7   :  { %2294 = vxpose.xlu0.b32.end [2/2] (short) (narrow) %v2283_v24, 16 }
0x2353   :  { %v2309_v25 = vpop.trf.xlu0 }
0x2354   :  { %2326 = vst.msk [vmem:[#allocation9 + $0x40] sm:$0xff] %vm1802_vm9, %v2309_v25 }
0x235b   :  { %v2310_v26 = vpop.trf.xlu0 }
0x235c   :  { %2327 = vst.msk [vmem:[#allocation9 + $0x48] sm:$0xff] %vm1802_vm9, %v2310_v26 }
0x235d PF:  { %v2330_v27 = vld [vmem:[#allocation4 + $0x58] sm:$0xff]  ;;  %v2329_v28 = vld [vmem:[#allocation4 + $0x50] sm:$0xff]  ;;  %3467 = vmatpush.msk.msra.mxu3 %vm1795_vm11, %v3739_v18 }
0x235e   :  { %2345 = vmatpush.msra.mxu2 %v2330_v27 }
0x235f   :  { %3468 = vmatpush.msk.msra.mxu3 %vm1794_vm10, %v3739_v18 }
0x2360   :  { %2346 = vmatpush.msra.mxu2 %v2329_v28 }
0x2361   :  { %3465 = vmatmul.msk.f32.vlgmr.msra.gmra.mxu2 %vm1802_vm9, %v4170_v17 }
0x2369   :  { %3466 = vmatmul.msk.f32.gmra.mxu2 %vm1802_vm9, %v4183_v19 }
0x23e4   :  { %v2348_v30 = vpop.f32.mrf.mxu2 }
0x23e5   :  { %3469 = vmatmul.msk.f32.vlgmr.msra.gmra.mxu3 %vm1802_vm9, %v2348_v30 }
0x23ec   :  { %v2351_v31 = vpop.f32.mrf.mxu2 }
0x23ed   :  { %3470 = vmatmul.msk.f32.gmra.mxu3 %vm1802_vm9, %v2351_v31 }
0x2468   :  { %v2377_v32 = vpop.f32.mrf.mxu3 }
0x2469   :  { %v2383_v33 = vmul.f32 %v2377_v32, %v4189_v29 }
0x246b   :  { %v2385_v34 = vmul.f32 255.0, %v2383_v33 }
0x246f   :  { %2389 = sbr.rel (%p3431_p0) target bundleno = 9334 (0x2476), region = 269 }
0x2470   :  { %v2380_v35 = vpop.f32.mrf.mxu3 }
0x2471   :  { %v2384_v36 = vmul.f32 %v2380_v35, %v4189_v29 }
0x2473   :  { %v2386_v37 = vmul.f32 255.0, %v2384_v36 }
0x2474   :  { %2391 = vst.msk [vmem:[#allocation9 + $0x50] sm:$0xff] %vm1802_vm9, %v2385_v34 }
0x2475   :  { %2392 = vst.msk [vmem:[#allocation9 + $0x58] sm:$0xff] %vm1802_vm9, %v2386_v37 }
0x2476 PF:  { %2395 = sbr.rel (%p3432_p1) target bundleno = 9513 (0x2529), region = 273 }
0x247b   :  { %2396 = vxpose.xlu0.b32.start [1/2] (short) (narrow) %v2385_v34, 16 }
0x2483   :  { %2397 = vxpose.xlu0.b32.end [2/2] (short) (narrow) %v2386_v37, 16 }
0x251f   :  { %v2412_v38 = vpop.trf.xlu0 }
0x2520   :  { %2429 = vst.msk [vmem:[#allocation9 + $0x50] sm:$0xff] %vm1802_vm9, %v2412_v38 }
0x2527   :  { %v2413_v11 = vpop.trf.xlu0 }
0x2528   :  { %2430 = vst.msk [vmem:[#allocation9 + $0x58] sm:$0xff] %vm1802_vm9, %v2413_v11 }
0x2529 PF:  { %v2433_v12 = vld [vmem:[#allocation4 + $0x68] sm:$0xff]  ;;  %v2432_v13 = vld [vmem:[#allocation4 + $0x60] sm:$0xff]  ;;  %3475 = vmatpush.msk.msrb.mxu1 %vm1795_vm11, %v3739_v18 }
0x252a   :  { %2448 = vmatpush.msrb.mxu0 %v2433_v12 }
0x252b   :  { %3476 = vmatpush.msk.msrb.mxu1 %vm1794_vm10, %v3739_v18 }
0x252c   :  { %2449 = vmatpush.msrb.mxu0 %v2432_v13 }
0x252d   :  { %3473 = vmatmul.msk.f32.vlgmr.msrb.gmra.mxu0 %vm1802_vm9, %v4170_v17 }
0x2535   :  { %3474 = vmatmul.msk.f32.gmra.mxu0 %vm1802_vm9, %v4183_v19 }
0x25aa   :  { %v2451_v22 = vpop.f32.mrf.mxu0 }
0x25ab   :  { %3477 = vmatmul.msk.f32.vlgmr.msrb.gmra.mxu1 %vm1802_vm9, %v2451_v22 }
0x25b2   :  { %v2454_v39 = vpop.f32.mrf.mxu0 }
0x25b3   :  { %3478 = vmatmul.msk.f32.gmra.mxu1 %vm1802_vm9, %v2454_v39 }
0x2628   :  { %v2480_v40 = vpop.f32.mrf.mxu1 }
0x2629   :  { %v2486_v41 = vmul.f32 %v2480_v40, %v4189_v29 }
0x262b   :  { %v2488_v42 = vmul.f32 255.0, %v2486_v41 }
0x262f   :  { %2492 = sbr.rel (%p3431_p0) target bundleno = 9782 (0x2636), region = 277 }
0x2630   :  { %v2483_v43 = vpop.f32.mrf.mxu1 }
0x2631   :  { %v2487_v44 = vmul.f32 %v2483_v43, %v4189_v29 }
0x2633   :  { %v2489_v45 = vmul.f32 255.0, %v2487_v44 }
0x2634   :  { %2494 = vst.msk [vmem:[#allocation9 + $0x60] sm:$0xff] %vm1802_vm9, %v2488_v42 }
0x2635   :  { %2495 = vst.msk [vmem:[#allocation9 + $0x68] sm:$0xff] %vm1802_vm9, %v2489_v45 }
0x2636 PF:  { %2498 = sbr.rel (%p3432_p1) target bundleno = 9961 (0x26e9), region = 281 }
0x263b   :  { %2499 = vxpose.xlu0.b32.start [1/2] (short) (narrow) %v2488_v42, 16 }
0x2643   :  { %2500 = vxpose.xlu0.b32.end [2/2] (short) (narrow) %v2489_v45, 16 }
0x26df   :  { %v2515_v48 = vpop.trf.xlu0 }
0x26e0   :  { %2532 = vst.msk [vmem:[#allocation9 + $0x60] sm:$0xff] %vm1802_vm9, %v2515_v48 }
0x26e7   :  { %v2516_v49 = vpop.trf.xlu0 }
0x26e8   :  { %2533 = vst.msk [vmem:[#allocation9 + $0x68] sm:$0xff] %vm1802_vm9, %v2516_v49 }
0x26e9 PF:  { %v2536_v50 = vld [vmem:[#allocation4 + $0x78] sm:$0xff]  ;;  %v2535_v51 = vld [vmem:[#allocation4 + $0x70] sm:$0xff]  ;;  %3483 = vmatpush.msk.msrb.mxu3 %vm1795_vm11, %v3739_v18 }
0x26ea   :  { %2551 = vmatpush.msrb.mxu2 %v2536_v50 }
0x26eb   :  { %3484 = vmatpush.msk.msrb.mxu3 %vm1794_vm10, %v3739_v18 }
0x26ec   :  { %2552 = vmatpush.msrb.mxu2 %v2535_v51 }
0x26ed   :  { %3481 = vmatmul.msk.f32.vlgmr.msrb.gmra.mxu2 %vm1802_vm9, %v4170_v17 }
0x26f5   :  { %3482 = vmatmul.msk.f32.gmra.mxu2 %vm1802_vm9, %v4183_v19 }
0x2770   :  { %v2554_v52 = vpop.f32.mrf.mxu2 }
0x2771   :  { %3485 = vmatmul.msk.f32.vlgmr.msrb.gmra.mxu3 %vm1802_vm9, %v2554_v52 }
0x2778   :  { %v2557_v53 = vpop.f32.mrf.mxu2 }
0x2779   :  { %3486 = vmatmul.msk.f32.gmra.mxu3 %vm1802_vm9, %v2557_v53 }
0x27f4   :  { %v2583_v15 = vpop.f32.mrf.mxu3 }
0x27f5   :  { %v2589_v55 = vmul.f32 %v2583_v15, %v4189_v29 }
0x27f7   :  { %v2591_v56 = vmul.f32 255.0, %v2589_v55 }
0x27fb   :  { %2595 = sbr.rel (%p3431_p0) target bundleno = 10242 (0x2802), region = 285 }
0x27fc   :  { %v2586_v57 = vpop.f32.mrf.mxu3 }
0x27fd   :  { %v2590_v10 = vmul.f32 %v2586_v57, %v4189_v29 }
0x27ff   :  { %v2592_v18 = vmul.f32 255.0, %v2590_v10 }
0x2800   :  { %2597 = vst.msk [vmem:[#allocation9 + $0x70] sm:$0xff] %vm1802_vm9, %v2591_v56 }
0x2801   :  { %2598 = vst.msk [vmem:[#allocation9 + $0x78] sm:$0xff] %vm1802_vm9, %v2592_v18 }
0x2802 PF:  { %2601 = sbr.rel (%p3432_p1) target bundleno = 10421 (0x28b5), region = 289 }
0x2807   :  { %2602 = vxpose.xlu0.b32.start [1/2] (short) (narrow) %v2591_v56, 16 }
0x280f   :  { %2603 = vxpose.xlu0.b32.end [2/2] (short) (narrow) %v2592_v18, 16 }
0x28ab   :  { %v2618_v17 = vpop.trf.xlu0 }
0x28ac   :  { %2635 = vst.msk [vmem:[#allocation9 + $0x70] sm:$0xff] %vm1802_vm9, %v2618_v17 }
0x28b3   :  { %v2619_v19 = vpop.trf.xlu0 }
0x28b4   :  { %2636 = vst.msk [vmem:[#allocation9 + $0x78] sm:$0xff] %vm1802_vm9, %v2619_v19 }
0x28b5 PF:  { %2638 = sbr.rel (%p3799_p2) target bundleno = 10802 (0x2a32), region = 293  ;;  %p3489_p3 = scmp.ne.s32.totalorder (!%p3799_p2), %s3787_s1, 0 }
0x28ba   :  { %v2639_v29 = vld [vmem:[#allocation7] sm:$0xff]  ;;  %v2640_v58 = vld [vmem:[#allocation7 + $0x8] sm:$0xff]  ;;  %2644 = sbr.rel (%p3489_p3) target bundleno = 10434 (0x28c2), region = 297 }
0x28bf   :  { %vm2645_vm13 = vcmask 130048  }
0x28c0   :  { %2646 = vst.msk [vmem:[#allocation10] sm:$0xff] %vm2645_vm13, %v2639_v29 }
0x28c1   :  { %2647 = vst.msk [vmem:[#allocation10 + $0x8] sm:$0xff] %vm2645_vm13, %v2640_v58 }
0x28c2 PF:  { %p3490_p4 = scmp.eq.s32.totalorder %s3787_s1, 0 }
0x28c4   :  { %2651 = sbr.rel (%p3490_p4) target bundleno = 10615 (0x2977), region = 301 }
0x28c9   :  { %2652 = vxpose.xlu0.b32.start [1/2] (short) (narrow) %v2639_v29, 16  ;;  %vm2684_vm14 = vcmask 130048  }
0x28d1   :  { %2653 = vxpose.xlu0.b32.end [2/2] (short) (narrow) %v2640_v58, 16 }
0x296d   :  { %v2668_v59 = vpop.trf.xlu0 }
0x296e   :  { %2685 = vst.msk [vmem:[#allocation10] sm:$0xff] %vm2684_vm14, %v2668_v59 }
0x2975   :  { %v2669_v60 = vpop.trf.xlu0 }
0x2976   :  { %2686 = vst.msk [vmem:[#allocation10 + $0x8] sm:$0xff] %vm2684_vm14, %v2669_v60 }
0x2977 PF:  { %v2688_v61 = vld [vmem:[#allocation7 + $0x10] sm:$0xff]  ;;  %v2689_v62 = vld [vmem:[#allocation7 + $0x18] sm:$0xff]  ;;  %2692 = sbr.rel (%p3489_p3) target bundleno = 10623 (0x297f), region = 305 }
0x297c   :  { %vm2694_vm15 = vcmask 130048  }
0x297d   :  { %2695 = vst.msk [vmem:[#allocation10 + $0x10] sm:$0xff] %vm2694_vm15, %v2688_v61 }
0x297e   :  { %2696 = vst.msk [vmem:[#allocation10 + $0x18] sm:$0xff] %vm2694_vm15, %v2689_v62 }
0x297f PF:  { %2699 = sbr.rel (%p3490_p4) target bundleno = 10802 (0x2a32), region = 309 }
0x2984   :  { %2700 = vxpose.xlu0.b32.start [1/2] (short) (narrow) %v2688_v61, 16  ;;  %vm2733_vm0 = vcmask 130048  }
0x298c   :  { %2701 = vxpose.xlu0.b32.end [2/2] (short) (narrow) %v2689_v62, 16 }
0x2a28   :  { %v2716_v63 = vpop.trf.xlu0 }
0x2a29   :  { %2734 = vst.msk [vmem:[#allocation10 + $0x10] sm:$0xff] %vm2733_vm0, %v2716_v63 }
0x2a30   :  { %v2717_v0 = vpop.trf.xlu0 }
0x2a31   :  { %2735 = vst.msk [vmem:[#allocation10 + $0x18] sm:$0xff] %vm2733_vm0, %v2717_v0 }
0x2a32 PF:  { %2737 = sbr.rel (%p3862_p6) target bundleno = 11450 (0x2cba), region = 313  ;;  %p3499_p2 = scmp.ne.s32.totalorder (!%p3862_p6), %s3787_s1, 0 }
0x2a37   :  { %v2738_v1 = vlaneseq  ;;  %v3741_v47 = vmov 1.0   ;;  %v2752_v54 = vld [vmem:[#allocation7 + $0x8] sm:$0xff]  ;;  %vm2753_vm3 = vcmask 130048   ;;  %v2751_v6 = vld [vmem:[#allocation7] sm:$0xff] }
0x2a39   :  { %v2739_v2 = vshrl.u32 %v2738_v1, 7  ;;  %v2742_v3 = vand.u32 127, %v2738_v1 }
0x2a3b   :  { %v2740_v4 = vadd.s32 8, %v2739_v2  ;;  %v2743_v5 = vadd.s32 %v2742_v3, %v2739_v2 }
0x2a3d   :  { %v2744_v46 = vadd.s32 %v2742_v3, %v2740_v4  ;;  %vm2745_vm2 = vcmp.eq.s32.totalorder %v2743_v5, 15 }
0x2a3f   :  { %vm2746_vm1 = vcmp.eq.s32.totalorder %v2744_v46, 15 }
0x2a40   :  { %3535 = vmatpush.msk.msra.mxu2 %vm2746_vm1, %v3741_v47  ;;  %3495 = vmatpush.msk.msra.mxu0 %vm2746_vm1, %v3741_v47 }
0x2a42   :  { %3536 = vmatpush.msk.msra.mxu2 %vm2745_vm2, %v3741_v47  ;;  %3496 = vmatpush.msk.msra.mxu0 %vm2745_vm2, %v3741_v47 }
0x2a43   :  { %3498 = vmatmul.msk.f32.vlgmr.msra.gmra.mxu2 %vm2753_vm3, %v2752_v54  ;;  %3497 = vmatmul.msk.f32.vlgmr.msra.gmra.mxu0 %vm2753_vm3, %v2751_v6 }
0x2ac0   :  { %v2777_v7 = vpop.f32.mrf.mxu0 }
0x2ac2   :  { %2786 = sbr.rel (%p3499_p2) target bundleno = 10953 (0x2ac9), region = 317 }
0x2ac6   :  { %v2780_v8 = vpop.f32.mrf.mxu2 }
0x2ac7   :  { %2787 = vst.msk [vmem:[#allocation10] sm:$0xff] %vm2753_vm3, %v2777_v7 }
0x2ac8   :  { %2788 = vst.msk [vmem:[#allocation10 + $0x8] sm:$0xff] %vm2753_vm3, %v2780_v8 }
0x2ac9 PF:  { %p3500_p5 = scmp.eq.s32.totalorder %s3787_s1, 0 }
0x2acb   :  { %2792 = sbr.rel (%p3500_p5) target bundleno = 11134 (0x2b7e), region = 321 }
0x2ad0   :  { %2793 = vxpose.xlu0.b32.start [1/2] (short) (narrow) %v2777_v7, 16 }
0x2ad8   :  { %2794 = vxpose.xlu0.b32.end [2/2] (short) (narrow) %v2780_v8, 16 }
0x2b74   :  { %v2809_v9 = vpop.trf.xlu0 }
0x2b75   :  { %2825 = vst.msk [vmem:[#allocation10] sm:$0xff] %vm2753_vm3, %v2809_v9 }
0x2b7c   :  { %v2810_v14 = vpop.trf.xlu0 }
0x2b7d   :  { %2826 = vst.msk [vmem:[#allocation10 + $0x8] sm:$0xff] %vm2753_vm3, %v2810_v14 }
0x2b7e PF:  { %3537 = vmatpush.msk.msra.mxu3 %vm2746_vm1, %v3741_v47  ;;  %v2829_v16 = vld [vmem:[#allocation7 + $0x18] sm:$0xff]  ;;  %3501 = vmatpush.msk.msra.mxu1 %vm2746_vm1, %v3741_v47  ;;  %v2828_v20 = vld [vmem:[#allocation7 + $0x10] sm:$0xff] }
0x2b80   :  { %3538 = vmatpush.msk.msra.mxu3 %vm2745_vm2, %v3741_v47  ;;  %3502 = vmatpush.msk.msra.mxu1 %vm2745_vm2, %v3741_v47 }
0x2b81   :  { %3504 = vmatmul.msk.f32.vlgmr.msra.gmra.mxu3 %vm2753_vm3, %v2829_v16  ;;  %3503 = vmatmul.msk.f32.vlgmr.msra.gmra.mxu1 %vm2753_vm3, %v2828_v20 }
0x2bfe   :  { %v2853_v21 = vpop.f32.mrf.mxu1 }
0x2c00   :  { %2861 = sbr.rel (%p3499_p2) target bundleno = 11271 (0x2c07), region = 325 }
0x2c04   :  { %v2856_v23 = vpop.f32.mrf.mxu3 }
0x2c05   :  { %2863 = vst.msk [vmem:[#allocation10 + $0x10] sm:$0xff] %vm2753_vm3, %v2853_v21 }
0x2c06   :  { %2864 = vst.msk [vmem:[#allocation10 + $0x18] sm:$0xff] %vm2753_vm3, %v2856_v23 }
0x2c07 PF:  { %2867 = sbr.rel (%p3500_p5) target bundleno = 11450 (0x2cba), region = 329 }
0x2c0c   :  { %2868 = vxpose.xlu0.b32.start [1/2] (short) (narrow) %v2853_v21, 16 }
0x2c14   :  { %2869 = vxpose.xlu0.b32.end [2/2] (short) (narrow) %v2856_v23, 16 }
0x2cb0   :  { %v2884_v24 = vpop.trf.xlu0 }
0x2cb1   :  { %2901 = vst.msk [vmem:[#allocation10 + $0x10] sm:$0xff] %vm2753_vm3, %v2884_v24 }
0x2cb8   :  { %v2885_v25 = vpop.trf.xlu0 }
0x2cb9   :  { %2902 = vst.msk [vmem:[#allocation10 + $0x18] sm:$0xff] %vm2753_vm3, %v2885_v25 }
0x2cba PF:  { %2904 = sbr.rel (%p4027_p10) target bundleno = 12097 (0x2f41), region = 333  ;;  %p3511_p6 = scmp.ne.s32.totalorder (!%p4027_p10), %s3787_s1, 0 }
0x2cbf   :  { %v2919_v26 = vld [vmem:[#allocation7 + $0x8] sm:$0xff]  ;;  %v2918_v27 = vld [vmem:[#allocation7] sm:$0xff]  ;;  %v2905_v28 = vlaneseq  ;;  %vm2920_vm5 = vcmask 130048   ;;  %v3742_v35 = vmov 0.0  }
0x2cc0   :  { %3539 = vmatpush.msra.mxu2 %v2919_v26  ;;  %2941 = vmatpush.msra.mxu0 %v2919_v26 }
0x2cc1   :  { %v2906_v30 = vshrl.u32 %v2905_v28, 7  ;;  %v2909_v31 = vand.u32 127, %v2905_v28 }
0x2cc2   :  { %3540 = vmatpush.msra.mxu2 %v2918_v27  ;;  %2942 = vmatpush.msra.mxu0 %v2918_v27 }
0x2cc3   :  { %v2907_v32 = vadd.s32 8, %v2906_v30  ;;  %v2910_v33 = vadd.s32 %v2909_v31, %v2906_v30 }
0x2cc5   :  { %v2911_v34 = vadd.s32 %v2909_v31, %v2907_v32  ;;  %vm2912_vm4 = vcmp.eq.s32.totalorder %v2910_v33, 15 }
0x2cc6   :  { %v3507_v36 = vsel %vm2912_vm4, 1.0, %v3742_v35 }
0x2cc7   :  { %vm2913_vm6 = vcmp.eq.s32.totalorder %v2911_v34, 15  ;;  %3509 = vmatmul.msk.f32.vlgmr.msra.gmra.mxu0 %vm2920_vm5, %v3507_v36 }
0x2cc8   :  { %v3508_v37 = vsel %vm2913_vm6, 1.0, %v3742_v35 }
0x2cc9   :  { %3510 = vmatmul.msk.f32.vlgmr.msra.gmra.mxu2 %vm2920_vm5, %v3508_v37 }
0x2d44   :  { %v2944_v38 = vpop.f32.mrf.mxu0 }
0x2d48   :  { %2953 = sbr.rel (%p3511_p6) target bundleno = 11599 (0x2d4f), region = 337 }
0x2d4c   :  { %v2947_v11 = vpop.f32.mrf.mxu2 }
0x2d4d   :  { %2954 = vst.msk [vmem:[#allocation10] sm:$0xff] %vm2920_vm5, %v2944_v38 }
0x2d4e   :  { %2955 = vst.msk [vmem:[#allocation10 + $0x8] sm:$0xff] %vm2920_vm5, %v2947_v11 }
0x2d4f PF:  { %p3512_p7 = scmp.eq.s32.totalorder %s3787_s1, 0 }
0x2d51   :  { %2959 = sbr.rel (%p3512_p7) target bundleno = 11780 (0x2e04), region = 341 }
0x2d56   :  { %2960 = vxpose.xlu0.b32.start [1/2] (short) (narrow) %v2944_v38, 16 }
0x2d5e   :  { %2961 = vxpose.xlu0.b32.end [2/2] (short) (narrow) %v2947_v11, 16 }
0x2dfa   :  { %v2976_v12 = vpop.trf.xlu0 }
0x2dfb   :  { %2992 = vst.msk [vmem:[#allocation10] sm:$0xff] %vm2920_vm5, %v2976_v12 }
0x2e02   :  { %v2977_v13 = vpop.trf.xlu0 }
0x2e03   :  { %2993 = vst.msk [vmem:[#allocation10 + $0x8] sm:$0xff] %vm2920_vm5, %v2977_v13 }
0x2e04 PF:  { %v2996_v22 = vld [vmem:[#allocation7 + $0x18] sm:$0xff]  ;;  %v2995_v39 = vld [vmem:[#allocation7 + $0x10] sm:$0xff] }
0x2e05   :  { %3541 = vmatpush.msra.mxu3 %v2996_v22  ;;  %3011 = vmatpush.msra.mxu1 %v2996_v22 }
0x2e07   :  { %3542 = vmatpush.msra.mxu3 %v2995_v39  ;;  %3012 = vmatpush.msra.mxu1 %v2995_v39 }
0x2e08   :  { %3514 = vmatmul.msk.f32.vlgmr.msra.gmra.mxu3 %vm2920_vm5, %v3508_v37  ;;  %3513 = vmatmul.msk.f32.vlgmr.msra.gmra.mxu1 %vm2920_vm5, %v3507_v36 }
0x2e85   :  { %v3014_v40 = vpop.f32.mrf.mxu1 }
0x2e87   :  { %3022 = sbr.rel (%p3511_p6) target bundleno = 11918 (0x2e8e), region = 345 }
0x2e8b   :  { %v3017_v41 = vpop.f32.mrf.mxu3 }
0x2e8c   :  { %3024 = vst.msk [vmem:[#allocation10 + $0x10] sm:$0xff] %vm2920_vm5, %v3014_v40 }
0x2e8d   :  { %3025 = vst.msk [vmem:[#allocation10 + $0x18] sm:$0xff] %vm2920_vm5, %v3017_v41 }
0x2e8e PF:  { %3028 = sbr.rel (%p3512_p7) target bundleno = 12097 (0x2f41), region = 349 }
0x2e93   :  { %3029 = vxpose.xlu0.b32.start [1/2] (short) (narrow) %v3014_v40, 16 }
0x2e9b   :  { %3030 = vxpose.xlu0.b32.end [2/2] (short) (narrow) %v3017_v41, 16 }
0x2f37   :  { %v3045_v42 = vpop.trf.xlu0 }
0x2f38   :  { %3062 = vst.msk [vmem:[#allocation10 + $0x10] sm:$0xff] %vm2920_vm5, %v3045_v42 }
0x2f3f   :  { %v3046_v43 = vpop.trf.xlu0 }
0x2f40   :  { %3063 = vst.msk [vmem:[#allocation10 + $0x18] sm:$0xff] %vm2920_vm5, %v3046_v43 }
0x2f41 PF:  { %3065 = sbr.rel (%p4157_p13) target bundleno = 13010 (0x32d2), region = 353  ;;  %p3525_p8 = scmp.ne.s32.totalorder (!%p4157_p13), %s3787_s1, 0 }
0x2f46   :  { %v3080_v44 = vld [vmem:[#allocation7 + $0x8] sm:$0xff]  ;;  %v3079_v45 = vld [vmem:[#allocation7] sm:$0xff]  ;;  %v3066_v48 = vlaneseq  ;;  %vm3081_vm7 = vcmask 130048   ;;  %v3743_v15 = vmov 0.0   ;;  %v3744_v56 = vmov 1.0  }
0x2f47   :  { %3102 = vmatpush.msra.mxu0 %v3080_v44 }
0x2f48   :  { %v3067_v49 = vshrl.u32 %v3066_v48, 7  ;;  %v3070_v50 = vand.u32 127, %v3066_v48 }
0x2f49   :  { %3103 = vmatpush.msra.mxu0 %v3079_v45 }
0x2f4a   :  { %v3071_v51 = vadd.s32 %v3070_v50, %v3067_v49  ;;  %v3068_v52 = vadd.s32 8, %v3067_v49 }
0x2f4c   :  { %vm3073_vm8 = vcmp.eq.s32.totalorder %v3071_v51, 15  ;;  %v3072_v53 = vadd.s32 %v3070_v50, %v3068_v52 }
0x2f4d   :  { %v3517_v55 = vsel %vm3073_vm8, 1.0, %v3743_v15 }
0x2f4e   :  { %3519 = vmatmul.msk.f32.vlgmr.msra.gmra.mxu0 %vm3081_vm7, %v3517_v55  ;;  %vm3074_vm9 = vcmp.eq.s32.totalorder %v3072_v53, 15 }
0x2f4f   :  { %3521 = vmatpush.msk.msra.mxu1 %vm3074_vm9, %v3744_v56  ;;  %v3518_v57 = vsel %vm3074_vm9, 1.0, %v3743_v15 }
0x2f51   :  { %3522 = vmatpush.msk.msra.mxu1 %vm3073_vm8, %v3744_v56 }
0x2f56   :  { %3520 = vmatmul.msk.f32.gmra.mxu0 %vm3081_vm7, %v3518_v57 }
0x2fcb   :  { %v3105_v10 = vpop.f32.mrf.mxu0 }
0x2fcc   :  { %3523 = vmatmul.msk.f32.vlgmr.msra.gmra.mxu1 %vm3081_vm7, %v3105_v10 }
0x2fd3   :  { %v3108_v18 = vpop.f32.mrf.mxu0 }
0x2fd4   :  { %3524 = vmatmul.msk.f32.gmra.mxu1 %vm3081_vm7, %v3108_v18 }
0x3049   :  { %v3134_v17 = vpop.f32.mrf.mxu1 }
0x304d   :  { %3143 = sbr.rel (%p3525_p8) target bundleno = 12372 (0x3054), region = 357 }
0x3051   :  { %v3137_v19 = vpop.f32.mrf.mxu1 }
0x3052   :  { %3144 = vst.msk [vmem:[#allocation10] sm:$0xff] %vm3081_vm7, %v3134_v17 }
0x3053   :  { %3145 = vst.msk [vmem:[#allocation10 + $0x8] sm:$0xff] %vm3081_vm7, %v3137_v19 }
0x3054 PF:  { %p3526_p9 = scmp.eq.s32.totalorder %s3787_s1, 0 }
0x3056   :  { %3149 = sbr.rel (%p3526_p9) target bundleno = 12553 (0x3109), region = 361 }
0x305b   :  { %3150 = vxpose.xlu0.b32.start [1/2] (short) (narrow) %v3134_v17, 16 }
0x3063   :  { %3151 = vxpose.xlu0.b32.end [2/2] (short) (narrow) %v3137_v19, 16 }
0x30ff   :  { %v3166_v29 = vpop.trf.xlu0 }
0x3100   :  { %3182 = vst.msk [vmem:[#allocation10] sm:$0xff] %vm3081_vm7, %v3166_v29 }
0x3107   :  { %v3167_v58 = vpop.trf.xlu0 }
0x3108   :  { %3183 = vst.msk [vmem:[#allocation10 + $0x8] sm:$0xff] %vm3081_vm7, %v3167_v58 }
0x3109 PF:  { %v3186_v59 = vld [vmem:[#allocation7 + $0x18] sm:$0xff]  ;;  %v3185_v60 = vld [vmem:[#allocation7 + $0x10] sm:$0xff]  ;;  %3529 = vmatpush.msk.msra.mxu3 %vm3074_vm9, %v3744_v56 }
0x310a   :  { %3201 = vmatpush.msra.mxu2 %v3186_v59 }
0x310b   :  { %3530 = vmatpush.msk.msra.mxu3 %vm3073_vm8, %v3744_v56 }
0x310c   :  { %3202 = vmatpush.msra.mxu2 %v3185_v60 }
0x310d   :  { %3527 = vmatmul.msk.f32.vlgmr.msra.gmra.mxu2 %vm3081_vm7, %v3517_v55 }
0x3115   :  { %3528 = vmatmul.msk.f32.gmra.mxu2 %vm3081_vm7, %v3518_v57 }
0x3190   :  { %v3204_v61 = vpop.f32.mrf.mxu2 }
0x3191   :  { %3531 = vmatmul.msk.f32.vlgmr.msra.gmra.mxu3 %vm3081_vm7, %v3204_v61 }
0x3198   :  { %v3207_v62 = vpop.f32.mrf.mxu2 }
0x3199   :  { %3532 = vmatmul.msk.f32.gmra.mxu3 %vm3081_vm7, %v3207_v62 }
0x3214   :  { %v3233_v63 = vpop.f32.mrf.mxu3 }
0x3218   :  { %3241 = sbr.rel (%p3525_p8) target bundleno = 12831 (0x321f), region = 365 }
0x321c   :  { %v3236_v0 = vpop.f32.mrf.mxu3 }
0x321d   :  { %3243 = vst.msk [vmem:[#allocation10 + $0x10] sm:$0xff] %vm3081_vm7, %v3233_v63 }
0x321e   :  { %3244 = vst.msk [vmem:[#allocation10 + $0x18] sm:$0xff] %vm3081_vm7, %v3236_v0 }
0x321f PF:  { %3247 = sbr.rel (%p3526_p9) target bundleno = 13010 (0x32d2), region = 369 }
0x3224   :  { %3248 = vxpose.xlu0.b32.start [1/2] (short) (narrow) %v3233_v63, 16 }
0x322c   :  { %3249 = vxpose.xlu0.b32.end [2/2] (short) (narrow) %v3236_v0, 16 }
0x32c8   :  { %v3264_v1 = vpop.trf.xlu0 }
0x32c9   :  { %3281 = vst.msk [vmem:[#allocation10 + $0x10] sm:$0xff] %vm3081_vm7, %v3264_v1 }
0x32d0   :  { %v3265_v2 = vpop.trf.xlu0 }
0x32d1   :  { %3282 = vst.msk [vmem:[#allocation10 + $0x18] sm:$0xff] %vm3081_vm7, %v3265_v2 }
0x32d2 PF:  { %s3289_s11 = sshll.u32 %s4474_s3, 4  ;;  %s3745_s12 = smov [#allocation9]   ;;  %s3290_s11 = int_to_ptr.hbm [resolvable:$true] %s3289_s11 }
0x32d3   :  { %s3287_s13 = sshll.u32 %s3745_s12, 4  ;;  %s3746_s14 = smov [#allocation10]   ;;  %s3288_s13 = int_to_ptr.vmem [resolvable:$true] %s3287_s13 }
0x32d4   :  { %3295 = dma.vmem_to_hbm [thread:$0]  %s3288_s13, 2048, %s3290_s11, [#allocation6], %s3730_s26, %s3730_s26, %s3731_s27  }
0x32d5   :  { %s3300_s15 = sshll.u32 %s3746_s14, 4  ;;  %s3302_s18 = sshll.u32 %s4475_s4, 4  ;;  %s3301_s15 = int_to_ptr.vmem [resolvable:$true] %s3300_s15  ;;  %s3303_s18 = int_to_ptr.hbm [resolvable:$true] %s3302_s18 }
0x32d6   :  { %3308 = dma.vmem_to_hbm [thread:$0]  %s3301_s15, 512, %s3303_s18, [#allocation11], %s3730_s26, %s3730_s26, %s3731_s27  }
0x32d7   :  { %3724 = dma.done.wait [#allocation6], 2048  }
0x32d8   :  { %3725 = vsyncadd [#allocation6], 4294965248 }
0x32d9   :  { %3726 = dma.done.wait [#allocation11], 512  }
0x32da   :  { %3727 = vsyncadd [#allocation11], 4294966784 }
0x32db   :  { %3317 = vsyncpa [#allocation5], 1 }
0x32dc   :  { %3318 = vsyncpa [#allocation8], 1 }
0x32dd   :  { %3319 = vsyncpa [#allocation6], 1 }
0x32de   :  { %3320 = vsyncpa [#allocation11], 1 }

</bundles_post_ra>
